<compile_context>
chip_gen: v5e
topology: v5e:2x2
jax: 0.10.0
libtpu: 0.0.40
codegen_flags: <defaults>
</compile_context>

<pallas_src>
import functools

import jax
import jax.numpy as jnp
from jax import lax
from jax.experimental import pallas as pl
from jax.experimental.pallas import tpu as pltpu


def _round_up(x, m):
    return (x + m - 1) // m * m


def _generator_kernel(a0_ref, a1_ref, a2_ref, a3_ref,
                      w1_ref, w2_ref, w3_ref, b3_ref,
                      o_ref, xin_ref, *, H, W, input_nc, gpad, ngf, c_out_pad):
    """Fused 3-layer generator for one batch element (channels-first layout).

    a*_ref:  (1, input_nc, H*W)     the 4 blurred inputs (f32, NC(HW))
    w1_ref:  (9, ngf, 4*gpad)       per-tap weights, grouped/padded input channels
    w2_ref:  (9, ngf, ngf)
    w3_ref:  (9, c_out_pad, ngf)
    b3_ref:  (c_out_pad, 1)
    o_ref:   (1, c_out_pad, H*W)    lane-dense NCHW output slab
    xin_ref: (4*gpad, H*W) VMEM     grouped, channel-padded concat of the 4 inputs
    """
    HW = H * W
    inv_hw = 1.0 / HW

    # ---- assemble the grouped, channel-padded input (pad rows stay exactly 0) ----
    xin_ref[...] = jnp.zeros_like(xin_ref)
    xin_ref[0 * gpad:0 * gpad + input_nc, :] = a0_ref[0]
    xin_ref[1 * gpad:1 * gpad + input_nc, :] = a1_ref[0]
    xin_ref[2 * gpad:2 * gpad + input_nc, :] = a2_ref[0]
    xin_ref[3 * gpad:3 * gpad + input_nc, :] = a3_ref[0]

    # ---- per-tap lane shifts + border masks (shared by all 3 conv layers) ----
    col = lax.broadcasted_iota(jnp.int32, (1, HW), 1).astype(jnp.float32)
    row = jnp.floor((col + 0.5) * (1.0 / W))   # y = p // W  (exact for integer p)
    xcol = col - row * W                       # x = p %  W
    taps = []
    for ky in range(3):
        for kx in range(3):
            dy, dx = ky - 1, kx - 1
            shift = (-(dy * W + dx)) % HW      # rolled[p] = a[(p + dy*W + dx) mod HW]
            mask = ((row >= -dy) & (row <= H - 1 - dy) &
                    (xcol >= -dx) & (xcol <= W - 1 - dx))
            taps.append((dy, dx, shift, mask))

    def conv3x3(a, w_ref, c_out):
        # a: (c_in, HW); w_ref: (9, c_out, c_in).  9 accumulating MXU dots; the tap
        # shift is an XLU lane rotation + border mask (no im2col slab, no re-pad).
        acc = jnp.zeros((c_out, HW), jnp.float32)
        for t, (dy, dx, shift, mask) in enumerate(taps):
            if dy == 0 and dx == 0:
                shifted = a
            else:
                shifted = jnp.where(mask, pltpu.roll(a, shift, axis=1), 0.0)
            acc = acc + jnp.dot(w_ref[t], shifted,
                                preferred_element_type=jnp.float32)
        return acc

    def inorm_relu(a):
        # InstanceNorm2d(affine=False), single-pass stats (E[x^2] - mean^2), then ReLU.
        s1 = jnp.sum(a, axis=1, keepdims=True)
        s2 = jnp.sum(a * a, axis=1, keepdims=True)
        mean = s1 * inv_hw
        var = jnp.maximum(s2 * inv_hw - mean * mean, 0.0)
        return jnp.maximum((a - mean) * lax.rsqrt(var + 1e-5), 0.0)

    x0 = xin_ref[...]                                   # (4*gpad, HW)
    h = inorm_relu(conv3x3(x0, w1_ref, ngf))            # conv biases cancelled by IN
    h = inorm_relu(conv3x3(h, w2_ref, ngf))
    y = jnp.tanh(conv3x3(h, w3_ref, c_out_pad) + b3_ref[...])

    # learn_residual: clamp(real_A0 + out, -1, 1).  real_A0 occupies rows
    # [0, input_nc) of the grouped input; padded rows are zero on both sides.
    res = xin_ref[0:c_out_pad, :]
    o_ref[0] = jnp.clip(res + y, -1.0, 1.0)


def pack_generator_params(params):
    """PyTorch-layout (OIHW) conv weights -> per-tap, channel-padded kernel layout."""
    w1, w2, w3, b3 = params["w1"], params["w2"], params["w3"], params["b3"]
    ngf, cin_tot = w1.shape[0], w1.shape[1]
    input_nc = cin_tot // 4
    output_nc = w3.shape[0]
    assert cin_tot == 4 * input_nc
    assert output_nc <= input_nc, "learn_residual adds real_A0 onto the output channels"
    assert ngf % 8 == 0

    gpad = _round_up(input_nc, 8)
    c_out_pad = _round_up(output_nc, 8)

    def to_taps(w):  # (co, ci, 3, 3) -> (9, co, ci), tap index t = ky*3 + kx
        return jnp.transpose(w, (2, 3, 0, 1)).reshape(
            9, w.shape[0], w.shape[1]).astype(jnp.float32)

    w1t = to_taps(w1)                                    # (9, ngf, 4*input_nc)
    w1p = jnp.zeros((9, ngf, 4 * gpad), jnp.float32)
    for g in range(4):
        w1p = w1p.at[:, :, g * gpad:g * gpad + input_nc].set(
            w1t[:, :, g * input_nc:(g + 1) * input_nc])
    w3p = jnp.zeros((9, c_out_pad, ngf), jnp.float32).at[:, :output_nc, :].set(to_taps(w3))
    b3p = jnp.zeros((c_out_pad, 1), jnp.float32).at[:output_nc, 0].set(
        b3.astype(jnp.float32))
    # NOTE: b1/b2 are not packed: InstanceNorm2d(affine=False) cancels them exactly.
    return {"w1": w1p, "w2": to_taps(w2), "w3": w3p, "b3": b3p}


@functools.partial(jax.jit, static_argnames=("output_nc",))
def conditional_gan_forward(packed, real_A0, real_A1, real_A2, real_A3, *, output_nc):
    """fake_B = netG(real_A0..A3).  NCHW in, NCHW out, one fused pallas_call."""
    B, nc, H, W = real_A0.shape
    HW = H * W
    assert HW % 128 == 0, "spatial size must fill whole 128-lane vregs"

    w1, w2, w3, b3 = packed["w1"], packed["w2"], packed["w3"], packed["b3"]
    ngf = w1.shape[1]
    gpad4 = w1.shape[2]
    c_out_pad = w3.shape[1]

    flat = lambda a: a.reshape(B, nc, HW).astype(jnp.float32)   # free: NCHW row-major

    kernel = functools.partial(_generator_kernel, H=H, W=W, input_nc=nc,
                               gpad=gpad4 // 4, ngf=ngf, c_out_pad=c_out_pad)

    out = pl.pallas_call(
        kernel,
        out_shape=jax.ShapeDtypeStruct((B, c_out_pad, HW), jnp.float32),
        grid_spec=pltpu.PrefetchScalarGridSpec(
            num_scalar_prefetch=0,
            grid=(B,),
            in_specs=[
                pl.BlockSpec((1, nc, HW), lambda b: (b, 0, 0)),
                pl.BlockSpec((1, nc, HW), lambda b: (b, 0, 0)),
                pl.BlockSpec((1, nc, HW), lambda b: (b, 0, 0)),
                pl.BlockSpec((1, nc, HW), lambda b: (b, 0, 0)),
                pl.BlockSpec((9, ngf, gpad4), lambda b: (0, 0, 0)),   # constant: DMA once
                pl.BlockSpec((9, ngf, ngf), lambda b: (0, 0, 0)),
                pl.BlockSpec((9, c_out_pad, ngf), lambda b: (0, 0, 0)),
                pl.BlockSpec((c_out_pad, 1), lambda b: (0, 0)),
            ],
            out_specs=pl.BlockSpec((1, c_out_pad, HW), lambda b: (b, 0, 0)),
            scratch_shapes=[pltpu.VMEM((gpad4, HW), jnp.float32)],
        ),
        compiler_params=pltpu.CompilerParams(
            dimension_semantics=("parallel",),   # B=2 fills both TensorCores on v7x
        ),
    )(flat(real_A0), flat(real_A1), flat(real_A2), flat(real_A3), w1, w2, w3, b3)

    # The (B, c_out_pad, HW) slab is already NCHW: just drop the padding channels.
    return out[:, :output_nc, :].reshape(B, output_nc, H, W)


def init_generator_params(key, input_nc, output_nc, ngf):
    """Synthetic weights in PyTorch OIHW layout for the 3-layer multi-input generator."""
    k1, k2, k3, k4 = jax.random.split(key, 4)
    cin0 = 4 * input_nc
    return {
        "w1": 0.1 * jax.random.normal(k1, (ngf, cin0, 3, 3), jnp.float32),
        "w2": 0.1 * jax.random.normal(k2, (ngf, ngf, 3, 3), jnp.float32),
        "w3": 0.1 * jax.random.normal(k3, (output_nc, ngf, 3, 3), jnp.float32),
        "b3": 0.05 * jax.random.normal(k4, (output_nc,), jnp.float32),
        # b1/b2 omitted: InstanceNorm2d(affine=False) cancels conv biases exactly.
    }


def _reference_forward(params, a0, a1, a2, a3):
    """Pure-JAX reference of the same generator (numerical validation only)."""
    def conv(v, w):
        return lax.conv_general_dilated(
            v, w, window_strides=(1, 1), padding=((1, 1), (1, 1)),
            dimension_numbers=("NCHW", "OIHW", "NCHW"),
            precision=lax.Precision.HIGHEST)

    def inorm(v):
        m = jnp.mean(v, axis=(2, 3), keepdims=True)
        var = jnp.mean(jnp.square(v - m), axis=(2, 3), keepdims=True)
        return (v - m) * lax.rsqrt(var + 1e-5)

    x = jnp.concatenate([a0, a1, a2, a3], axis=1)
    h = jax.nn.relu(inorm(conv(x, params["w1"])))
    h = jax.nn.relu(inorm(conv(h, params["w2"])))
    y = jnp.tanh(conv(h, params["w3"]) + params["b3"][None, :, None, None])
    return jnp.clip(a0 + y, -1.0, 1.0)


if __name__ == "__main__":
    # Small shapes consistent with opt: batchSize=2, input_nc=output_nc=3,
    # fineSize=16, ngf=16.
    B, NC, FS, NGF = 2, 3, 16, 16

    key = jax.random.PRNGKey(0)
    k_in, k_par = jax.random.split(key)
    k0, k1, k2, k3 = jax.random.split(k_in, 4)

    real_A0 = jax.random.uniform(k0, (B, NC, FS, FS), jnp.float32, -1.0, 1.0)
    real_A1 = jax.random.uniform(k1, (B, NC, FS, FS), jnp.float32, -1.0, 1.0)
    real_A2 = jax.random.uniform(k2, (B, NC, FS, FS), jnp.float32, -1.0, 1.0)
    real_A3 = jax.random.uniform(k3, (B, NC, FS, FS), jnp.float32, -1.0, 1.0)

    params = init_generator_params(k_par, input_nc=NC, output_nc=NC, ngf=NGF)
    packed = pack_generator_params(params)

    fake_B = conditional_gan_forward(packed, real_A0, real_A1, real_A2, real_A3,
                                     output_nc=NC)
    fake_B = jax.block_until_ready(fake_B)

    assert fake_B.shape == (B, NC, FS, FS)
    assert bool(jnp.all(jnp.isfinite(fake_B)))
    assert bool(jnp.all(jnp.abs(fake_B) <= 1.0))

    ref = _reference_forward(params, real_A0, real_A1, real_A2, real_A3)
    max_err = float(jnp.max(jnp.abs(fake_B - ref)))
    assert max_err < 5e-2, f"kernel deviates from reference: max |diff| = {max_err}"

    print("KERNEL_OK")
</pallas_src>

<mosaic_0001>
module attributes {stable_mosaic.version = 11 : i64} {
  func.func @_generator_kernel(%arg0: i32, %arg1: memref<1x3x256xf32, #tpu.memory_space<vmem>>, %arg2: memref<1x3x256xf32, #tpu.memory_space<vmem>>, %arg3: memref<1x3x256xf32, #tpu.memory_space<vmem>>, %arg4: memref<1x3x256xf32, #tpu.memory_space<vmem>>, %arg5: memref<9x16x32xf32, #tpu.memory_space<vmem>>, %arg6: memref<9x16x16xf32, #tpu.memory_space<vmem>>, %arg7: memref<9x8x16xf32, #tpu.memory_space<vmem>>, %arg8: memref<8x1xf32, #tpu.memory_space<vmem>>, %arg9: memref<1x8x256xf32, #tpu.memory_space<vmem>>, %arg10: memref<32x256xf32, #tpu.memory_space<vmem>>) attributes {dimension_semantics = [#tpu.dimension_semantics<parallel>], iteration_bounds = array<i64: 2>, scalar_prefetch = 0 : i64, scratch_operands = 1 : i64, tpu.core_type = #tpu.core_type<tc>, window_params = [{transform_indices = @transform_0, window_bounds = array<i64: 1, 3, 256>}, {transform_indices = @transform_1, window_bounds = array<i64: 1, 3, 256>}, {transform_indices = @transform_2, window_bounds = array<i64: 1, 3, 256>}, {transform_indices = @transform_3, window_bounds = array<i64: 1, 3, 256>}, {pipeline_mode = #tpu.pipeline_mode<synchronous>, transform_indices = @transform_4, window_bounds = array<i64: 9, 16, 32>}, {pipeline_mode = #tpu.pipeline_mode<synchronous>, transform_indices = @transform_5, window_bounds = array<i64: 9, 16, 16>}, {pipeline_mode = #tpu.pipeline_mode<synchronous>, transform_indices = @transform_6, window_bounds = array<i64: 9, 8, 16>}, {pipeline_mode = #tpu.pipeline_mode<synchronous>, transform_indices = @transform_7, window_bounds = array<i64: 8, 1>}, {transform_indices = @transform_8, window_bounds = array<i64: 1, 8, 256>}]} {
    %cst = arith.constant 0.000000e+00 : f32
    %0 = vector.broadcast %cst : f32 to vector<32x256xf32>
    %c0 = arith.constant 0 : index
    %c0_0 = arith.constant 0 : index
    %1 = vector.load %arg10[%c0, %c0_0] : memref<32x256xf32, #tpu.memory_space<vmem>>, vector<32x256xf32>
    tpu.vector_store %arg10[%c0, %c0_0], %0 {strides = array<i32>} : memref<32x256xf32, #tpu.memory_space<vmem>>, vector<32x256xf32>,
    %c0_1 = arith.constant 0 : index
    %c0_2 = arith.constant 0 : index
    %c0_3 = arith.constant 0 : index
    %2 = vector.load %arg1[%c0_1, %c0_2, %c0_3] : memref<1x3x256xf32, #tpu.memory_space<vmem>>, vector<1x3x256xf32>
    %3 = vector.shape_cast %2 : vector<1x3x256xf32> to vector<3x256xf32>
    %c0_4 = arith.constant 0 : index
    %c0_5 = arith.constant 0 : index
    %4 = vector.load %arg10[%c0_4, %c0_5] : memref<32x256xf32, #tpu.memory_space<vmem>>, vector<3x256xf32>
    tpu.vector_store %arg10[%c0_4, %c0_5], %3 {strides = array<i32>} : memref<32x256xf32, #tpu.memory_space<vmem>>, vector<3x256xf32>,
    %c0_6 = arith.constant 0 : index
    %c0_7 = arith.constant 0 : index
    %c0_8 = arith.constant 0 : index
    %5 = vector.load %arg2[%c0_6, %c0_7, %c0_8] : memref<1x3x256xf32, #tpu.memory_space<vmem>>, vector<1x3x256xf32>
    %6 = vector.shape_cast %5 : vector<1x3x256xf32> to vector<3x256xf32>
    %c8 = arith.constant 8 : index
    %c0_9 = arith.constant 0 : index
    %7 = vector.load %arg10[%c8, %c0_9] : memref<32x256xf32, #tpu.memory_space<vmem>>, vector<3x256xf32>
    tpu.vector_store %arg10[%c8, %c0_9], %6 {strides = array<i32>} : memref<32x256xf32, #tpu.memory_space<vmem>>, vector<3x256xf32>,
    %c0_10 = arith.constant 0 : index
    %c0_11 = arith.constant 0 : index
    %c0_12 = arith.constant 0 : index
    %8 = vector.load %arg3[%c0_10, %c0_11, %c0_12] : memref<1x3x256xf32, #tpu.memory_space<vmem>>, vector<1x3x256xf32>
    %9 = vector.shape_cast %8 : vector<1x3x256xf32> to vector<3x256xf32>
    %c16 = arith.constant 16 : index
    %c0_13 = arith.constant 0 : index
    %10 = vector.load %arg10[%c16, %c0_13] : memref<32x256xf32, #tpu.memory_space<vmem>>, vector<3x256xf32>
    tpu.vector_store %arg10[%c16, %c0_13], %9 {strides = array<i32>} : memref<32x256xf32, #tpu.memory_space<vmem>>, vector<3x256xf32>,
    %c0_14 = arith.constant 0 : index
    %c0_15 = arith.constant 0 : index
    %c0_16 = arith.constant 0 : index
    %11 = vector.load %arg4[%c0_14, %c0_15, %c0_16] : memref<1x3x256xf32, #tpu.memory_space<vmem>>, vector<1x3x256xf32>
    %12 = vector.shape_cast %11 : vector<1x3x256xf32> to vector<3x256xf32>
    %c24 = arith.constant 24 : index
    %c0_17 = arith.constant 0 : index
    %13 = vector.load %arg10[%c24, %c0_17] : memref<32x256xf32, #tpu.memory_space<vmem>>, vector<3x256xf32>
    tpu.vector_store %arg10[%c24, %c0_17], %12 {strides = array<i32>} : memref<32x256xf32, #tpu.memory_space<vmem>>, vector<3x256xf32>,
    %14 = tpu.iota {dimensions = array<i32: 1>} : vector<1x256xi32>
    %15 = arith.sitofp %14 : vector<1x256xi32> to vector<1x256xf32>
    %cst_18 = arith.constant 5.000000e-01 : f32
    %16 = vector.broadcast %cst_18 : f32 to vector<1x256xf32>
    %17 = arith.addf %15, %16 : vector<1x256xf32>
    %cst_19 = arith.constant 6.250000e-02 : f32
    %18 = vector.broadcast %cst_19 : f32 to vector<1x256xf32>
    %19 = arith.mulf %17, %18 : vector<1x256xf32>
    %20 = math.floor %19 : vector<1x256xf32>
    %cst_20 = arith.constant 1.600000e+01 : f32
    %21 = vector.broadcast %cst_20 : f32 to vector<1x256xf32>
    %22 = arith.mulf %20, %21 : vector<1x256xf32>
    %23 = arith.subf %15, %22 : vector<1x256xf32>
    %cst_21 = arith.constant 1.000000e+00 : f32
    %24 = vector.broadcast %cst_21 : f32 to vector<1x256xf32>
    %25 = arith.cmpf oge, %20, %24 : vector<1x256xf32>
    %cst_22 = arith.constant 1.600000e+01 : f32
    %26 = vector.broadcast %cst_22 : f32 to vector<1x256xf32>
    %27 = arith.cmpf ole, %20, %26 : vector<1x256xf32>
    %28 = arith.andi %25, %27 : vector<1x256xi1>
    %cst_23 = arith.constant 1.000000e+00 : f32
    %29 = vector.broadcast %cst_23 : f32 to vector<1x256xf32>
    %30 = arith.cmpf oge, %23, %29 : vector<1x256xf32>
    %31 = arith.andi %28, %30 : vector<1x256xi1>
    %cst_24 = arith.constant 1.600000e+01 : f32
    %32 = vector.broadcast %cst_24 : f32 to vector<1x256xf32>
    %33 = arith.cmpf ole, %23, %32 : vector<1x256xf32>
    %34 = arith.andi %31, %33 : vector<1x256xi1>
    %cst_25 = arith.constant 1.000000e+00 : f32
    %35 = vector.broadcast %cst_25 : f32 to vector<1x256xf32>
    %36 = arith.cmpf oge, %20, %35 : vector<1x256xf32>
    %cst_26 = arith.constant 1.600000e+01 : f32
    %37 = vector.broadcast %cst_26 : f32 to vector<1x256xf32>
    %38 = arith.cmpf ole, %20, %37 : vector<1x256xf32>
    %39 = arith.andi %36, %38 : vector<1x256xi1>
    %cst_27 = arith.constant 0.000000e+00 : f32
    %40 = vector.broadcast %cst_27 : f32 to vector<1x256xf32>
    %41 = arith.cmpf oge, %23, %40 : vector<1x256xf32>
    %42 = arith.andi %39, %41 : vector<1x256xi1>
    %cst_28 = arith.constant 1.500000e+01 : f32
    %43 = vector.broadcast %cst_28 : f32 to vector<1x256xf32>
    %44 = arith.cmpf ole, %23, %43 : vector<1x256xf32>
    %45 = arith.andi %42, %44 : vector<1x256xi1>
    %cst_29 = arith.constant 1.000000e+00 : f32
    %46 = vector.broadcast %cst_29 : f32 to vector<1x256xf32>
    %47 = arith.cmpf oge, %20, %46 : vector<1x256xf32>
    %cst_30 = arith.constant 1.600000e+01 : f32
    %48 = vector.broadcast %cst_30 : f32 to vector<1x256xf32>
    %49 = arith.cmpf ole, %20, %48 : vector<1x256xf32>
    %50 = arith.andi %47, %49 : vector<1x256xi1>
    %cst_31 = arith.constant -1.000000e+00 : f32
    %51 = vector.broadcast %cst_31 : f32 to vector<1x256xf32>
    %52 = arith.cmpf oge, %23, %51 : vector<1x256xf32>
    %53 = arith.andi %50, %52 : vector<1x256xi1>
    %cst_32 = arith.constant 1.400000e+01 : f32
    %54 = vector.broadcast %cst_32 : f32 to vector<1x256xf32>
    %55 = arith.cmpf ole, %23, %54 : vector<1x256xf32>
    %56 = arith.andi %53, %55 : vector<1x256xi1>
    %cst_33 = arith.constant 0.000000e+00 : f32
    %57 = vector.broadcast %cst_33 : f32 to vector<1x256xf32>
    %58 = arith.cmpf oge, %20, %57 : vector<1x256xf32>
    %cst_34 = arith.constant 1.500000e+01 : f32
    %59 = vector.broadcast %cst_34 : f32 to vector<1x256xf32>
    %60 = arith.cmpf ole, %20, %59 : vector<1x256xf32>
    %61 = arith.andi %58, %60 : vector<1x256xi1>
    %cst_35 = arith.constant 1.000000e+00 : f32
    %62 = vector.broadcast %cst_35 : f32 to vector<1x256xf32>
    %63 = arith.cmpf oge, %23, %62 : vector<1x256xf32>
    %64 = arith.andi %61, %63 : vector<1x256xi1>
    %cst_36 = arith.constant 1.600000e+01 : f32
    %65 = vector.broadcast %cst_36 : f32 to vector<1x256xf32>
    %66 = arith.cmpf ole, %23, %65 : vector<1x256xf32>
    %67 = arith.andi %64, %66 : vector<1x256xi1>
    %cst_37 = arith.constant 0.000000e+00 : f32
    %68 = vector.broadcast %cst_37 : f32 to vector<1x256xf32>
    %69 = arith.cmpf oge, %20, %68 : vector<1x256xf32>
    %cst_38 = arith.constant 1.500000e+01 : f32
    %70 = vector.broadcast %cst_38 : f32 to vector<1x256xf32>
    %71 = arith.cmpf ole, %20, %70 : vector<1x256xf32>
    %72 = arith.andi %69, %71 : vector<1x256xi1>
    %cst_39 = arith.constant -1.000000e+00 : f32
    %73 = vector.broadcast %cst_39 : f32 to vector<1x256xf32>
    %74 = arith.cmpf oge, %23, %73 : vector<1x256xf32>
    %75 = arith.andi %72, %74 : vector<1x256xi1>
    %cst_40 = arith.constant 1.400000e+01 : f32
    %76 = vector.broadcast %cst_40 : f32 to vector<1x256xf32>
    %77 = arith.cmpf ole, %23, %76 : vector<1x256xf32>
    %78 = arith.andi %75, %77 : vector<1x256xi1>
    %cst_41 = arith.constant -1.000000e+00 : f32
    %79 = vector.broadcast %cst_41 : f32 to vector<1x256xf32>
    %80 = arith.cmpf oge, %20, %79 : vector<1x256xf32>
    %cst_42 = arith.constant 1.400000e+01 : f32
    %81 = vector.broadcast %cst_42 : f32 to vector<1x256xf32>
    %82 = arith.cmpf ole, %20, %81 : vector<1x256xf32>
    %83 = arith.andi %80, %82 : vector<1x256xi1>
    %cst_43 = arith.constant 1.000000e+00 : f32
    %84 = vector.broadcast %cst_43 : f32 to vector<1x256xf32>
    %85 = arith.cmpf oge, %23, %84 : vector<1x256xf32>
    %86 = arith.andi %83, %85 : vector<1x256xi1>
    %cst_44 = arith.constant 1.600000e+01 : f32
    %87 = vector.broadcast %cst_44 : f32 to vector<1x256xf32>
    %88 = arith.cmpf ole, %23, %87 : vector<1x256xf32>
    %89 = arith.andi %86, %88 : vector<1x256xi1>
    %cst_45 = arith.constant -1.000000e+00 : f32
    %90 = vector.broadcast %cst_45 : f32 to vector<1x256xf32>
    %91 = arith.cmpf oge, %20, %90 : vector<1x256xf32>
    %cst_46 = arith.constant 1.400000e+01 : f32
    %92 = vector.broadcast %cst_46 : f32 to vector<1x256xf32>
    %93 = arith.cmpf ole, %20, %92 : vector<1x256xf32>
    %94 = arith.andi %91, %93 : vector<1x256xi1>
    %cst_47 = arith.constant 0.000000e+00 : f32
    %95 = vector.broadcast %cst_47 : f32 to vector<1x256xf32>
    %96 = arith.cmpf oge, %23, %95 : vector<1x256xf32>
    %97 = arith.andi %94, %96 : vector<1x256xi1>
    %cst_48 = arith.constant 1.500000e+01 : f32
    %98 = vector.broadcast %cst_48 : f32 to vector<1x256xf32>
    %99 = arith.cmpf ole, %23, %98 : vector<1x256xf32>
    %100 = arith.andi %97, %99 : vector<1x256xi1>
    %cst_49 = arith.constant -1.000000e+00 : f32
    %101 = vector.broadcast %cst_49 : f32 to vector<1x256xf32>
    %102 = arith.cmpf oge, %20, %101 : vector<1x256xf32>
    %cst_50 = arith.constant 1.400000e+01 : f32
    %103 = vector.broadcast %cst_50 : f32 to vector<1x256xf32>
    %104 = arith.cmpf ole, %20, %103 : vector<1x256xf32>
    %105 = arith.andi %102, %104 : vector<1x256xi1>
    %cst_51 = arith.constant -1.000000e+00 : f32
    %106 = vector.broadcast %cst_51 : f32 to vector<1x256xf32>
    %107 = arith.cmpf oge, %23, %106 : vector<1x256xf32>
    %108 = arith.andi %105, %107 : vector<1x256xi1>
    %cst_52 = arith.constant 1.400000e+01 : f32
    %109 = vector.broadcast %cst_52 : f32 to vector<1x256xf32>
    %110 = arith.cmpf ole, %23, %109 : vector<1x256xf32>
    %111 = arith.andi %108, %110 : vector<1x256xi1>
    %c0_53 = arith.constant 0 : index
    %c0_54 = arith.constant 0 : index
    %112 = vector.load %arg10[%c0_53, %c0_54] : memref<32x256xf32, #tpu.memory_space<vmem>>, vector<32x256xf32>
    %cst_55 = arith.constant 0.000000e+00 : f32
    %113 = vector.broadcast %cst_55 : f32 to vector<16x256xf32>
    %c17_i32 = arith.constant 17 : i32
    %114 = tpu.dynamic_rotate %112 by %c17_i32 dim 1 : vector<32x256xf32>, i32 -> vector<32x256xf32>
    %cst_56 = arith.constant 0.000000e+00 : f32
    %115 = vector.shape_cast %34 : vector<1x256xi1> to vector<1x256xi1>
    %116 = vector.broadcast %115 : vector<1x256xi1> to vector<32x256xi1>
    %117 = vector.broadcast %cst_56 : f32 to vector<32x256xf32>
    %118 = arith.select %116, %114, %117 : vector<32x256xi1>, vector<32x256xf32>
    %c0_57 = arith.constant 0 : index
    %c0_58 = arith.constant 0 : index
    %c0_59 = arith.constant 0 : index
    %119 = vector.load %arg5[%c0_57, %c0_58, %c0_59] : memref<9x16x32xf32, #tpu.memory_space<vmem>>, vector<1x16x32xf32>
    %120 = vector.shape_cast %119 : vector<1x16x32xf32> to vector<16x32xf32>
    %cst_60 = arith.constant dense<0.000000e+00> : vector<16x256xf32>
    %121 = tpu.matmul %120, %118, %cst_60 {dimension_numbers = #tpu.dot_dimension_numbers<[1], [0], [0], [1], [0, 0, 1, 1], [], []>} : vector<16x32xf32>, vector<32x256xf32>, vector<16x256xf32> -> vector<16x256xf32>
    %122 = arith.addf %113, %121 : vector<16x256xf32>
    %c16_i32 = arith.constant 16 : i32
    %123 = tpu.dynamic_rotate %112 by %c16_i32 dim 1 : vector<32x256xf32>, i32 -> vector<32x256xf32>
    %cst_61 = arith.constant 0.000000e+00 : f32
    %124 = vector.shape_cast %45 : vector<1x256xi1> to vector<1x256xi1>
    %125 = vector.broadcast %124 : vector<1x256xi1> to vector<32x256xi1>
    %126 = vector.broadcast %cst_61 : f32 to vector<32x256xf32>
    %127 = arith.select %125, %123, %126 : vector<32x256xi1>, vector<32x256xf32>
    %c1 = arith.constant 1 : index
    %c0_62 = arith.constant 0 : index
    %c0_63 = arith.constant 0 : index
    %128 = vector.load %arg5[%c1, %c0_62, %c0_63] : memref<9x16x32xf32, #tpu.memory_space<vmem>>, vector<1x16x32xf32>
    %129 = vector.shape_cast %128 : vector<1x16x32xf32> to vector<16x32xf32>
    %cst_64 = arith.constant dense<0.000000e+00> : vector<16x256xf32>
    %130 = tpu.matmul %129, %127, %cst_64 {dimension_numbers = #tpu.dot_dimension_numbers<[1], [0], [0], [1], [0, 0, 1, 1], [], []>} : vector<16x32xf32>, vector<32x256xf32>, vector<16x256xf32> -> vector<16x256xf32>
    %131 = arith.addf %122, %130 : vector<16x256xf32>
    %c15_i32 = arith.constant 15 : i32
    %132 = tpu.dynamic_rotate %112 by %c15_i32 dim 1 : vector<32x256xf32>, i32 -> vector<32x256xf32>
    %cst_65 = arith.constant 0.000000e+00 : f32
    %133 = vector.shape_cast %56 : vector<1x256xi1> to vector<1x256xi1>
    %134 = vector.broadcast %133 : vector<1x256xi1> to vector<32x256xi1>
    %135 = vector.broadcast %cst_65 : f32 to vector<32x256xf32>
    %136 = arith.select %134, %132, %135 : vector<32x256xi1>, vector<32x256xf32>
    %c2 = arith.constant 2 : index
    %c0_66 = arith.constant 0 : index
    %c0_67 = arith.constant 0 : index
    %137 = vector.load %arg5[%c2, %c0_66, %c0_67] : memref<9x16x32xf32, #tpu.memory_space<vmem>>, vector<1x16x32xf32>
    %138 = vector.shape_cast %137 : vector<1x16x32xf32> to vector<16x32xf32>
    %cst_68 = arith.constant dense<0.000000e+00> : vector<16x256xf32>
    %139 = tpu.matmul %138, %136, %cst_68 {dimension_numbers = #tpu.dot_dimension_numbers<[1], [0], [0], [1], [0, 0, 1, 1], [], []>} : vector<16x32xf32>, vector<32x256xf32>, vector<16x256xf32> -> vector<16x256xf32>
    %140 = arith.addf %131, %139 : vector<16x256xf32>
    %c1_i32 = arith.constant 1 : i32
    %141 = tpu.dynamic_rotate %112 by %c1_i32 dim 1 : vector<32x256xf32>, i32 -> vector<32x256xf32>
    %cst_69 = arith.constant 0.000000e+00 : f32
    %142 = vector.shape_cast %67 : vector<1x256xi1> to vector<1x256xi1>
    %143 = vector.broadcast %142 : vector<1x256xi1> to vector<32x256xi1>
    %144 = vector.broadcast %cst_69 : f32 to vector<32x256xf32>
    %145 = arith.select %143, %141, %144 : vector<32x256xi1>, vector<32x256xf32>
    %c3 = arith.constant 3 : index
    %c0_70 = arith.constant 0 : index
    %c0_71 = arith.constant 0 : index
    %146 = vector.load %arg5[%c3, %c0_70, %c0_71] : memref<9x16x32xf32, #tpu.memory_space<vmem>>, vector<1x16x32xf32>
    %147 = vector.shape_cast %146 : vector<1x16x32xf32> to vector<16x32xf32>
    %cst_72 = arith.constant dense<0.000000e+00> : vector<16x256xf32>
    %148 = tpu.matmul %147, %145, %cst_72 {dimension_numbers = #tpu.dot_dimension_numbers<[1], [0], [0], [1], [0, 0, 1, 1], [], []>} : vector<16x32xf32>, vector<32x256xf32>, vector<16x256xf32> -> vector<16x256xf32>
    %149 = arith.addf %140, %148 : vector<16x256xf32>
    %c4 = arith.constant 4 : index
    %c0_73 = arith.constant 0 : index
    %c0_74 = arith.constant 0 : index
    %150 = vector.load %arg5[%c4, %c0_73, %c0_74] : memref<9x16x32xf32, #tpu.memory_space<vmem>>, vector<1x16x32xf32>
    %151 = vector.shape_cast %150 : vector<1x16x32xf32> to vector<16x32xf32>
    %cst_75 = arith.constant dense<0.000000e+00> : vector<16x256xf32>
    %152 = tpu.matmul %151, %112, %cst_75 {dimension_numbers = #tpu.dot_dimension_numbers<[1], [0], [0], [1], [0, 0, 1, 1], [], []>} : vector<16x32xf32>, vector<32x256xf32>, vector<16x256xf32> -> vector<16x256xf32>
    %153 = arith.addf %149, %152 : vector<16x256xf32>
    %c255_i32 = arith.constant 255 : i32
    %154 = tpu.dynamic_rotate %112 by %c255_i32 dim 1 : vector<32x256xf32>, i32 -> vector<32x256xf32>
    %cst_76 = arith.constant 0.000000e+00 : f32
    %155 = vector.shape_cast %78 : vector<1x256xi1> to vector<1x256xi1>
    %156 = vector.broadcast %155 : vector<1x256xi1> to vector<32x256xi1>
    %157 = vector.broadcast %cst_76 : f32 to vector<32x256xf32>
    %158 = arith.select %156, %154, %157 : vector<32x256xi1>, vector<32x256xf32>
    %c5 = arith.constant 5 : index
    %c0_77 = arith.constant 0 : index
    %c0_78 = arith.constant 0 : index
    %159 = vector.load %arg5[%c5, %c0_77, %c0_78] : memref<9x16x32xf32, #tpu.memory_space<vmem>>, vector<1x16x32xf32>
    %160 = vector.shape_cast %159 : vector<1x16x32xf32> to vector<16x32xf32>
    %cst_79 = arith.constant dense<0.000000e+00> : vector<16x256xf32>
    %161 = tpu.matmul %160, %158, %cst_79 {dimension_numbers = #tpu.dot_dimension_numbers<[1], [0], [0], [1], [0, 0, 1, 1], [], []>} : vector<16x32xf32>, vector<32x256xf32>, vector<16x256xf32> -> vector<16x256xf32>
    %162 = arith.addf %153, %161 : vector<16x256xf32>
    %c241_i32 = arith.constant 241 : i32
    %163 = tpu.dynamic_rotate %112 by %c241_i32 dim 1 : vector<32x256xf32>, i32 -> vector<32x256xf32>
    %cst_80 = arith.constant 0.000000e+00 : f32
    %164 = vector.shape_cast %89 : vector<1x256xi1> to vector<1x256xi1>
    %165 = vector.broadcast %164 : vector<1x256xi1> to vector<32x256xi1>
    %166 = vector.broadcast %cst_80 : f32 to vector<32x256xf32>
    %167 = arith.select %165, %163, %166 : vector<32x256xi1>, vector<32x256xf32>
    %c6 = arith.constant 6 : index
    %c0_81 = arith.constant 0 : index
    %c0_82 = arith.constant 0 : index
    %168 = vector.load %arg5[%c6, %c0_81, %c0_82] : memref<9x16x32xf32, #tpu.memory_space<vmem>>, vector<1x16x32xf32>
    %169 = vector.shape_cast %168 : vector<1x16x32xf32> to vector<16x32xf32>
    %cst_83 = arith.constant dense<0.000000e+00> : vector<16x256xf32>
    %170 = tpu.matmul %169, %167, %cst_83 {dimension_numbers = #tpu.dot_dimension_numbers<[1], [0], [0], [1], [0, 0, 1, 1], [], []>} : vector<16x32xf32>, vector<32x256xf32>, vector<16x256xf32> -> vector<16x256xf32>
    %171 = arith.addf %162, %170 : vector<16x256xf32>
    %c240_i32 = arith.constant 240 : i32
    %172 = tpu.dynamic_rotate %112 by %c240_i32 dim 1 : vector<32x256xf32>, i32 -> vector<32x256xf32>
    %cst_84 = arith.constant 0.000000e+00 : f32
    %173 = vector.shape_cast %100 : vector<1x256xi1> to vector<1x256xi1>
    %174 = vector.broadcast %173 : vector<1x256xi1> to vector<32x256xi1>
    %175 = vector.broadcast %cst_84 : f32 to vector<32x256xf32>
    %176 = arith.select %174, %172, %175 : vector<32x256xi1>, vector<32x256xf32>
    %c7 = arith.constant 7 : index
    %c0_85 = arith.constant 0 : index
    %c0_86 = arith.constant 0 : index
    %177 = vector.load %arg5[%c7, %c0_85, %c0_86] : memref<9x16x32xf32, #tpu.memory_space<vmem>>, vector<1x16x32xf32>
    %178 = vector.shape_cast %177 : vector<1x16x32xf32> to vector<16x32xf32>
    %cst_87 = arith.constant dense<0.000000e+00> : vector<16x256xf32>
    %179 = tpu.matmul %178, %176, %cst_87 {dimension_numbers = #tpu.dot_dimension_numbers<[1], [0], [0], [1], [0, 0, 1, 1], [], []>} : vector<16x32xf32>, vector<32x256xf32>, vector<16x256xf32> -> vector<16x256xf32>
    %180 = arith.addf %171, %179 : vector<16x256xf32>
    %c239_i32 = arith.constant 239 : i32
    %181 = tpu.dynamic_rotate %112 by %c239_i32 dim 1 : vector<32x256xf32>, i32 -> vector<32x256xf32>
    %cst_88 = arith.constant 0.000000e+00 : f32
    %182 = vector.shape_cast %111 : vector<1x256xi1> to vector<1x256xi1>
    %183 = vector.broadcast %182 : vector<1x256xi1> to vector<32x256xi1>
    %184 = vector.broadcast %cst_88 : f32 to vector<32x256xf32>
    %185 = arith.select %183, %181, %184 : vector<32x256xi1>, vector<32x256xf32>
    %c8_89 = arith.constant 8 : index
    %c0_90 = arith.constant 0 : index
    %c0_91 = arith.constant 0 : index
    %186 = vector.load %arg5[%c8_89, %c0_90, %c0_91] : memref<9x16x32xf32, #tpu.memory_space<vmem>>, vector<1x16x32xf32>
    %187 = vector.shape_cast %186 : vector<1x16x32xf32> to vector<16x32xf32>
    %cst_92 = arith.constant dense<0.000000e+00> : vector<16x256xf32>
    %188 = tpu.matmul %187, %185, %cst_92 {dimension_numbers = #tpu.dot_dimension_numbers<[1], [0], [0], [1], [0, 0, 1, 1], [], []>} : vector<16x32xf32>, vector<32x256xf32>, vector<16x256xf32> -> vector<16x256xf32>
    %189 = arith.addf %180, %188 : vector<16x256xf32>
    %cst_93 = arith.constant dense<0.000000e+00> : vector<16xf32>
    %190 = vector.multi_reduction <add>, %189, %cst_93 [1] : vector<16x256xf32> to vector<16xf32>
    %191 = vector.shape_cast %190 : vector<16xf32> to vector<16x1xf32>
    %192 = arith.mulf %189, %189 : vector<16x256xf32>
    %cst_94 = arith.constant dense<0.000000e+00> : vector<16xf32>
    %193 = vector.multi_reduction <add>, %192, %cst_94 [1] : vector<16x256xf32> to vector<16xf32>
    %194 = vector.shape_cast %193 : vector<16xf32> to vector<16x1xf32>
    %cst_95 = arith.constant 3.906250e-03 : f32
    %195 = vector.broadcast %cst_95 : f32 to vector<16x1xf32>
    %196 = arith.mulf %191, %195 : vector<16x1xf32>
    %cst_96 = arith.constant 3.906250e-03 : f32
    %197 = vector.broadcast %cst_96 : f32 to vector<16x1xf32>
    %198 = arith.mulf %194, %197 : vector<16x1xf32>
    %199 = arith.mulf %196, %196 : vector<16x1xf32>
    %200 = arith.subf %198, %199 : vector<16x1xf32>
    %cst_97 = arith.constant 0.000000e+00 : f32
    %201 = vector.broadcast %cst_97 : f32 to vector<16x1xf32>
    %202 = arith.maximumf %200, %201 : vector<16x1xf32>
    %203 = vector.broadcast %196 : vector<16x1xf32> to vector<16x256xf32>
    %204 = arith.subf %189, %203 : vector<16x256xf32>
    %cst_98 = arith.constant 9.99999974E-6 : f32
    %205 = vector.broadcast %cst_98 : f32 to vector<16x1xf32>
    %206 = arith.addf %202, %205 : vector<16x1xf32>
    %207 = math.rsqrt %206 : vector<16x1xf32>
    %208 = vector.broadcast %207 : vector<16x1xf32> to vector<16x256xf32>
    %209 = arith.mulf %204, %208 : vector<16x256xf32>
    %cst_99 = arith.constant 0.000000e+00 : f32
    %210 = vector.broadcast %cst_99 : f32 to vector<16x256xf32>
    %211 = arith.maximumf %209, %210 : vector<16x256xf32>
    %cst_100 = arith.constant 0.000000e+00 : f32
    %212 = vector.broadcast %cst_100 : f32 to vector<16x256xf32>
    %c17_i32_101 = arith.constant 17 : i32
    %213 = tpu.dynamic_rotate %211 by %c17_i32_101 dim 1 : vector<16x256xf32>, i32 -> vector<16x256xf32>
    %cst_102 = arith.constant 0.000000e+00 : f32
    %214 = vector.shape_cast %34 : vector<1x256xi1> to vector<1x256xi1>
    %215 = vector.broadcast %214 : vector<1x256xi1> to vector<16x256xi1>
    %216 = vector.broadcast %cst_102 : f32 to vector<16x256xf32>
    %217 = arith.select %215, %213, %216 : vector<16x256xi1>, vector<16x256xf32>
    %c0_103 = arith.constant 0 : index
    %c0_104 = arith.constant 0 : index
    %c0_105 = arith.constant 0 : index
    %218 = vector.load %arg6[%c0_103, %c0_104, %c0_105] : memref<9x16x16xf32, #tpu.memory_space<vmem>>, vector<1x16x16xf32>
    %219 = vector.shape_cast %218 : vector<1x16x16xf32> to vector<16x16xf32>
    %cst_106 = arith.constant dense<0.000000e+00> : vector<16x256xf32>
    %220 = tpu.matmul %219, %217, %cst_106 {dimension_numbers = #tpu.dot_dimension_numbers<[1], [0], [0], [1], [0, 0, 1, 1], [], []>} : vector<16x16xf32>, vector<16x256xf32>, vector<16x256xf32> -> vector<16x256xf32>
    %221 = arith.addf %212, %220 : vector<16x256xf32>
    %c16_i32_107 = arith.constant 16 : i32
    %222 = tpu.dynamic_rotate %211 by %c16_i32_107 dim 1 : vector<16x256xf32>, i32 -> vector<16x256xf32>
    %cst_108 = arith.constant 0.000000e+00 : f32
    %223 = vector.shape_cast %45 : vector<1x256xi1> to vector<1x256xi1>
    %224 = vector.broadcast %223 : vector<1x256xi1> to vector<16x256xi1>
    %225 = vector.broadcast %cst_108 : f32 to vector<16x256xf32>
    %226 = arith.select %224, %222, %225 : vector<16x256xi1>, vector<16x256xf32>
    %c1_109 = arith.constant 1 : index
    %c0_110 = arith.constant 0 : index
    %c0_111 = arith.constant 0 : index
    %227 = vector.load %arg6[%c1_109, %c0_110, %c0_111] : memref<9x16x16xf32, #tpu.memory_space<vmem>>, vector<1x16x16xf32>
    %228 = vector.shape_cast %227 : vector<1x16x16xf32> to vector<16x16xf32>
    %cst_112 = arith.constant dense<0.000000e+00> : vector<16x256xf32>
    %229 = tpu.matmul %228, %226, %cst_112 {dimension_numbers = #tpu.dot_dimension_numbers<[1], [0], [0], [1], [0, 0, 1, 1], [], []>} : vector<16x16xf32>, vector<16x256xf32>, vector<16x256xf32> -> vector<16x256xf32>
    %230 = arith.addf %221, %229 : vector<16x256xf32>
    %c15_i32_113 = arith.constant 15 : i32
    %231 = tpu.dynamic_rotate %211 by %c15_i32_113 dim 1 : vector<16x256xf32>, i32 -> vector<16x256xf32>
    %cst_114 = arith.constant 0.000000e+00 : f32
    %232 = vector.shape_cast %56 : vector<1x256xi1> to vector<1x256xi1>
    %233 = vector.broadcast %232 : vector<1x256xi1> to vector<16x256xi1>
    %234 = vector.broadcast %cst_114 : f32 to vector<16x256xf32>
    %235 = arith.select %233, %231, %234 : vector<16x256xi1>, vector<16x256xf32>
    %c2_115 = arith.constant 2 : index
    %c0_116 = arith.constant 0 : index
    %c0_117 = arith.constant 0 : index
    %236 = vector.load %arg6[%c2_115, %c0_116, %c0_117] : memref<9x16x16xf32, #tpu.memory_space<vmem>>, vector<1x16x16xf32>
    %237 = vector.shape_cast %236 : vector<1x16x16xf32> to vector<16x16xf32>
    %cst_118 = arith.constant dense<0.000000e+00> : vector<16x256xf32>
    %238 = tpu.matmul %237, %235, %cst_118 {dimension_numbers = #tpu.dot_dimension_numbers<[1], [0], [0], [1], [0, 0, 1, 1], [], []>} : vector<16x16xf32>, vector<16x256xf32>, vector<16x256xf32> -> vector<16x256xf32>
    %239 = arith.addf %230, %238 : vector<16x256xf32>
    %c1_i32_119 = arith.constant 1 : i32
    %240 = tpu.dynamic_rotate %211 by %c1_i32_119 dim 1 : vector<16x256xf32>, i32 -> vector<16x256xf32>
    %cst_120 = arith.constant 0.000000e+00 : f32
    %241 = vector.shape_cast %67 : vector<1x256xi1> to vector<1x256xi1>
    %242 = vector.broadcast %241 : vector<1x256xi1> to vector<16x256xi1>
    %243 = vector.broadcast %cst_120 : f32 to vector<16x256xf32>
    %244 = arith.select %242, %240, %243 : vector<16x256xi1>, vector<16x256xf32>
    %c3_121 = arith.constant 3 : index
    %c0_122 = arith.constant 0 : index
    %c0_123 = arith.constant 0 : index
    %245 = vector.load %arg6[%c3_121, %c0_122, %c0_123] : memref<9x16x16xf32, #tpu.memory_space<vmem>>, vector<1x16x16xf32>
    %246 = vector.shape_cast %245 : vector<1x16x16xf32> to vector<16x16xf32>
    %cst_124 = arith.constant dense<0.000000e+00> : vector<16x256xf32>
    %247 = tpu.matmul %246, %244, %cst_124 {dimension_numbers = #tpu.dot_dimension_numbers<[1], [0], [0], [1], [0, 0, 1, 1], [], []>} : vector<16x16xf32>, vector<16x256xf32>, vector<16x256xf32> -> vector<16x256xf32>
    %248 = arith.addf %239, %247 : vector<16x256xf32>
    %c4_125 = arith.constant 4 : index
    %c0_126 = arith.constant 0 : index
    %c0_127 = arith.constant 0 : index
    %249 = vector.load %arg6[%c4_125, %c0_126, %c0_127] : memref<9x16x16xf32, #tpu.memory_space<vmem>>, vector<1x16x16xf32>
    %250 = vector.shape_cast %249 : vector<1x16x16xf32> to vector<16x16xf32>
    %cst_128 = arith.constant dense<0.000000e+00> : vector<16x256xf32>
    %251 = tpu.matmul %250, %211, %cst_128 {dimension_numbers = #tpu.dot_dimension_numbers<[1], [0], [0], [1], [0, 0, 1, 1], [], []>} : vector<16x16xf32>, vector<16x256xf32>, vector<16x256xf32> -> vector<16x256xf32>
    %252 = arith.addf %248, %251 : vector<16x256xf32>
    %c255_i32_129 = arith.constant 255 : i32
    %253 = tpu.dynamic_rotate %211 by %c255_i32_129 dim 1 : vector<16x256xf32>, i32 -> vector<16x256xf32>
    %cst_130 = arith.constant 0.000000e+00 : f32
    %254 = vector.shape_cast %78 : vector<1x256xi1> to vector<1x256xi1>
    %255 = vector.broadcast %254 : vector<1x256xi1> to vector<16x256xi1>
    %256 = vector.broadcast %cst_130 : f32 to vector<16x256xf32>
    %257 = arith.select %255, %253, %256 : vector<16x256xi1>, vector<16x256xf32>
    %c5_131 = arith.constant 5 : index
    %c0_132 = arith.constant 0 : index
    %c0_133 = arith.constant 0 : index
    %258 = vector.load %arg6[%c5_131, %c0_132, %c0_133] : memref<9x16x16xf32, #tpu.memory_space<vmem>>, vector<1x16x16xf32>
    %259 = vector.shape_cast %258 : vector<1x16x16xf32> to vector<16x16xf32>
    %cst_134 = arith.constant dense<0.000000e+00> : vector<16x256xf32>
    %260 = tpu.matmul %259, %257, %cst_134 {dimension_numbers = #tpu.dot_dimension_numbers<[1], [0], [0], [1], [0, 0, 1, 1], [], []>} : vector<16x16xf32>, vector<16x256xf32>, vector<16x256xf32> -> vector<16x256xf32>
    %261 = arith.addf %252, %260 : vector<16x256xf32>
    %c241_i32_135 = arith.constant 241 : i32
    %262 = tpu.dynamic_rotate %211 by %c241_i32_135 dim 1 : vector<16x256xf32>, i32 -> vector<16x256xf32>
    %cst_136 = arith.constant 0.000000e+00 : f32
    %263 = vector.shape_cast %89 : vector<1x256xi1> to vector<1x256xi1>
    %264 = vector.broadcast %263 : vector<1x256xi1> to vector<16x256xi1>
    %265 = vector.broadcast %cst_136 : f32 to vector<16x256xf32>
    %266 = arith.select %264, %262, %265 : vector<16x256xi1>, vector<16x256xf32>
    %c6_137 = arith.constant 6 : index
    %c0_138 = arith.constant 0 : index
    %c0_139 = arith.constant 0 : index
    %267 = vector.load %arg6[%c6_137, %c0_138, %c0_139] : memref<9x16x16xf32, #tpu.memory_space<vmem>>, vector<1x16x16xf32>
    %268 = vector.shape_cast %267 : vector<1x16x16xf32> to vector<16x16xf32>
    %cst_140 = arith.constant dense<0.000000e+00> : vector<16x256xf32>
    %269 = tpu.matmul %268, %266, %cst_140 {dimension_numbers = #tpu.dot_dimension_numbers<[1], [0], [0], [1], [0, 0, 1, 1], [], []>} : vector<16x16xf32>, vector<16x256xf32>, vector<16x256xf32> -> vector<16x256xf32>
    %270 = arith.addf %261, %269 : vector<16x256xf32>
    %c240_i32_141 = arith.constant 240 : i32
    %271 = tpu.dynamic_rotate %211 by %c240_i32_141 dim 1 : vector<16x256xf32>, i32 -> vector<16x256xf32>
    %cst_142 = arith.constant 0.000000e+00 : f32
    %272 = vector.shape_cast %100 : vector<1x256xi1> to vector<1x256xi1>
    %273 = vector.broadcast %272 : vector<1x256xi1> to vector<16x256xi1>
    %274 = vector.broadcast %cst_142 : f32 to vector<16x256xf32>
    %275 = arith.select %273, %271, %274 : vector<16x256xi1>, vector<16x256xf32>
    %c7_143 = arith.constant 7 : index
    %c0_144 = arith.constant 0 : index
    %c0_145 = arith.constant 0 : index
    %276 = vector.load %arg6[%c7_143, %c0_144, %c0_145] : memref<9x16x16xf32, #tpu.memory_space<vmem>>, vector<1x16x16xf32>
    %277 = vector.shape_cast %276 : vector<1x16x16xf32> to vector<16x16xf32>
    %cst_146 = arith.constant dense<0.000000e+00> : vector<16x256xf32>
    %278 = tpu.matmul %277, %275, %cst_146 {dimension_numbers = #tpu.dot_dimension_numbers<[1], [0], [0], [1], [0, 0, 1, 1], [], []>} : vector<16x16xf32>, vector<16x256xf32>, vector<16x256xf32> -> vector<16x256xf32>
    %279 = arith.addf %270, %278 : vector<16x256xf32>
    %c239_i32_147 = arith.constant 239 : i32
    %280 = tpu.dynamic_rotate %211 by %c239_i32_147 dim 1 : vector<16x256xf32>, i32 -> vector<16x256xf32>
    %cst_148 = arith.constant 0.000000e+00 : f32
    %281 = vector.shape_cast %111 : vector<1x256xi1> to vector<1x256xi1>
    %282 = vector.broadcast %281 : vector<1x256xi1> to vector<16x256xi1>
    %283 = vector.broadcast %cst_148 : f32 to vector<16x256xf32>
    %284 = arith.select %282, %280, %283 : vector<16x256xi1>, vector<16x256xf32>
    %c8_149 = arith.constant 8 : index
    %c0_150 = arith.constant 0 : index
    %c0_151 = arith.constant 0 : index
    %285 = vector.load %arg6[%c8_149, %c0_150, %c0_151] : memref<9x16x16xf32, #tpu.memory_space<vmem>>, vector<1x16x16xf32>
    %286 = vector.shape_cast %285 : vector<1x16x16xf32> to vector<16x16xf32>
    %cst_152 = arith.constant dense<0.000000e+00> : vector<16x256xf32>
    %287 = tpu.matmul %286, %284, %cst_152 {dimension_numbers = #tpu.dot_dimension_numbers<[1], [0], [0], [1], [0, 0, 1, 1], [], []>} : vector<16x16xf32>, vector<16x256xf32>, vector<16x256xf32> -> vector<16x256xf32>
    %288 = arith.addf %279, %287 : vector<16x256xf32>
    %cst_153 = arith.constant dense<0.000000e+00> : vector<16xf32>
    %289 = vector.multi_reduction <add>, %288, %cst_153 [1] : vector<16x256xf32> to vector<16xf32>
    %290 = vector.shape_cast %289 : vector<16xf32> to vector<16x1xf32>
    %291 = arith.mulf %288, %288 : vector<16x256xf32>
    %cst_154 = arith.constant dense<0.000000e+00> : vector<16xf32>
    %292 = vector.multi_reduction <add>, %291, %cst_154 [1] : vector<16x256xf32> to vector<16xf32>
    %293 = vector.shape_cast %292 : vector<16xf32> to vector<16x1xf32>
    %cst_155 = arith.constant 3.906250e-03 : f32
    %294 = vector.broadcast %cst_155 : f32 to vector<16x1xf32>
    %295 = arith.mulf %290, %294 : vector<16x1xf32>
    %cst_156 = arith.constant 3.906250e-03 : f32
    %296 = vector.broadcast %cst_156 : f32 to vector<16x1xf32>
    %297 = arith.mulf %293, %296 : vector<16x1xf32>
    %298 = arith.mulf %295, %295 : vector<16x1xf32>
    %299 = arith.subf %297, %298 : vector<16x1xf32>
    %cst_157 = arith.constant 0.000000e+00 : f32
    %300 = vector.broadcast %cst_157 : f32 to vector<16x1xf32>
    %301 = arith.maximumf %299, %300 : vector<16x1xf32>
    %302 = vector.broadcast %295 : vector<16x1xf32> to vector<16x256xf32>
    %303 = arith.subf %288, %302 : vector<16x256xf32>
    %cst_158 = arith.constant 9.99999974E-6 : f32
    %304 = vector.broadcast %cst_158 : f32 to vector<16x1xf32>
    %305 = arith.addf %301, %304 : vector<16x1xf32>
    %306 = math.rsqrt %305 : vector<16x1xf32>
    %307 = vector.broadcast %306 : vector<16x1xf32> to vector<16x256xf32>
    %308 = arith.mulf %303, %307 : vector<16x256xf32>
    %cst_159 = arith.constant 0.000000e+00 : f32
    %309 = vector.broadcast %cst_159 : f32 to vector<16x256xf32>
    %310 = arith.maximumf %308, %309 : vector<16x256xf32>
    %cst_160 = arith.constant 0.000000e+00 : f32
    %311 = vector.broadcast %cst_160 : f32 to vector<8x256xf32>
    %c17_i32_161 = arith.constant 17 : i32
    %312 = tpu.dynamic_rotate %310 by %c17_i32_161 dim 1 : vector<16x256xf32>, i32 -> vector<16x256xf32>
    %cst_162 = arith.constant 0.000000e+00 : f32
    %313 = vector.shape_cast %34 : vector<1x256xi1> to vector<1x256xi1>
    %314 = vector.broadcast %313 : vector<1x256xi1> to vector<16x256xi1>
    %315 = vector.broadcast %cst_162 : f32 to vector<16x256xf32>
    %316 = arith.select %314, %312, %315 : vector<16x256xi1>, vector<16x256xf32>
    %c0_163 = arith.constant 0 : index
    %c0_164 = arith.constant 0 : index
    %c0_165 = arith.constant 0 : index
    %317 = vector.load %arg7[%c0_163, %c0_164, %c0_165] : memref<9x8x16xf32, #tpu.memory_space<vmem>>, vector<1x8x16xf32>
    %318 = vector.shape_cast %317 : vector<1x8x16xf32> to vector<8x16xf32>
    %cst_166 = arith.constant dense<0.000000e+00> : vector<8x256xf32>
    %319 = tpu.matmul %318, %316, %cst_166 {dimension_numbers = #tpu.dot_dimension_numbers<[1], [0], [0], [1], [0, 0, 1, 1], [], []>} : vector<8x16xf32>, vector<16x256xf32>, vector<8x256xf32> -> vector<8x256xf32>
    %320 = arith.addf %311, %319 : vector<8x256xf32>
    %c16_i32_167 = arith.constant 16 : i32
    %321 = tpu.dynamic_rotate %310 by %c16_i32_167 dim 1 : vector<16x256xf32>, i32 -> vector<16x256xf32>
    %cst_168 = arith.constant 0.000000e+00 : f32
    %322 = vector.shape_cast %45 : vector<1x256xi1> to vector<1x256xi1>
    %323 = vector.broadcast %322 : vector<1x256xi1> to vector<16x256xi1>
    %324 = vector.broadcast %cst_168 : f32 to vector<16x256xf32>
    %325 = arith.select %323, %321, %324 : vector<16x256xi1>, vector<16x256xf32>
    %c1_169 = arith.constant 1 : index
    %c0_170 = arith.constant 0 : index
    %c0_171 = arith.constant 0 : index
    %326 = vector.load %arg7[%c1_169, %c0_170, %c0_171] : memref<9x8x16xf32, #tpu.memory_space<vmem>>, vector<1x8x16xf32>
    %327 = vector.shape_cast %326 : vector<1x8x16xf32> to vector<8x16xf32>
    %cst_172 = arith.constant dense<0.000000e+00> : vector<8x256xf32>
    %328 = tpu.matmul %327, %325, %cst_172 {dimension_numbers = #tpu.dot_dimension_numbers<[1], [0], [0], [1], [0, 0, 1, 1], [], []>} : vector<8x16xf32>, vector<16x256xf32>, vector<8x256xf32> -> vector<8x256xf32>
    %329 = arith.addf %320, %328 : vector<8x256xf32>
    %c15_i32_173 = arith.constant 15 : i32
    %330 = tpu.dynamic_rotate %310 by %c15_i32_173 dim 1 : vector<16x256xf32>, i32 -> vector<16x256xf32>
    %cst_174 = arith.constant 0.000000e+00 : f32
    %331 = vector.shape_cast %56 : vector<1x256xi1> to vector<1x256xi1>
    %332 = vector.broadcast %331 : vector<1x256xi1> to vector<16x256xi1>
    %333 = vector.broadcast %cst_174 : f32 to vector<16x256xf32>
    %334 = arith.select %332, %330, %333 : vector<16x256xi1>, vector<16x256xf32>
    %c2_175 = arith.constant 2 : index
    %c0_176 = arith.constant 0 : index
    %c0_177 = arith.constant 0 : index
    %335 = vector.load %arg7[%c2_175, %c0_176, %c0_177] : memref<9x8x16xf32, #tpu.memory_space<vmem>>, vector<1x8x16xf32>
    %336 = vector.shape_cast %335 : vector<1x8x16xf32> to vector<8x16xf32>
    %cst_178 = arith.constant dense<0.000000e+00> : vector<8x256xf32>
    %337 = tpu.matmul %336, %334, %cst_178 {dimension_numbers = #tpu.dot_dimension_numbers<[1], [0], [0], [1], [0, 0, 1, 1], [], []>} : vector<8x16xf32>, vector<16x256xf32>, vector<8x256xf32> -> vector<8x256xf32>
    %338 = arith.addf %329, %337 : vector<8x256xf32>
    %c1_i32_179 = arith.constant 1 : i32
    %339 = tpu.dynamic_rotate %310 by %c1_i32_179 dim 1 : vector<16x256xf32>, i32 -> vector<16x256xf32>
    %cst_180 = arith.constant 0.000000e+00 : f32
    %340 = vector.shape_cast %67 : vector<1x256xi1> to vector<1x256xi1>
    %341 = vector.broadcast %340 : vector<1x256xi1> to vector<16x256xi1>
    %342 = vector.broadcast %cst_180 : f32 to vector<16x256xf32>
    %343 = arith.select %341, %339, %342 : vector<16x256xi1>, vector<16x256xf32>
    %c3_181 = arith.constant 3 : index
    %c0_182 = arith.constant 0 : index
    %c0_183 = arith.constant 0 : index
    %344 = vector.load %arg7[%c3_181, %c0_182, %c0_183] : memref<9x8x16xf32, #tpu.memory_space<vmem>>, vector<1x8x16xf32>
    %345 = vector.shape_cast %344 : vector<1x8x16xf32> to vector<8x16xf32>
    %cst_184 = arith.constant dense<0.000000e+00> : vector<8x256xf32>
    %346 = tpu.matmul %345, %343, %cst_184 {dimension_numbers = #tpu.dot_dimension_numbers<[1], [0], [0], [1], [0, 0, 1, 1], [], []>} : vector<8x16xf32>, vector<16x256xf32>, vector<8x256xf32> -> vector<8x256xf32>
    %347 = arith.addf %338, %346 : vector<8x256xf32>
    %c4_185 = arith.constant 4 : index
    %c0_186 = arith.constant 0 : index
    %c0_187 = arith.constant 0 : index
    %348 = vector.load %arg7[%c4_185, %c0_186, %c0_187] : memref<9x8x16xf32, #tpu.memory_space<vmem>>, vector<1x8x16xf32>
    %349 = vector.shape_cast %348 : vector<1x8x16xf32> to vector<8x16xf32>
    %cst_188 = arith.constant dense<0.000000e+00> : vector<8x256xf32>
    %350 = tpu.matmul %349, %310, %cst_188 {dimension_numbers = #tpu.dot_dimension_numbers<[1], [0], [0], [1], [0, 0, 1, 1], [], []>} : vector<8x16xf32>, vector<16x256xf32>, vector<8x256xf32> -> vector<8x256xf32>
    %351 = arith.addf %347, %350 : vector<8x256xf32>
    %c255_i32_189 = arith.constant 255 : i32
    %352 = tpu.dynamic_rotate %310 by %c255_i32_189 dim 1 : vector<16x256xf32>, i32 -> vector<16x256xf32>
    %cst_190 = arith.constant 0.000000e+00 : f32
    %353 = vector.shape_cast %78 : vector<1x256xi1> to vector<1x256xi1>
    %354 = vector.broadcast %353 : vector<1x256xi1> to vector<16x256xi1>
    %355 = vector.broadcast %cst_190 : f32 to vector<16x256xf32>
    %356 = arith.select %354, %352, %355 : vector<16x256xi1>, vector<16x256xf32>
    %c5_191 = arith.constant 5 : index
    %c0_192 = arith.constant 0 : index
    %c0_193 = arith.constant 0 : index
    %357 = vector.load %arg7[%c5_191, %c0_192, %c0_193] : memref<9x8x16xf32, #tpu.memory_space<vmem>>, vector<1x8x16xf32>
    %358 = vector.shape_cast %357 : vector<1x8x16xf32> to vector<8x16xf32>
    %cst_194 = arith.constant dense<0.000000e+00> : vector<8x256xf32>
    %359 = tpu.matmul %358, %356, %cst_194 {dimension_numbers = #tpu.dot_dimension_numbers<[1], [0], [0], [1], [0, 0, 1, 1], [], []>} : vector<8x16xf32>, vector<16x256xf32>, vector<8x256xf32> -> vector<8x256xf32>
    %360 = arith.addf %351, %359 : vector<8x256xf32>
    %c241_i32_195 = arith.constant 241 : i32
    %361 = tpu.dynamic_rotate %310 by %c241_i32_195 dim 1 : vector<16x256xf32>, i32 -> vector<16x256xf32>
    %cst_196 = arith.constant 0.000000e+00 : f32
    %362 = vector.shape_cast %89 : vector<1x256xi1> to vector<1x256xi1>
    %363 = vector.broadcast %362 : vector<1x256xi1> to vector<16x256xi1>
    %364 = vector.broadcast %cst_196 : f32 to vector<16x256xf32>
    %365 = arith.select %363, %361, %364 : vector<16x256xi1>, vector<16x256xf32>
    %c6_197 = arith.constant 6 : index
    %c0_198 = arith.constant 0 : index
    %c0_199 = arith.constant 0 : index
    %366 = vector.load %arg7[%c6_197, %c0_198, %c0_199] : memref<9x8x16xf32, #tpu.memory_space<vmem>>, vector<1x8x16xf32>
    %367 = vector.shape_cast %366 : vector<1x8x16xf32> to vector<8x16xf32>
    %cst_200 = arith.constant dense<0.000000e+00> : vector<8x256xf32>
    %368 = tpu.matmul %367, %365, %cst_200 {dimension_numbers = #tpu.dot_dimension_numbers<[1], [0], [0], [1], [0, 0, 1, 1], [], []>} : vector<8x16xf32>, vector<16x256xf32>, vector<8x256xf32> -> vector<8x256xf32>
    %369 = arith.addf %360, %368 : vector<8x256xf32>
    %c240_i32_201 = arith.constant 240 : i32
    %370 = tpu.dynamic_rotate %310 by %c240_i32_201 dim 1 : vector<16x256xf32>, i32 -> vector<16x256xf32>
    %cst_202 = arith.constant 0.000000e+00 : f32
    %371 = vector.shape_cast %100 : vector<1x256xi1> to vector<1x256xi1>
    %372 = vector.broadcast %371 : vector<1x256xi1> to vector<16x256xi1>
    %373 = vector.broadcast %cst_202 : f32 to vector<16x256xf32>
    %374 = arith.select %372, %370, %373 : vector<16x256xi1>, vector<16x256xf32>
    %c7_203 = arith.constant 7 : index
    %c0_204 = arith.constant 0 : index
    %c0_205 = arith.constant 0 : index
    %375 = vector.load %arg7[%c7_203, %c0_204, %c0_205] : memref<9x8x16xf32, #tpu.memory_space<vmem>>, vector<1x8x16xf32>
    %376 = vector.shape_cast %375 : vector<1x8x16xf32> to vector<8x16xf32>
    %cst_206 = arith.constant dense<0.000000e+00> : vector<8x256xf32>
    %377 = tpu.matmul %376, %374, %cst_206 {dimension_numbers = #tpu.dot_dimension_numbers<[1], [0], [0], [1], [0, 0, 1, 1], [], []>} : vector<8x16xf32>, vector<16x256xf32>, vector<8x256xf32> -> vector<8x256xf32>
    %378 = arith.addf %369, %377 : vector<8x256xf32>
    %c239_i32_207 = arith.constant 239 : i32
    %379 = tpu.dynamic_rotate %310 by %c239_i32_207 dim 1 : vector<16x256xf32>, i32 -> vector<16x256xf32>
    %cst_208 = arith.constant 0.000000e+00 : f32
    %380 = vector.shape_cast %111 : vector<1x256xi1> to vector<1x256xi1>
    %381 = vector.broadcast %380 : vector<1x256xi1> to vector<16x256xi1>
    %382 = vector.broadcast %cst_208 : f32 to vector<16x256xf32>
    %383 = arith.select %381, %379, %382 : vector<16x256xi1>, vector<16x256xf32>
    %c8_209 = arith.constant 8 : index
    %c0_210 = arith.constant 0 : index
    %c0_211 = arith.constant 0 : index
    %384 = vector.load %arg7[%c8_209, %c0_210, %c0_211] : memref<9x8x16xf32, #tpu.memory_space<vmem>>, vector<1x8x16xf32>
    %385 = vector.shape_cast %384 : vector<1x8x16xf32> to vector<8x16xf32>
    %cst_212 = arith.constant dense<0.000000e+00> : vector<8x256xf32>
    %386 = tpu.matmul %385, %383, %cst_212 {dimension_numbers = #tpu.dot_dimension_numbers<[1], [0], [0], [1], [0, 0, 1, 1], [], []>} : vector<8x16xf32>, vector<16x256xf32>, vector<8x256xf32> -> vector<8x256xf32>
    %387 = arith.addf %378, %386 : vector<8x256xf32>
    %c0_213 = arith.constant 0 : index
    %c0_214 = arith.constant 0 : index
    %388 = vector.load %arg8[%c0_213, %c0_214] : memref<8x1xf32, #tpu.memory_space<vmem>>, vector<8x1xf32>
    %389 = vector.broadcast %388 : vector<8x1xf32> to vector<8x256xf32>
    %390 = arith.addf %387, %389 : vector<8x256xf32>
    %391 = math.tanh %390 : vector<8x256xf32>
    %c0_215 = arith.constant 0 : index
    %c0_216 = arith.constant 0 : index
    %392 = vector.load %arg10[%c0_215, %c0_216] : memref<32x256xf32, #tpu.memory_space<vmem>>, vector<8x256xf32>
    %393 = arith.addf %392, %391 : vector<8x256xf32>
    %cst_217 = arith.constant -1.000000e+00 : f32
    %cst_218 = arith.constant 1.000000e+00 : f32
    %394 = vector.broadcast %cst_217 : f32 to vector<8x256xf32>
    %395 = arith.maximumf %394, %393 : vector<8x256xf32>
    %396 = vector.broadcast %cst_218 : f32 to vector<8x256xf32>
    %397 = arith.minimumf %396, %395 : vector<8x256xf32>
    %c0_219 = arith.constant 0 : index
    %c0_220 = arith.constant 0 : index
    %c0_221 = arith.constant 0 : index
    %398 = vector.load %arg9[%c0_219, %c0_220, %c0_221] : memref<1x8x256xf32, #tpu.memory_space<vmem>>, vector<1x8x256xf32>
    %399 = vector.shape_cast %398 : vector<1x8x256xf32> to vector<8x256xf32>
    %400 = vector.shape_cast %397 : vector<8x256xf32> to vector<1x8x256xf32>
    tpu.vector_store %arg9[%c0_219, %c0_220, %c0_221], %400 {strides = array<i32>} : memref<1x8x256xf32, #tpu.memory_space<vmem>>, vector<1x8x256xf32>,
    return
  }
  func.func @transform_0(%arg0: i32) -> (i32, i32, i32) {
    %c0_i32 = arith.constant 0 : i32
    %c0_i32_0 = arith.constant 0 : i32
    %c0_i32_1 = arith.constant 0 : i32
    return %arg0, %c0_i32, %c0_i32_0 : i32, i32, i32
  }
  func.func @transform_1(%arg0: i32) -> (i32, i32, i32) {
    %c0_i32 = arith.constant 0 : i32
    %c0_i32_0 = arith.constant 0 : i32
    %c0_i32_1 = arith.constant 0 : i32
    return %arg0, %c0_i32, %c0_i32_0 : i32, i32, i32
  }
  func.func @transform_2(%arg0: i32) -> (i32, i32, i32) {
    %c0_i32 = arith.constant 0 : i32
    %c0_i32_0 = arith.constant 0 : i32
    %c0_i32_1 = arith.constant 0 : i32
    return %arg0, %c0_i32, %c0_i32_0 : i32, i32, i32
  }
  func.func @transform_3(%arg0: i32) -> (i32, i32, i32) {
    %c0_i32 = arith.constant 0 : i32
    %c0_i32_0 = arith.constant 0 : i32
    %c0_i32_1 = arith.constant 0 : i32
    return %arg0, %c0_i32, %c0_i32_0 : i32, i32, i32
  }
  func.func @transform_4(%arg0: i32) -> (i32, i32, i32) {
    %c0_i32 = arith.constant 0 : i32
    %c0_i32_0 = arith.constant 0 : i32
    %c0_i32_1 = arith.constant 0 : i32
    %c0_i32_2 = arith.constant 0 : i32
    return %c0_i32, %c0_i32_0, %c0_i32_1 : i32, i32, i32
  }
  func.func @transform_5(%arg0: i32) -> (i32, i32, i32) {
    %c0_i32 = arith.constant 0 : i32
    %c0_i32_0 = arith.constant 0 : i32
    %c0_i32_1 = arith.constant 0 : i32
    %c0_i32_2 = arith.constant 0 : i32
    return %c0_i32, %c0_i32_0, %c0_i32_1 : i32, i32, i32
  }
  func.func @transform_6(%arg0: i32) -> (i32, i32, i32) {
    %c0_i32 = arith.constant 0 : i32
    %c0_i32_0 = arith.constant 0 : i32
    %c0_i32_1 = arith.constant 0 : i32
    %c0_i32_2 = arith.constant 0 : i32
    return %c0_i32, %c0_i32_0, %c0_i32_1 : i32, i32, i32
  }
  func.func @transform_7(%arg0: i32) -> (i32, i32) {
    %c0_i32 = arith.constant 0 : i32
    %c0_i32_0 = arith.constant 0 : i32
    %c0_i32_1 = arith.constant 0 : i32
    return %c0_i32, %c0_i32_0 : i32, i32
  }
  func.func @transform_8(%arg0: i32) -> (i32, i32, i32) {
    %c0_i32 = arith.constant 0 : i32
    %c0_i32_0 = arith.constant 0 : i32
    %c0_i32_1 = arith.constant 0 : i32
    return %arg0, %c0_i32, %c0_i32_0 : i32, i32, i32
  }
}

</mosaic_0001>

<bundles_post_ra>
// kernel: conditional_gan_forward.1
= control target key start
LH: loop header
LB: loop body
LE: loop exit
PB: predicated region body
PF: predicated region fallthrough
CT: control target
= control target key end

     0   :  { %13 = vsyncpa [#allocation4], 0  ;;  %s4624_s0 = inlined_call_operand.vmem [shape: f32[2,3,256], index: 0, kind: input, shape index: {}]   ;;  %s4625_s1 = inlined_call_operand.vmem [shape: f32[2,3,256], index: 1, kind: input, shape index: {}]   ;;  %s4626_s2 = inlined_call_operand.vmem [shape: f32[2,3,256], index: 2, kind: input, shape index: {}]   ;;  %s4627_s3 = inlined_call_operand.vmem [shape: f32[2,3,256], index: 3, kind: input, shape index: {}]   ;;  %s4628_s4 = inlined_call_operand.vmem [shape: f32[9,16,32], index: 4, kind: input, shape index: {}]   ;;  %s4629_s5 = inlined_call_operand.hbm [shape: f32[9,16,16], index: 5, kind: input, shape index: {}]   ;;  %s4630_s6 = inlined_call_operand.hbm [shape: f32[9,8,16], index: 6, kind: input, shape index: {}]   ;;  %s4631_s7 = inlined_call_operand.vmem [shape: f32[8,1], index: 7, kind: input, shape index: {}]   ;;  %s4632_s8 = inlined_call_operand.vmem [shape: f32[2,8,256], index: 8, kind: output, shape index: {}]  }
   0x1   :  { %14 = vsyncpa [#allocation6], 0  ;;  %s3250_s27 = smov 0  }
   0x2 LB: > { %s253_s30 = sshll.u32 %s4629_s5, 4  ;;  %s2798_s9 = sadd.s32 4294967295, %s3189_s27   ;;  %s3189_s27 = sphi %s3250_s27, %s20_s27   ;;  %s254_s30 = int_to_ptr.hbm [resolvable:$true] %s253_s30 }
   0x3   : > { %p2800_p0 = scmp.ge.s32.totalorder %s3189_s27, 1  ;;  %p239_p1 = scmp.lt.s32.totalorder %s3189_s27, 3 }
   0x4   : > { %p3075_p2 = scmp.eq.s32.totalorder %s2798_s9, 0  ;;  %s3191_s11 = smov [#allocation3]  }
   0x5   : > { %p3261_p3 = pnand %p2800_p0, %p239_p1  ;;  %s255_s12 = sshll.u32 %s3191_s11, 4  ;;  %s256_s12 = int_to_ptr.vmem [resolvable:$true] %s255_s12 }
   0x6   : > { %s267_s15 = sshll.u32 %s4630_s6, 4  ;;  %s3192_s16 = smov [#allocation5]   ;;  %s268_s15 = int_to_ptr.hbm [resolvable:$true] %s267_s15 }
   0x7   : > { %p3068_p4 = pneg %p3261_p3  ;;  %s269_s17 = sshll.u32 %s3192_s16, 4  ;;  %s270_s17 = int_to_ptr.vmem [resolvable:$true] %s269_s17 }
   0x8   : > { %s3193_s18 = smov 128   ;;  %s3194_s19 = smov 8  }
   0x9   : > { %p3069_p5 = pnand %p3075_p2, %p3068_p4  ;;  %320 = sbr.rel (%p3261_p3) target bundleno = 1430 (0x596), region = 52 }
   0xb   : > { %3071 = dma.hbm_to_vmem [thread:$0]  (!%p3069_p5), %s254_s30, 2304, %s256_s12, [#allocation4], %s3193_s18, %s3193_s18, %s3194_s19  }
   0xc   : > { %3074 = dma.hbm_to_vmem [thread:$0]  (!%p3069_p5), %s268_s15, 1152, %s270_s17, [#allocation6], %s3193_s18, %s3193_s18, %s3194_s19  }
   0xe   : > { %3180 = dma.done.wait (%p3075_p2), [#allocation4], 2304  }
   0xf   : > { %3182 = vsyncadd (%p3075_p2), [#allocation4], 4294964992 }
  0x10   : > { %3184 = dma.done.wait (%p3075_p2), [#allocation6], 1152  }
  0x11   : > { %3186 = vsyncadd (%p3075_p2), [#allocation6], 4294966144  ;;  %p375_p6 = scmp.lt.s32.totalorder %s2798_s9, 1  ;;  %v3195_v0 = vmov 0.0   ;;  %s3196_s10 = smov 16   ;;  %v444_v25 = vlaneseq }
  0x12   : > { %401 = vst [vmem:[#allocation2] sm:$0xff] %v3195_v0  ;;  %s3197_s11 = smov 17   ;;  %s3198_s15 = smov 15  }
  0x13   : > { %s4884_s9 = smov (!%p375_p6, %s2798_s9), 1  ;;  %400 = vst [vmem:[#allocation2 + $0x30] sm:$0xff] %v3195_v0  ;;  %s3199_s16 = smov 1   ;;  %v3416_v28 = vand.u32 127, %v444_v25 }
  0x14   : > { %402 = vst [vmem:[#allocation2 + $0x18] sm:$0xff] %v3195_v0  ;;  %s3280_s20 = sshll.u32 %s4884_s9, 3  ;;  %s3200_s17 = smov 127  }
  0x15   : > { %403 = vst [vmem:[#allocation2 + $0x10] sm:$0xff] %v3195_v0  ;;  %s379_s23 = scalar_lea.vmem %s4624_s0, %s3280_s20  ;;  %s384_s26 = scalar_lea.vmem %s4625_s1, %s3280_s20  ;;  %v446_v29 = vadd.s32 128, %v3416_v28  ;;  %v447_v31 = vcvt.s32.f32 %v3416_v28  ;;  %vm4639_vm15 = vcmp.lt.s32.totalorder %v3416_v28, 16 }
  0x16   : > { %404 = vst [vmem:[#allocation2 + $0x8] sm:$0xff] %v3195_v0  ;;  %v408_v1 = vld [vmem:[%s379_s23] sm:$0x77]  ;;  %s389_s30 = scalar_lea.vmem %s4626_s2, %s3280_s20  ;;  %s394_s14 = scalar_lea.vmem %s4627_s3, %s3280_s20 }
  0x17   : > { %405 = vst [vmem:[#allocation2 + $0x20] sm:$0xff] %v3195_v0  ;;  %v417_v2 = vld [vmem:[%s384_s26] sm:$0x77]  ;;  %s3201_s18 = smov 113   ;;  %v448_v33 = vcvt.s32.f32 %v446_v29  ;;  %v449_v35 = vadd.f32 0.5, %v447_v31  ;;  %s3202_s19 = smov 112  }
  0x18   : > { %406 = vst [vmem:[#allocation2 + $0x28] sm:$0xff] %v3195_v0  ;;  %v426_v7 = vld [vmem:[%s389_s30] sm:$0x77]  ;;  %s3203_s20 = smov 111  }
  0x19   : > { %410 = vst [vmem:[#allocation1] ss:$2 sm:$0xff] %v408_v1  ;;  %v435_v11 = vld [vmem:[%s394_s14] sm:$0x77]  ;;  %v450_v36 = vadd.f32 0.5, %v448_v33  ;;  %v451_v38 = vmul.f32 0.0625, %v449_v35 }
  0x1a   : > { %407 = vst [vmem:[#allocation2 + $0x38] sm:$0xff] %v3195_v0  ;;  %v2153_v0 = vld [vmem:[#allocation5 + $0x8] sm:$0xff] }
  0x1b   : > { %v452_v39 = vmul.f32 0.0625, %v450_v36  ;;  %v3442_v42 = vfloor.f32 %v451_v38 }
  0x1d   : > { %v3444_v43 = vfloor.f32 %v452_v39  ;;  %v455_v45 = vmul.f32 16.0, %v3442_v42  ;;  %vm459_vm0 = vcmp.ge.f32.partialorder %v3442_v42, 1.0  ;;  %vm461_vm1 = vcmp.le.f32.partialorder %v3442_v42, 16.0  ;;  %v2818_v39 = vld [vmem:[%s4628_s4 + $0x18] sm:$0xff] }
  0x1e   : > { %vm3470_vm4 = vmand %vm459_vm0, %vm461_vm1 }
  0x1f   : > { %v456_v46 = vmul.f32 16.0, %v3444_v43  ;;  %v3458_v49 = vsub.f32 %v447_v31, %v455_v45  ;;  %vm460_vm2 = vcmp.ge.f32.partialorder %v3444_v43, 1.0  ;;  %vm462_vm3 = vcmp.le.f32.partialorder %v3444_v43, 16.0 }
  0x20   : > { %v412_v3 = vld.sshfl [vmem:[#allocation1 + $0x8] sm:$0xff pattern:$0x75316420]  ;;  %v411_v4 = vld.sshfl [vmem:[#allocation1] sm:$0xff pattern:$0x75316420]  ;;  %vm3475_vm6 = vmand %vm460_vm2, %vm462_vm3 }
  0x21   : > { %416 = vst [vmem:[#allocation2] sm:$0x7] %v412_v3  ;;  %v3462_v50 = vsub.f32 %v448_v33, %v456_v46  ;;  %vm4636_vm5 = vcmp.ge.f32.partialorder %v3458_v49, 0.0  ;;  %vm4634_vm9 = vcmp.le.f32.partialorder %v3458_v49, 15.0  ;;  %vm4647_vm12 = vcmp.ge.f32.partialorder %v3458_v49, 1.0 }
  0x22   : > { %415 = vst [vmem:[#allocation2 + $0x30] sm:$0x7] %v411_v4  ;;  %vm475_vm8 = vmand %vm3470_vm4, %vm4636_vm5  ;;  %vm4644_vm1 = vcmp.le.f32.partialorder %v3458_v49, 16.0  ;;  %vm4637_vm3 = vcmp.ge.f32.partialorder %v3458_v49, -1.0 }
  0x23   : > { %419 = vst [vmem:[#allocation1] ss:$2 sm:$0xff] %v417_v2  ;;  %vm4635_vm7 = vcmp.ge.f32.partialorder %v3462_v50, 0.0  ;;  %vm4633_vm11 = vcmp.le.f32.partialorder %v3462_v50, 15.0  ;;  %vm3501_vm13 = vmand %vm475_vm8, %vm4634_vm9  ;;  %vm4646_vm2 = vcmp.ge.f32.partialorder %v3462_v50, 1.0  ;;  %vm4640_vm5 = vcmp.le.f32.partialorder %v3462_v50, 14.0 }
  0x24   : > { %vm476_vm10 = vmand %vm3475_vm6, %vm4635_vm7  ;;  %vm4641_vm7 = vcmp.le.f32.partialorder %v3458_v49, 14.0 }
  0x25   : > { %vm3507_vm14 = vmand %vm476_vm10, %vm4633_vm11  ;;  %vm4638_vm10 = vcmp.ge.f32.partialorder %v3462_v50, -1.0 }
  0x26   : > { %vm467_vm0 = vmand %vm3470_vm4, %vm4647_vm12 }
  0x27   : > { %vm3537_vm8 = vmand %vm467_vm0, %vm4644_vm1  ;;  %vm4642_vm0 = vcmp.le.f32.partialorder %v3462_v50, 16.0 }
  0x28   : > { %v3294_v5 = vld [vmem:[#allocation2] sm:$0xff]  ;;  %vm3550_vm11 = vmand %vm3475_vm6, %vm4646_vm2 }
  0x29   : > { %576 = vrot.lane.b32.xlu1 %v3294_v5, %s3196_s10  ;;  %v3298_v6 = vld [vmem:[#allocation2 + $0x30] sm:$0xff]  ;;  %vm3565_vm9 = vmand %vm3470_vm4, %vm4637_vm3  ;;  %vm4654_vm3 = vcmask 261120  }
  0x2a   : > { %568 = vrot.lane.b32.xlu0 %v3298_v6, %s3196_s10  ;;  %v420_v8 = vld.sshfl [vmem:[#allocation1] sm:$0xff pattern:$0x75316420]  ;;  %v421_v9 = vld.sshfl [vmem:[#allocation1 + $0x8] sm:$0xff pattern:$0x75316420]  ;;  %529 = vrot.lane.b32.xlu2 %v3298_v6, %s3197_s11  ;;  %vm3582_vm4 = vmand %vm3475_vm6, %vm4638_vm10 }
  0x2b   : > { %425 = vst [vmem:[#allocation2 + $0x10] sm:$0x7] %v421_v9  ;;  %v2817_v9 = vld [vmem:[%s4628_s4 + $0x10] sm:$0xff]  ;;  %vm3600_vm6 = vmand %vm3550_vm11, %vm4642_vm0  ;;  %vm4643_vm10 = vcmp.lt.s32.totalorder %v3416_v28, 17  ;;  %vm492_vm0 = vcmp.le.f32.partialorder %v3444_v43, 15.0 }
  0x2c   : > { %428 = vst [vmem:[#allocation1] ss:$2 sm:$0xff] %v426_v7  ;;  %vm3617_vm11 = vmand %vm3565_vm9, %vm4641_vm7  ;;  %vm4645_vm9 = vcmp.lt.s32.totalorder %v3416_v28, 15  ;;  %vm490_vm7 = vcmp.ge.f32.partialorder %v3444_v43, 0.0 }
  0x2d   : > { %424 = vst [vmem:[#allocation2 + $0x18] sm:$0x7] %v420_v8  ;;  %vm3743_vm1 = vmand %vm490_vm7, %vm492_vm0  ;;  %vm4706_vm0 = vcmp.le.f32.partialorder %v3458_v49, 16.0  ;;  %v4715_v8 = vmov 0 }
  0x2e   : > { %vm496_vm7 = vmand %vm3743_vm1, %vm4646_vm2  ;;  %vm4709_vm2 = vcmp.le.f32.partialorder %v3462_v50, 16.0 }
  0x32   : > { %v3308_v10 = vld [vmem:[#allocation2 + $0x10] sm:$0xff]  ;;  %537 = vrot.lane.b32.xlu0 %v3294_v5, %s3197_s11 }
  0x33   : > { %539 = vrot.lane.b32.xlu1 %v3308_v10, %s3197_s11  ;;  %v429_v12 = vld.sshfl [vmem:[#allocation1] sm:$0xff pattern:$0x75316420]  ;;  %v430_v13 = vld.sshfl [vmem:[#allocation1 + $0x8] sm:$0xff pattern:$0x75316420] }
  0x34   : > { %433 = vst [vmem:[#allocation2 + $0x8] sm:$0x7] %v429_v12  ;;  %v3314_v14 = vld [vmem:[#allocation2 + $0x18] sm:$0xff] }
  0x35   : > { %434 = vst [vmem:[#allocation2 + $0x20] sm:$0x7] %v430_v13  ;;  %570 = vrot.lane.b32.xlu2 %v3314_v14, %s3196_s10 }
  0x36   : > { %437 = vst [vmem:[#allocation1] ss:$2 sm:$0xff] %v435_v11 }
  0x3a   : > { %531 = vrot.lane.b32.xlu0 %v3314_v14, %s3197_s11 }
  0x3b   : > { %v3320_v15 = vld [vmem:[#allocation2 + $0x8] sm:$0xff] }
  0x3c   : > { %572 = vrot.lane.b32.xlu1 %v3320_v15, %s3196_s10  ;;  %v3326_v18 = vld [vmem:[#allocation2 + $0x20] sm:$0xff] }
  0x3d   : > { %v438_v16 = vld.sshfl [vmem:[#allocation1] sm:$0xff pattern:$0x75316420]  ;;  %578 = vrot.lane.b32.xlu2 %v3308_v10, %s3196_s10  ;;  %v439_v17 = vld.sshfl [vmem:[#allocation1 + $0x8] sm:$0xff pattern:$0x75316420] }
  0x3e   : > { %442 = vst [vmem:[#allocation2 + $0x28] sm:$0x7] %v438_v16 }
  0x3f   : > { %443 = vst [vmem:[#allocation2 + $0x38] sm:$0x7] %v439_v17  ;;  %v4698_v17 = vmov 0 }
  0x40   : > { %v4699_v17 = vsel %vm3617_vm11, 4294967295, %v4698_v17 }
  0x42   : > { %717 = vrot.lane.b32.xlu0 %v3320_v15, %s3198_s15 }
  0x44   : > { %580 = vrot.lane.b32.xlu1 %v3326_v18, %s3196_s10 }
  0x45   : > { %715 = vrot.lane.b32.xlu2 %v3314_v14, %s3198_s15  ;;  %v3334_v19 = vld [vmem:[#allocation2 + $0x28] sm:$0xff] }
  0x46   : > { %v3342_v20 = vld [vmem:[#allocation2 + $0x38] sm:$0xff] }
  0x4a   : > { %574 = vrot.lane.b32.xlu0 %v3334_v19, %s3196_s10 }
  0x4c   : > { %533 = vrot.lane.b32.xlu1 %v3320_v15, %s3197_s11 }
  0x4d   : > { %541 = vrot.lane.b32.xlu2 %v3326_v18, %s3197_s11 }
  0x52   : > { %582 = vrot.lane.b32.xlu0 %v3342_v20, %s3196_s10 }
  0x54   : > { %725 = vrot.lane.b32.xlu1 %v3326_v18, %s3198_s15 }
  0x55   : > { %535 = vrot.lane.b32.xlu2 %v3334_v19, %s3197_s11 }
  0x5a   : > { %543 = vrot.lane.b32.xlu0 %v3342_v20, %s3197_s11 }
  0x5c   : > { %719 = vrot.lane.b32.xlu1 %v3334_v19, %s3198_s15 }
  0x5d   : > { %727 = vrot.lane.b32.xlu2 %v3342_v20, %s3198_s15 }
  0x62   : > { %723 = vrot.lane.b32.xlu0 %v3308_v10, %s3198_s15 }
  0x64   : > { %713 = vrot.lane.b32.xlu1 %v3298_v6, %s3198_s15 }
  0x65   : > { %721 = vrot.lane.b32.xlu2 %v3294_v5, %s3198_s15 }
  0x6a   : > { %815 = vrot.lane.b32.xlu0 %v3334_v19, %s3199_s16 }
  0x6c   : > { %823 = vrot.lane.b32.xlu1 %v3342_v20, %s3199_s16 }
  0x6d   : > { %813 = vrot.lane.b32.xlu2 %v3320_v15, %s3199_s16 }
  0x72   : > { %821 = vrot.lane.b32.xlu0 %v3326_v18, %s3199_s16 }
  0x74   : > { %811 = vrot.lane.b32.xlu1 %v3314_v14, %s3199_s16 }
  0x75   : > { %819 = vrot.lane.b32.xlu2 %v3308_v10, %s3199_s16 }
  0x7a   : > { %809 = vrot.lane.b32.xlu0 %v3298_v6, %s3199_s16 }
  0x7c   : > { %817 = vrot.lane.b32.xlu1 %v3294_v5, %s3199_s16 }
  0x7d   : > { %970 = vrot.lane.b32.xlu2 %v3334_v19, %s3200_s17 }
  0x82   : > { %978 = vrot.lane.b32.xlu0 %v3342_v20, %s3200_s17 }
  0x84   : > { %968 = vrot.lane.b32.xlu1 %v3320_v15, %s3200_s17  ;;  %v3386_v21 = vpop.permute.xlu2 %529 }
  0x85   : > { %976 = vrot.lane.b32.xlu2 %v3326_v18, %s3200_s17 }
  0x8a   : > { %966 = vrot.lane.b32.xlu0 %v3314_v14, %s3200_s17 }
  0x8c   : > { %974 = vrot.lane.b32.xlu1 %v3308_v10, %s3200_s17 }
  0x8d   : > { %964 = vrot.lane.b32.xlu2 %v3298_v6, %s3200_s17 }
  0x8f   : > { %v3394_v22 = vpop.permute.xlu2 %570 }
  0x92   : > { %972 = vrot.lane.b32.xlu0 %v3294_v5, %s3200_s17 }
  0x94   : > { %1066 = vrot.lane.b32.xlu1 %v3334_v19, %s3201_s18 }
  0x95   : > { %1074 = vrot.lane.b32.xlu2 %v3342_v20, %s3201_s18 }
  0x97   : > { %v3402_v23 = vpop.permute.xlu2 %578 }
  0x98   : > { %v590_v3 = vsel %vm4639_vm15, %v3402_v23, %v3394_v22  ;;  %v586_v7 = vsel %vm4639_vm15, %v3394_v22, %v3402_v23 }
  0x9a   : > { %1064 = vrot.lane.b32.xlu0 %v3320_v15, %s3201_s18 }
  0x9b   : > { %v3406_v24 = vpop.permute.xlu1 %576 }
  0x9c   : > { %1072 = vrot.lane.b32.xlu1 %v3326_v18, %s3201_s18  ;;  %v3410_v26 = vpop.permute.xlu0 %568 }
  0x9d   : > { %1062 = vrot.lane.b32.xlu2 %v3314_v14, %s3201_s18  ;;  %v589_v11 = vsel %vm4639_vm15, %v3406_v24, %v3410_v26  ;;  %v585_v13 = vsel %vm4639_vm15, %v3410_v26, %v3406_v24  ;;  %v4700_v24 = vmov 0 }
  0x9f   : > { %v3414_v27 = vpop.permute.xlu2 %715 }
  0xa2   : > { %1070 = vrot.lane.b32.xlu0 %v3308_v10, %s3201_s18 }
  0xa4   : > { %1060 = vrot.lane.b32.xlu1 %v3298_v6, %s3201_s18  ;;  %v3423_v30 = vpop.permute.xlu0 %537 }
  0xa5   : > { %v3426_v32 = vpop.permute.xlu1 %539  ;;  %1068 = vrot.lane.b32.xlu2 %v3294_v5, %s3201_s18 }
  0xa7   : > { %v3430_v34 = vpop.permute.xlu2 %541 }
  0xaa   : > { %1162 = vrot.lane.b32.xlu0 %v3334_v19, %s3202_s19 }
  0xac   : > { %1170 = vrot.lane.b32.xlu1 %v3342_v20, %s3202_s19  ;;  %v3436_v37 = vpop.permute.xlu0 %531 }
  0xad   : > { %1160 = vrot.lane.b32.xlu2 %v3320_v15, %s3202_s19 }
  0xae   : > { %v573_v40 = vpop.permute.xlu1 %572 }
  0xaf   : > { %v3440_v41 = vpop.permute.xlu2 %535 }
  0xb2   : > { %1168 = vrot.lane.b32.xlu0 %v3326_v18, %s3202_s19 }
  0xb4   : > { %1158 = vrot.lane.b32.xlu1 %v3314_v14, %s3202_s19  ;;  %v3450_v44 = vpop.permute.xlu0 %717 }
  0xb5   : > { %1166 = vrot.lane.b32.xlu2 %v3308_v10, %s3202_s19 }
  0xb6   : > { %v581_v47 = vpop.permute.xlu1 %580 }
  0xb7   : > { %v3456_v48 = vpop.permute.xlu2 %727  ;;  %v591_v62 = vsel %vm4639_vm15, %v581_v47, %v573_v40  ;;  %v587_v63 = vsel %vm4639_vm15, %v573_v40, %v581_v47  ;;  %v547_v40 = vsel %vm4643_vm10, %v3436_v37, %v3426_v32 }
  0xba   : > { %1156 = vrot.lane.b32.xlu0 %v3298_v6, %s3202_s19 }
  0xbc   : > { %1164 = vrot.lane.b32.xlu1 %v3294_v5, %s3202_s19  ;;  %v575_v51 = vpop.permute.xlu0 %574 }
  0xbd   : > { %1258 = vrot.lane.b32.xlu2 %v3334_v19, %s3203_s20 }
  0xbe   : > { %v3482_v54 = vpop.permute.xlu1 %533 }
  0xbf   : > { %v3489_v55 = vpop.permute.xlu2 %721  ;;  %v552_v31 = vsel %vm4643_vm10, %v3430_v34, %v3482_v54  ;;  %v548_v33 = vsel %vm4643_vm10, %v3482_v54, %v3430_v34  ;;  %v551_v34 = vsel %vm4643_vm10, %v3426_v32, %v3436_v37  ;;  %v566_v32 = vld [vmem:[%s4628_s4] sm:$0xff]  ;;  %v546_v37 = vsel %vm4643_vm10, %v3386_v21, %v3423_v30  ;;  %v567_v54 = vld [vmem:[%s4628_s4 + $0x8] sm:$0xff] }
  0xc2   : > { %1266 = vrot.lane.b32.xlu0 %v3342_v20, %s3203_s20 }
  0xc4   : > { %1256 = vrot.lane.b32.xlu1 %v3320_v15, %s3203_s20  ;;  %v583_v58 = vpop.permute.xlu0 %582 }
  0xc5   : > { %v592_v59 = vsel %vm4639_vm15, %v583_v58, %v575_v51  ;;  %v588_v60 = vsel %vm4639_vm15, %v575_v51, %v583_v58  ;;  %1264 = vrot.lane.b32.xlu2 %v3326_v18, %s3203_s20  ;;  %vm3633_vm15 = vmand %vm3582_vm4, %vm4640_vm5  ;;  %vm489_vm4 = vcmp.ge.f32.partialorder %v3442_v42, 0.0  ;;  %vm491_vm5 = vcmp.le.f32.partialorder %v3442_v42, 15.0  ;;  %v2843_v51 = vld [vmem:[%s4628_s4 + $0x20] sm:$0xff] }
  0xc6   : > { %v726_v61 = vpop.permute.xlu1 %725  ;;  %2819 = vmatpush.msk.msra.mxu0 %vm3501_vm13, %v592_v59  ;;  %2825 = vmatpush.msk.msra.mxu1 %vm3507_vm14, %v588_v60  ;;  %v4701_v24 = vsel %vm3633_vm15, 4294967295, %v4700_v24 }
  0xc7   : > { %v3555_v2 = vpop.permute.xlu2 %813  ;;  %v736_v35 = vsel %vm4645_vm9, %v726_v61, %v3450_v44  ;;  %v732_v36 = vsel %vm4645_vm9, %v3450_v44, %v726_v61 }
  0xc8   : > { %2820 = vmatpush.msk.msra.mxu0 %vm3501_vm13, %v591_v62  ;;  %2826 = vmatpush.msk.msra.mxu1 %vm3507_vm14, %v587_v63  ;;  %v2871_v62 = vld [vmem:[%s4628_s4 + $0x40] sm:$0xff] }
  0xca   : > { %1254 = vrot.lane.b32.xlu0 %v3314_v14, %s3203_s20  ;;  %2821 = vmatpush.msk.msra.mxu0 %vm3501_vm13, %v590_v3 }
  0xcb   : > { %2827 = vmatpush.msk.msra.mxu1 %vm3507_vm14, %v586_v7 }
  0xcc   : > { %1262 = vrot.lane.b32.xlu1 %v3308_v10, %s3203_s20  ;;  %2822 = vmatpush.msk.msra.mxu0 %vm3501_vm13, %v589_v11  ;;  %v544_v16 = vpop.permute.xlu0 %543  ;;  %v4718_v11 = vmov 0 }
  0xcd   : > { %2828 = vmatpush.msk.msra.mxu1 %vm3507_vm14, %v585_v13  ;;  %v553_v22 = vsel %vm4643_vm10, %v544_v16, %v3440_v41  ;;  %v549_v23 = vsel %vm4643_vm10, %v3440_v41, %v544_v16  ;;  %2823 = vmatmul.msk.f32.vlgmr.msra.gmra.mxu0 %vm4654_vm3, %v2817_v9  ;;  %v550_v41 = vsel %vm4643_vm10, %v3423_v30, %v3386_v21  ;;  %vm3729_vm10 = vmand %vm489_vm4, %vm491_vm5 }
  0xce   : > { %v720_v25 = vpop.permute.xlu1 %719  ;;  %2831 = vmatpush.msk.msra.mxu2 %vm3537_vm8, %v553_v22  ;;  %2837 = vmatpush.msk.msra.mxu3 %vm3600_vm6, %v549_v23  ;;  %vm495_vm5 = vmand %vm3729_vm10, %vm4647_vm12 }
  0xcf   : > { %v737_v26 = vsel %vm4645_vm9, %v3456_v48, %v720_v25  ;;  %v733_v29 = vsel %vm4645_vm9, %v720_v25, %v3456_v48  ;;  %2829 = vmatmul.msk.f32.vlgmr.msra.gmra.mxu1 %vm4654_vm3, %v2817_v9  ;;  %1252 = vrot.lane.b32.xlu2 %v3298_v6, %s3203_s20  ;;  %v3682_v38 = vpop.permute.xlu2 %819  ;;  %vm3770_vm4 = vmand %vm495_vm5, %vm4706_vm0  ;;  %v2872_v9 = vld [vmem:[%s4628_s4 + $0x48] sm:$0xff]  ;;  %v2858_v25 = vld [vmem:[%s4628_s4 + $0x38] sm:$0xff] }
  0xd0   : > { %2845 = vmatpush.msk.msrb.mxu0 %vm3617_vm11, %v737_v26  ;;  %2851 = vmatpush.msk.msrb.mxu1 %vm3633_vm15, %v733_v29  ;;  %vm3780_vm12 = vmand %vm496_vm7, %vm4709_vm2  ;;  %vm4712_vm2 = vcmp.ge.f32.partialorder %v3458_v49, -1.0  ;;  %vm4713_vm7 = vcmp.ge.f32.partialorder %v3462_v50, -1.0 }
  0xd1   : > { %2832 = vmatpush.msk.msra.mxu2 %vm3537_vm8, %v552_v31  ;;  %2838 = vmatpush.msk.msra.mxu3 %vm3600_vm6, %v548_v33  ;;  %vm499_vm5 = vmand %vm3729_vm10, %vm4712_vm2  ;;  %vm4714_vm10 = vcmp.le.f32.partialorder %v3458_v49, 14.0 }
  0xd2   : > { %2846 = vmatpush.msk.msrb.mxu0 %vm3617_vm11, %v736_v35  ;;  %2852 = vmatpush.msk.msrb.mxu1 %vm3633_vm15, %v732_v36  ;;  %vm500_vm0 = vmand %vm3743_vm1, %vm4713_vm7  ;;  %vm4717_vm1 = vcmp.le.f32.partialorder %v3462_v50, 14.0 }
  0xd3   : > { %1260 = vrot.lane.b32.xlu0 %v3294_v5, %s3203_s20  ;;  %2833 = vmatpush.msk.msra.mxu2 %vm3537_vm8, %v551_v34  ;;  %vm3854_vm2 = vmand %vm499_vm5, %vm4714_vm10  ;;  %vm503_vm5 = vcmp.ge.f32.partialorder %v3442_v42, -1.0  ;;  %vm504_vm10 = vcmp.ge.f32.partialorder %v3444_v43, -1.0 }
  0xd4   : > { %2839 = vmatpush.msk.msra.mxu3 %vm3600_vm6, %v547_v40  ;;  %v724_v44 = vpop.permute.xlu0 %723  ;;  %v4716_v8 = vsel %vm3854_vm2, 4294967295, %v4715_v8  ;;  %vm3864_vm7 = vmand %vm500_vm0, %vm4717_vm1  ;;  %vm505_vm0 = vcmp.le.f32.partialorder %v3442_v42, 14.0  ;;  %vm506_vm1 = vcmp.le.f32.partialorder %v3444_v43, 14.0  ;;  %v2877_v43 = vld [vmem:[%s4628_s4 + $0x50] sm:$0xff]  ;;  %v4729_v40 = vmov 0 }
  0xd5   : > { %2834 = vmatpush.msk.msra.mxu2 %vm3537_vm8, %v550_v41  ;;  %v735_v45 = vsel %vm4645_vm9, %v724_v44, %v3414_v27  ;;  %v731_v46 = vsel %vm4645_vm9, %v3414_v27, %v724_v44  ;;  %2824 = vmatmul.msk.f32.gmra.mxu0 %vm4654_vm3, %v2818_v39  ;;  %v4719_v11 = vsel %vm3864_vm7, 4294967295, %v4718_v11 }
  0xd6   : > { %v714_v47 = vpop.permute.xlu1 %713  ;;  %2840 = vmatpush.msk.msra.mxu3 %vm3600_vm6, %v546_v37  ;;  %2847 = vmatpush.msk.msrb.mxu0 %vm3617_vm11, %v735_v45  ;;  %v4734_v37 = vmov 0 }
  0xd7   : > { %2853 = vmatpush.msk.msrb.mxu1 %vm3633_vm15, %v731_v46  ;;  %v734_v27 = vsel %vm4645_vm9, %v3489_v55, %v714_v47  ;;  %v730_v30 = vsel %vm4645_vm9, %v714_v47, %v3489_v55  ;;  %2835 = vmatmul.msk.f32.vlgmr.msra.gmra.mxu2 %vm4654_vm3, %v566_v32  ;;  %vm4648_vm9 = vcmp.lt.s32.totalorder %v3416_v28, 1  ;;  %v971_v53 = vpop.permute.xlu2 %970 }
  0xd8   : > { %2848 = vmatpush.msk.msrb.mxu0 %vm3617_vm11, %v734_v27  ;;  %2841 = vmatmul.msk.f32.vlgmr.msra.gmra.mxu3 %vm4654_vm3, %v566_v32  ;;  %v2878_v27 = vld [vmem:[%s4628_s4 + $0x58] sm:$0xff] }
  0xd9   : > { %2854 = vmatpush.msk.msrb.mxu1 %vm3633_vm15, %v730_v30 }
  0xda   : > { %926 = vmatpush.msra.mxu0 %v3334_v19  ;;  %2830 = vmatmul.msk.f32.gmra.mxu1 %vm4654_vm3, %v2818_v39  ;;  %v4707_v19 = vmov 0 }
  0xdb   : > { %949 = vmatpush.msra.mxu1 %v3342_v20  ;;  %v4708_v19 = vsel %vm3770_vm4, 4294967295, %v4707_v19  ;;  %v4710_v20 = vmov 0 }
  0xdc   : > { %927 = vmatpush.msra.mxu0 %v3320_v15  ;;  %v816_v52 = vpop.permute.xlu0 %815  ;;  %v4711_v20 = vsel %vm3780_vm12, 4294967295, %v4710_v20 }
  0xdd   : > { %2849 = vmatmul.msk.f32.vlgmr.msrb.gmra.mxu0 %vm4654_vm3, %v2843_v51  ;;  %950 = vmatpush.msra.mxu1 %v3326_v18 }
  0xde   : > { %v824_v15 = vpop.permute.xlu1 %823  ;;  %928 = vmatpush.msra.mxu0 %v3314_v14  ;;  %v2844_v14 = vld [vmem:[%s4628_s4 + $0x28] sm:$0xff] }
  0xdf   : > { %v833_v55 = vsel %vm4648_vm9, %v824_v15, %v816_v52  ;;  %v829_v58 = vsel %vm4648_vm9, %v816_v52, %v824_v15  ;;  %2836 = vmatmul.msk.f32.gmra.mxu2 %vm4654_vm3, %v567_v54  ;;  %951 = vmatpush.msra.mxu1 %v3308_v10  ;;  %v977_v60 = vpop.permute.xlu2 %976 }
  0xe0   : > { %2859 = vmatpush.msk.msrb.mxu2 %vm3770_vm4, %v833_v55  ;;  %2865 = vmatpush.msk.msrb.mxu3 %vm3780_vm12, %v829_v58  ;;  %v2891_v58 = vld [vmem:[%s4628_s4 + $0x60] sm:$0xff] }
  0xe1   : > { %2842 = vmatmul.msk.f32.gmra.mxu3 %vm4654_vm3, %v567_v54  ;;  %929 = vmatpush.msra.mxu0 %v3298_v6 }
  0xe2   : > { %2855 = vmatmul.msk.f32.vlgmr.msrb.gmra.mxu1 %vm4654_vm3, %v2843_v51 }
  0xe3   : > { %952 = vmatpush.msra.mxu1 %v3294_v5 }
  0xe4   : > { %v822_v18 = vpop.permute.xlu0 %821 }
  0xe5   : > { %v832_v10 = vsel %vm4648_vm9, %v822_v18, %v3555_v2  ;;  %v828_v59 = vsel %vm4648_vm9, %v3555_v2, %v822_v18  ;;  %2850 = vmatmul.msk.f32.gmra.mxu0 %vm4654_vm3, %v2844_v14  ;;  %v2857_v2 = vld [vmem:[%s4628_s4 + $0x30] sm:$0xff] }
  0xe6   : > { %v812_v6 = vpop.permute.xlu1 %811  ;;  %2860 = vmatpush.msk.msrb.mxu2 %vm3770_vm4, %v832_v10  ;;  %2866 = vmatpush.msk.msrb.mxu3 %vm3780_vm12, %v828_v59 }
  0xe7   : > { %v831_v5 = vsel %vm4648_vm9, %v3682_v38, %v812_v6  ;;  %v827_v61 = vsel %vm4648_vm9, %v812_v6, %v3682_v38  ;;  %v965_v7 = vpop.permute.xlu2 %964 }
  0xe8   : > { %2861 = vmatpush.msk.msrb.mxu2 %vm3770_vm4, %v831_v5  ;;  %2867 = vmatpush.msk.msrb.mxu3 %vm3780_vm12, %v827_v61  ;;  %v2892_v61 = vld [vmem:[%s4628_s4 + $0x68] sm:$0xff] }
  0xea   : > { %2856 = vmatmul.msk.f32.gmra.mxu1 %vm4654_vm3, %v2844_v14 }
  0xec   : > { %v810_v63 = vpop.permute.xlu0 %809 }
  0xed   : > { %2873 = vmatmul.msk.f32.vlgmr.msra.gmra.mxu0 %vm4654_vm3, %v2871_v62 }
  0xee   : > { %v818_v1 = vpop.permute.xlu1 %817 }
  0xef   : > { %v830_v3 = vsel %vm4648_vm9, %v818_v1, %v810_v63  ;;  %v826_v4 = vsel %vm4648_vm9, %v810_v63, %v818_v1  ;;  %vm4649_vm9 = vcmp.lt.s32.totalorder %v3416_v28, 127  ;;  %v1075_v31 = vpop.permute.xlu2 %1074 }
  0xf0   : > { %2862 = vmatpush.msk.msrb.mxu2 %vm3770_vm4, %v830_v3  ;;  %2868 = vmatpush.msk.msrb.mxu3 %vm3780_vm12, %v826_v4  ;;  %vm4722_vm12 = vcmp.lt.s32.totalorder %v3416_v28, 127 }
  0xf1   : > { %2863 = vmatmul.msk.f32.vlgmr.msrb.gmra.mxu2 %vm4654_vm3, %v2857_v2  ;;  %2869 = vmatmul.msk.f32.vlgmr.msrb.gmra.mxu3 %vm4654_vm3, %v2857_v2  ;;  %vm4723_vm4 = vmmov %vm4722_vm12 }
  0xf2   : > { %2875 = vmatmul.msk.f32.vlgmr.msra.gmra.mxu1 %vm4654_vm3, %v2871_v62 }
  0xf4   : > { %v979_v13 = vpop.permute.xlu0 %978 }
  0xf5   : > { %v984_v16 = vsel %vm4649_vm9, %v971_v53, %v979_v13  ;;  %v988_v22 = vsel %vm4649_vm9, %v979_v13, %v971_v53  ;;  %2874 = vmatmul.msk.f32.gmra.mxu0 %vm4654_vm3, %v2872_v9 }
  0xf6   : > { %v969_v23 = vpop.permute.xlu1 %968  ;;  %2879 = vmatpush.msk.msra.mxu2 %vm3854_vm2, %v984_v16  ;;  %2885 = vmatpush.msk.msra.mxu3 %vm3864_vm7, %v988_v22 }
  0xf7   : > { %v983_v26 = vsel %vm4649_vm9, %v969_v23, %v977_v60  ;;  %v987_v29 = vsel %vm4649_vm9, %v977_v60, %v969_v23  ;;  %vm3895_vm9 = vmand %vm503_vm5, %vm505_vm0  ;;  %vm4726_vm5 = vcmp.ge.f32.partialorder %v3458_v49, 1.0  ;;  %v1063_v41 = vpop.permute.xlu2 %1062  ;;  %v4754_v60 = vmov 0 }
  0xf8   : > { %2880 = vmatpush.msk.msra.mxu2 %vm3854_vm2, %v983_v26  ;;  %2886 = vmatpush.msk.msra.mxu3 %vm3864_vm7, %v987_v29  ;;  %vm509_vm0 = vmand %vm3895_vm9, %vm4726_vm5  ;;  %vm4731_vm5 = vcmp.lt.s32.totalorder %v3416_v28, 127 }
  0xf9   : > { %2864 = vmatmul.msk.f32.gmra.mxu2 %vm4654_vm3, %v2858_v25  ;;  %2870 = vmatmul.msk.f32.gmra.mxu3 %vm4654_vm3, %v2858_v25  ;;  %vm4732_vm11 = vmmov %vm4731_vm5  ;;  %v2905_v25 = vld [vmem:[%s4628_s4 + $0x70] sm:$0xff] }
  0xfa   : > { %2876 = vmatmul.msk.f32.gmra.mxu1 %vm4654_vm3, %v2872_v9  ;;  %vm3903_vm3 = vmand %vm504_vm10, %vm506_vm1  ;;  %vm4728_vm1 = vcmp.le.f32.partialorder %v3458_v49, 16.0 }
  0xfb   : > { %vm3925_vm15 = vmand %vm509_vm0, %vm4728_vm1  ;;  %vm4736_vm0 = vcmp.lt.s32.totalorder %v3416_v28, 113 }
  0xfc   : > { %v967_v33 = vpop.permute.xlu0 %966  ;;  %v4730_v40 = vsel %vm3925_vm15, 4294967295, %v4729_v40  ;;  %vm4737_vm1 = vmmov %vm4736_vm0 }
  0xfe   : > { %v975_v35 = vpop.permute.xlu1 %974 }
  0xff   : > { %v982_v34 = vsel %vm4722_vm12, %v967_v33, %v975_v35  ;;  %v986_v38 = vsel %vm4723_vm4, %v975_v35, %v967_v33  ;;  %vm4727_vm12 = vcmp.ge.f32.partialorder %v3462_v50, 1.0  ;;  %v1069_v48 = vpop.permute.xlu2 %1068 }
 0x100   : > { %2881 = vmatpush.msk.msra.mxu2 %vm3854_vm2, %v982_v34  ;;  %2887 = vmatpush.msk.msra.mxu3 %vm3864_vm7, %v986_v38  ;;  %vm510_vm4 = vmand %vm3903_vm3, %vm4727_vm12  ;;  %vm4733_vm12 = vcmp.le.f32.partialorder %v3462_v50, 16.0 }
 0x101   : > { %vm3935_vm10 = vmand %vm510_vm4, %vm4733_vm12 }
 0x102   : > { %v4735_v37 = vsel %vm3935_vm10, 4294967295, %v4734_v37  ;;  %vm4740_vm4 = vmmov %vm4736_vm0 }
 0x103   : > { %vm4741_vm12 = vmmov %vm4736_vm0 }
 0x104   : > { %v973_v42 = vpop.permute.xlu0 %972 }
 0x105   : > { %v981_v44 = vsel %vm4731_vm5, %v965_v7, %v973_v42  ;;  %v985_v32 = vsel %vm4732_vm11, %v973_v42, %v965_v7  ;;  %vm4738_vm11 = vcmask 261120  }
 0x106   : > { %v1067_v45 = vpop.permute.xlu1 %1066  ;;  %2882 = vmatpush.msk.msra.mxu2 %vm3854_vm2, %v981_v44  ;;  %2888 = vmatpush.msk.msra.mxu3 %vm3864_vm7, %v985_v32  ;;  %vm4739_vm5 = vmmov %vm4738_vm11  ;;  %vm4665_vm7 = vcmp.lt.s32.totalorder %v3416_v28, 112  ;;  %vm4761_vm2 = vcmp.le.f32.partialorder %v3458_v49, 14.0 }
 0x107   : > { %v1080_v46 = vsel %vm4736_vm0, %v1067_v45, %v1075_v31  ;;  %v1084_v47 = vsel %vm4737_vm1, %v1075_v31, %v1067_v45  ;;  %2883 = vmatmul.msk.f32.vlgmr.msra.gmra.mxu2 %vm4738_vm11, %v2877_v43  ;;  %2889 = vmatmul.msk.f32.vlgmr.msra.gmra.mxu3 %vm4739_vm5, %v2877_v43  ;;  %vm4742_vm0 = vmmov %vm4739_vm5  ;;  %v1161_v14 = vpop.permute.xlu2 %1160 }
 0x108   : > { %2893 = vmatpush.msk.msrb.mxu0 %vm3925_vm15, %v1080_v46  ;;  %2899 = vmatpush.msk.msrb.mxu1 %vm3935_vm10, %v1084_v47  ;;  %vm4743_vm1 = vmmov %vm4742_vm0  ;;  %v2919_v47 = vld [vmem:[%s4628_s4 + $0x80] sm:$0xff] }
 0x109   : > { %vm4744_vm11 = vmmov %vm4740_vm4 }
 0x10a   : > { %vm4745_vm5 = vmmov %vm4740_vm4 }
 0x10c   : > { %v1065_v21 = vpop.permute.xlu0 %1064 }
 0x10e   : > { %v1073_v30 = vpop.permute.xlu1 %1072 }
 0x10f   : > { %v1079_v51 = vsel %vm4740_vm4, %v1065_v21, %v1073_v30  ;;  %v1083_v52 = vsel %vm4741_vm12, %v1073_v30, %v1065_v21  ;;  %2884 = vmatmul.msk.f32.gmra.mxu2 %vm4742_vm0, %v2878_v27  ;;  %2890 = vmatmul.msk.f32.gmra.mxu3 %vm4743_vm1, %v2878_v27  ;;  %vm4746_vm12 = vmmov %vm4740_vm4  ;;  %v1167_v1 = vpop.permute.xlu2 %1166  ;;  %v2920_v30 = vld [vmem:[%s4628_s4 + $0x88] sm:$0xff] }
 0x110   : > { %2894 = vmatpush.msk.msrb.mxu0 %vm3925_vm15, %v1079_v51  ;;  %2900 = vmatpush.msk.msrb.mxu1 %vm3935_vm10, %v1083_v52  ;;  %vm4747_vm1 = vmmov %vm4742_vm0 }
 0x114   : > { %v1071_v53 = vpop.permute.xlu0 %1070 }
 0x115   : > { %v1078_v54 = vsel %vm4744_vm11, %v1063_v41, %v1071_v53  ;;  %v1082_v15 = vsel %vm4745_vm5, %v1071_v53, %v1063_v41  ;;  %vm4748_vm11 = vcmp.ge.f32.partialorder %v3458_v49, 0.0 }
 0x116   : > { %v1061_v55 = vpop.permute.xlu1 %1060  ;;  %2895 = vmatpush.msk.msrb.mxu0 %vm3925_vm15, %v1078_v54  ;;  %2901 = vmatpush.msk.msrb.mxu1 %vm3935_vm10, %v1082_v15  ;;  %vm513_vm5 = vmand %vm3895_vm9, %vm4748_vm11 }
 0x117   : > { %v1077_v18 = vsel %vm4740_vm4, %v1061_v55, %v1069_v48  ;;  %v1081_v10 = vsel %vm4746_vm12, %v1069_v48, %v1061_v55  ;;  %vm4749_vm4 = vcmp.ge.f32.partialorder %v3462_v50, 0.0  ;;  %v1259_v16 = vpop.permute.xlu2 %1258 }
 0x118   : > { %2896 = vmatpush.msk.msrb.mxu0 %vm3925_vm15, %v1077_v18  ;;  %2902 = vmatpush.msk.msrb.mxu1 %vm3935_vm10, %v1081_v10  ;;  %vm514_vm12 = vmand %vm3903_vm3, %vm4749_vm4  ;;  %vm4750_vm15 = vcmp.le.f32.partialorder %v3458_v49, 15.0 }
 0x119   : > { %2897 = vmatmul.msk.f32.vlgmr.msrb.gmra.mxu0 %vm4742_vm0, %v2891_v58  ;;  %2903 = vmatmul.msk.f32.vlgmr.msrb.gmra.mxu1 %vm4747_vm1, %v2891_v58  ;;  %vm3998_vm10 = vmand %vm513_vm5, %vm4750_vm15  ;;  %vm4753_vm0 = vcmp.le.f32.partialorder %v3462_v50, 15.0  ;;  %vm4756_vm15 = vcmask 261120   ;;  %vm4758_vm5 = vcmp.ge.f32.partialorder %v3458_v49, -1.0  ;;  %v2906_v49 = vld [vmem:[%s4628_s4 + $0x78] sm:$0xff] }
 0x11a   : > { %vm4004_vm1 = vmand %vm514_vm12, %vm4753_vm0  ;;  %vm4759_vm12 = vcmp.ge.f32.partialorder %v3462_v50, -1.0 }
 0x11b   : > { %v4755_v60 = vsel %vm4004_vm1, 4294967295, %v4754_v60  ;;  %vm4757_vm11 = vmmov %vm4756_vm15 }
 0x11c   : > { %v1163_v59 = vpop.permute.xlu0 %1162  ;;  %vm517_vm4 = vmand %vm3895_vm9, %vm4758_vm5  ;;  %vm4764_vm5 = vcmp.le.f32.partialorder %v3462_v50, 14.0 }
 0x11d   : > { %vm518_vm0 = vmand %vm3903_vm3, %vm4759_vm12 }
 0x11e   : > { %v1171_v5 = vpop.permute.xlu1 %1170  ;;  %vm4061_vm9 = vmand %vm517_vm4, %vm4761_vm2 }
 0x11f   : > { %v1176_v62 = vsel %vm4665_vm7, %v1163_v59, %v1171_v5  ;;  %v1180_v63 = vsel %vm4665_vm7, %v1171_v5, %v1163_v59  ;;  %v1265_v36 = vpop.permute.xlu2 %1264  ;;  %vm4767_vm3 = vmmov %vm4757_vm11 }
 0x120   : > { %2907 = vmatpush.msk.msrb.mxu2 %vm3998_vm10, %v1176_v62  ;;  %2913 = vmatpush.msk.msrb.mxu3 %vm4004_vm1, %v1180_v63  ;;  %vm4768_vm2 = vmmov %vm4767_vm3 }
 0x121   : > { %2898 = vmatmul.msk.f32.gmra.mxu0 %vm4756_vm15, %v2892_v61  ;;  %2904 = vmatmul.msk.f32.gmra.mxu1 %vm4757_vm11, %v2892_v61  ;;  %vm4760_vm15 = vmmov %vm4757_vm11 }
 0x122   : > { %vm4769_vm4 = vmmov %vm4768_vm2 }
 0x123   : > { %vm4770_vm12 = vmmov %vm4768_vm2 }
 0x124   : > { %v1169_v2 = vpop.permute.xlu0 %1168 }
 0x125   : > { %v1175_v3 = vsel %vm4665_vm7, %v1161_v14, %v1169_v2  ;;  %v1179_v4 = vsel %vm4665_vm7, %v1169_v2, %v1161_v14 }
 0x126   : > { %v1159_v7 = vpop.permute.xlu1 %1158  ;;  %2908 = vmatpush.msk.msrb.mxu2 %vm3998_vm10, %v1175_v3  ;;  %2914 = vmatpush.msk.msrb.mxu3 %vm4004_vm1, %v1179_v4 }
 0x127   : > { %v1174_v9 = vsel %vm4665_vm7, %v1159_v7, %v1167_v1  ;;  %v1178_v13 = vsel %vm4665_vm7, %v1167_v1, %v1159_v7 }
 0x128   : > { %2909 = vmatpush.msk.msrb.mxu2 %vm3998_vm10, %v1174_v9  ;;  %2915 = vmatpush.msk.msrb.mxu3 %vm4004_vm1, %v1178_v13 }
 0x129   : > { %v1253_v45 = vpop.permute.xlu2 %1252 }
 0x12c   : > { %v1157_v22 = vpop.permute.xlu0 %1156 }
 0x12e   : > { %v1165_v23 = vpop.permute.xlu1 %1164 }
 0x12f   : > { %v1173_v26 = vsel %vm4665_vm7, %v1157_v22, %v1165_v23  ;;  %v1177_v29 = vsel %vm4665_vm7, %v1165_v23, %v1157_v22  ;;  %vm4670_vm7 = vcmp.lt.s32.totalorder %v3416_v28, 111 }
 0x130   : > { %2910 = vmatpush.msk.msrb.mxu2 %vm3998_vm10, %v1173_v26  ;;  %2916 = vmatpush.msk.msrb.mxu3 %vm4004_vm1, %v1177_v29  ;;  %vm4067_vm1 = vmand %vm518_vm0, %vm4764_vm5 }
 0x131   : > { %2911 = vmatmul.msk.f32.vlgmr.msrb.gmra.mxu2 %vm4760_vm15, %v2905_v25  ;;  %2917 = vmatmul.msk.f32.vlgmr.msrb.gmra.mxu3 %vm4757_vm11, %v2905_v25  ;;  %vm4771_vm0 = vmmov %vm4768_vm2 }
 0x132   : > { %vm4772_vm15 = vmmov %vm4771_vm0 }
 0x134   : > { %v1267_v35 = vpop.permute.xlu0 %1266 }
 0x135   : > { %v1272_v34 = vsel %vm4670_vm7, %v1259_v16, %v1267_v35  ;;  %v1276_v38 = vsel %vm4670_vm7, %v1267_v35, %v1259_v16 }
 0x136   : > { %v1257_v39 = vpop.permute.xlu1 %1256  ;;  %2921 = vmatpush.msk.msra.mxu0 %vm4061_vm9, %v1272_v34  ;;  %2927 = vmatpush.msk.msra.mxu1 %vm4067_vm1, %v1276_v38 }
 0x137   : > { %v1271_v50 = vsel %vm4670_vm7, %v1257_v39, %v1265_v36  ;;  %v1275_v42 = vsel %vm4670_vm7, %v1265_v36, %v1257_v39 }
 0x138   : > { %2922 = vmatpush.msk.msra.mxu0 %vm4061_vm9, %v1271_v50  ;;  %2928 = vmatpush.msk.msra.mxu1 %vm4067_vm1, %v1275_v42 }
 0x139   : > { %2912 = vmatmul.msk.f32.gmra.mxu2 %vm4767_vm3, %v2906_v49  ;;  %2918 = vmatmul.msk.f32.gmra.mxu3 %vm4768_vm2, %v2906_v49 }
 0x13c   : > { %v1255_v43 = vpop.permute.xlu0 %1254 }
 0x13e   : > { %v1263_v41 = vpop.permute.xlu1 %1262 }
 0x13f   : > { %v1270_v44 = vsel %vm4670_vm7, %v1255_v43, %v1263_v41  ;;  %v1274_v32 = vsel %vm4670_vm7, %v1263_v41, %v1255_v43 }
 0x140   : > { %2923 = vmatpush.msk.msra.mxu0 %vm4061_vm9, %v1270_v44  ;;  %2929 = vmatpush.msk.msra.mxu1 %vm4067_vm1, %v1274_v32 }
 0x145   : > { %v1261_v46 = vpop.permute.xlu0 %1260 }
 0x146   : > { %v1269_v21 = vsel %vm4670_vm7, %v1253_v45, %v1261_v46  ;;  %v1273_v27 = vsel %vm4670_vm7, %v1261_v46, %v1253_v45 }
 0x147   : > { %2924 = vmatpush.msk.msra.mxu0 %vm4061_vm9, %v1269_v21  ;;  %2930 = vmatpush.msk.msra.mxu1 %vm4067_vm1, %v1273_v27 }
 0x148   : > { %2925 = vmatmul.msk.f32.vlgmr.msra.gmra.mxu0 %vm4769_vm4, %v2919_v47  ;;  %2931 = vmatmul.msk.f32.vlgmr.msra.gmra.mxu1 %vm4770_vm12, %v2919_v47 }
 0x14a   : > { %v632_v48 = vpop.f32.mrf.mxu0 }
 0x14c   : > { %v655_v51 = vpop.f32.mrf.mxu1 }
 0x150   : > { %2926 = vmatmul.msk.f32.gmra.mxu0 %vm4771_vm0, %v2920_v30  ;;  %2932 = vmatmul.msk.f32.gmra.mxu1 %vm4772_vm15, %v2920_v30  ;;  %vm4773_vm0 = vcmp.lt.s32.totalorder %v3416_v28, 16 }
 0x151   : > { %vm4774_vm15 = vmmov %vm4773_vm0 }
 0x152   : > { %v635_v52 = vpop.f32.mrf.mxu0 }
 0x157   : > { %v658_v53 = vpop.f32.mrf.mxu1 }
 0x15a   : > { %v684_v54 = vpop.f32.mrf.mxu2  ;;  %v776_v55 = vpop.f32.mrf.mxu0 }
 0x15b   : > { %v707_v15 = vpop.f32.mrf.mxu3  ;;  %v685_v13 = vadd.f32 %v684_v54, %v632_v48 }
 0x15c   : > { %v708_v16 = vadd.f32 %v707_v15, %v655_v51 }
 0x15d   : > { %v805_v25 = vadd.f32 %v776_v55, %v685_v13 }
 0x15f   : > { %v799_v58 = vpop.f32.mrf.mxu1 }
 0x160   : > { %v806_v26 = vadd.f32 %v799_v58, %v708_v16 }
 0x162   : > { %v687_v14 = vpop.f32.mrf.mxu2  ;;  %v779_v10 = vpop.f32.mrf.mxu0 }
 0x163   : > { %v688_v36 = vadd.f32 %v687_v14, %v635_v52 }
 0x164   : > { %v710_v18 = vpop.f32.mrf.mxu3 }
 0x165   : > { %v711_v34 = vadd.f32 %v710_v18, %v658_v53  ;;  %v807_v49 = vadd.f32 %v779_v10, %v688_v36 }
 0x167   : > { %v802_v59 = vpop.f32.mrf.mxu1 }
 0x168   : > { %v808_v50 = vadd.f32 %v802_v59, %v711_v34 }
 0x16a   : > { %v931_v62 = vpop.f32.mrf.mxu0 }
 0x16f   : > { %v954_v63 = vpop.f32.mrf.mxu1 }
 0x172   : > { %v934_v3 = vpop.f32.mrf.mxu0 }
 0x174   : > { %v872_v5 = vpop.f32.mrf.mxu2  ;;  %v895_v61 = vpop.f32.mrf.mxu3 }
 0x175   : > { %v901_v38 = vadd.f32 %v872_v5, %v805_v25  ;;  %v902_v39 = vadd.f32 %v895_v61, %v806_v26 }
 0x177   : > { %v957_v4 = vpop.f32.mrf.mxu1  ;;  %v960_v42 = vadd.f32 %v931_v62, %v901_v38  ;;  %v961_v43 = vadd.f32 %v954_v63, %v902_v39 }
 0x17c   : > { %v875_v1 = vpop.f32.mrf.mxu2  ;;  %v898_v2 = vpop.f32.mrf.mxu3 }
 0x17d   : > { %v903_v46 = vadd.f32 %v875_v1, %v807_v49  ;;  %v904_v47 = vadd.f32 %v898_v2, %v808_v50 }
 0x17f   : > { %v962_v51 = vadd.f32 %v934_v3, %v903_v46  ;;  %v963_v54 = vadd.f32 %v957_v4, %v904_v47 }
 0x18a   : > { %v1027_v7 = vpop.f32.mrf.mxu2  ;;  %v1050_v9 = vpop.f32.mrf.mxu3 }
 0x18b   : > { %v1056_v21 = vadd.f32 %v1027_v7, %v960_v42  ;;  %v1057_v27 = vadd.f32 %v1050_v9, %v961_v43 }
 0x192   : > { %v1030_v29 = vpop.f32.mrf.mxu2  ;;  %v1053_v35 = vpop.f32.mrf.mxu3 }
 0x193   : > { %v1058_v18 = vadd.f32 %v1030_v29, %v962_v51  ;;  %v1059_v10 = vadd.f32 %v1053_v35, %v963_v54 }
 0x196   : > { %v1123_v22 = vpop.f32.mrf.mxu0  ;;  %v1146_v23 = vpop.f32.mrf.mxu1 }
 0x197   : > { %v1152_v30 = vadd.f32 %v1123_v22, %v1056_v21  ;;  %v1153_v48 = vadd.f32 %v1146_v23, %v1057_v27 }
 0x19e   : > { %v1126_v41 = vpop.f32.mrf.mxu0  ;;  %v1149_v44 = vpop.f32.mrf.mxu1 }
 0x19f   : > { %v1154_v62 = vadd.f32 %v1126_v41, %v1058_v18  ;;  %v1155_v63 = vadd.f32 %v1149_v44, %v1059_v10 }
 0x1b4   : > { %v1219_v32 = vpop.f32.mrf.mxu2  ;;  %v1242_v45 = vpop.f32.mrf.mxu3 }
 0x1b5   : > { %v1248_v52 = vadd.f32 %v1219_v32, %v1152_v30  ;;  %v1249_v53 = vadd.f32 %v1242_v45, %v1153_v48 }
 0x1bc   : > { %v1222_v5 = vpop.f32.mrf.mxu2  ;;  %v1245_v61 = vpop.f32.mrf.mxu3 }
 0x1bd   : > { %v1250_v1 = vadd.f32 %v1222_v5, %v1154_v62  ;;  %v1251_v2 = vadd.f32 %v1245_v61, %v1155_v63 }
 0x1c5   : > { %v1315_v15 = vpop.f32.mrf.mxu0  ;;  %v1338_v55 = vpop.f32.mrf.mxu1 }
 0x1c6   : > { %v4118_v58 = vadd.f32 %v1315_v15, %v1248_v52  ;;  %v4120_v14 = vadd.f32 %v1338_v55, %v1249_v53 }
 0x1c8   : > { %v1348_v59 = vadd.f32 %v4120_v14, %v4118_v58  ;;  %v1354_v3 = vmul.f32 %v4118_v58, %v4118_v58  ;;  %v1355_v4 = vmul.f32 %v4120_v14, %v4120_v14 }
 0x1ca   : > { %1349 = vadd.xlane.f32.xlu2 %v1348_v59  ;;  %v1358_v22 = vadd.f32 %v1355_v4, %v1354_v3 }
 0x1cd   : > { %v1318_v7 = vpop.f32.mrf.mxu0  ;;  %v1341_v9 = vpop.f32.mrf.mxu1 }
 0x1ce   : > { %v1346_v13 = vadd.f32 %v1318_v7, %v1250_v1  ;;  %v1347_v16 = vadd.f32 %v1341_v9, %v1251_v2 }
 0x1d0   : > { %v1351_v23 = vadd.f32 %v1347_v16, %v1346_v13  ;;  %v1356_v25 = vmul.f32 %v1346_v13, %v1346_v13  ;;  %v1357_v26 = vmul.f32 %v1347_v16, %v1347_v16 }
 0x1d2   : > { %1359 = vadd.xlane.f32.xlu2 %v1358_v22  ;;  %1352 = vadd.xlane.f32.xlu1 %v1351_v23  ;;  %v1361_v29 = vadd.f32 %v1357_v26, %v1356_v25 }
 0x1d4   : > { %1362 = vadd.xlane.f32.xlu0 %v1361_v29 }
 0x23d   : > { %v1350_v35 = vpop.xlane.xlu2 %1349 }
 0x23e   : > { %v1364_v36 = vmul.f32 0.00390625, %v1350_v35 }
 0x240   : > { %v1368_v39 = vmul.f32 %v1364_v36, %v1364_v36  ;;  %v1374_v10 = vsub.f32 %v4118_v58, %v1364_v36  ;;  %v1375_v59 = vsub.f32 %v4120_v14, %v1364_v36 }
 0x245   : > { %v1360_v34 = vpop.xlane.xlu2 %1359  ;;  %v1353_v38 = vpop.xlane.xlu1 %1352 }
 0x246   : > { %v1366_v49 = vmul.f32 0.00390625, %v1360_v34  ;;  %v1365_v50 = vmul.f32 0.00390625, %v1353_v38 }
 0x247   : > { %v1363_v42 = vpop.xlane.xlu0 %1362 }
 0x248   : > { %v1370_v43 = vsub.f32 %v1366_v49, %v1368_v39  ;;  %v1367_v41 = vmul.f32 0.00390625, %v1363_v42  ;;  %v1369_v44 = vmul.f32 %v1365_v50, %v1365_v50  ;;  %v1377_v2 = vsub.f32 %v1347_v16, %v1365_v50  ;;  %v1443_v39 = vld [vmem:[#allocation3 + $0x10] sm:$0xff] }
 0x249   : > { %v1376_v22 = vsub.f32 %v1346_v13, %v1365_v50 }
 0x24a   : > { %v1372_v32 = vmax.f32 %v1370_v43, 0.0  ;;  %v1371_v45 = vsub.f32 %v1367_v41, %v1369_v44  ;;  %v1444_v44 = vld [vmem:[#allocation3 + $0x18] sm:$0xff] }
 0x24c   : > { %v1378_v46 = vadd.f32 1e-05, %v1372_v32  ;;  %v1373_v47 = vmax.f32 %v1371_v45, 0.0 }
 0x24e   : > { %3103 = vrsqrt.f32 %v1378_v46  ;;  %v1379_v21 = vadd.f32 1e-05, %v1373_v47  ;;  %vm1386_vm5 = vweird.f32 %v1378_v46 }
 0x250   : > { %3105 = vrsqrt.f32 %v1379_v21  ;;  %vm1396_vm4 = vweird.f32 %v1379_v21 }
 0x254   : > { %v3104_v27 = vpop.eup %3103 }
 0x255   : > { %v1381_v30 = vmul.f32 %v3104_v27, %v1378_v46  ;;  %vm1387_vm11 = vweird.f32 %v3104_v27 }
 0x256   : > { %v3106_v48 = vpop.eup %3105  ;;  %vm1388_vm3 = vmor %vm1386_vm5, %vm1387_vm11  ;;  %vm4673_vm11 = vcmask 130048  }
 0x257   : > { %v1382_v51 = vmul.f32 %v3104_v27, %v1381_v30  ;;  %v1391_v54 = vmul.f32 %v3106_v48, %v1379_v21  ;;  %vm1397_vm2 = vweird.f32 %v3106_v48  ;;  %vm4775_vm5 = vmmov %vm4773_vm0 }
 0x258   : > { %vm1398_vm12 = vmor %vm1396_vm4, %vm1397_vm2  ;;  %vm4777_vm2 = vcmp.lt.s32.totalorder %v3416_v28, 15 }
 0x259   : > { %v1383_v52 = vmul.f32 0.5, %v1382_v51  ;;  %v1392_v53 = vmul.f32 %v3106_v48, %v1391_v54  ;;  %vm4778_vm4 = vmmov %vm4777_vm2  ;;  %v1424_v54 = vld [vmem:[#allocation3] sm:$0xff] }
 0x25b   : > { %v1384_v15 = vsub.f32 1.5, %v1383_v52  ;;  %v1393_v55 = vmul.f32 0.5, %v1392_v53 }
 0x25d   : > { %v1385_v18 = vmul.f32 %v3104_v27, %v1384_v15  ;;  %v1394_v5 = vsub.f32 1.5, %v1393_v55  ;;  %v1567_v15 = vld [vmem:[#allocation3 + $0x20] sm:$0xff] }
 0x25f   : > { %v1389_v61 = vsel %vm1388_vm3, %v3104_v27, %v1385_v18  ;;  %v1395_v1 = vmul.f32 %v3106_v48, %v1394_v5  ;;  %vm4776_vm3 = vmmov %vm4773_vm0  ;;  %v1568_v5 = vld [vmem:[#allocation3 + $0x28] sm:$0xff] }
 0x260   : > { %v1400_v62 = vmul.f32 %v1389_v61, %v1374_v10  ;;  %v1401_v63 = vmul.f32 %v1389_v61, %v1375_v59  ;;  %v1425_v59 = vld [vmem:[#allocation3 + $0x8] sm:$0xff] }
 0x261   : > { %v1399_v7 = vsel %vm1398_vm12, %v3106_v48, %v1395_v1  ;;  %vm4779_vm12 = vcmp.lt.s32.totalorder %v3416_v28, 17 }
 0x262   : > { %v4130_v3 = vmax.f32 %v1400_v62, 0.0  ;;  %v4132_v4 = vmax.f32 %v1401_v63, 0.0  ;;  %v1403_v9 = vmul.f32 %v1399_v7, %v1377_v2  ;;  %v1402_v14 = vmul.f32 %v1399_v7, %v1376_v22  ;;  %v1642_v7 = vld [vmem:[#allocation3 + $0x30] sm:$0xff] }
 0x264   : > { %1426 = vrot.lane.b32.xlu0 %v4130_v3, %s3196_s10  ;;  %1430 = vrot.lane.b32.xlu1 %v4132_v4, %s3196_s10  ;;  %v4138_v58 = vmax.f32 %v1403_v9, 0.0  ;;  %v4142_v16 = vmax.f32 %v1402_v14, 0.0  ;;  %v1701_v9 = vld [vmem:[#allocation3 + $0x40] sm:$0xff] }
 0x266   : > { %1432 = vrot.lane.b32.xlu2 %v4138_v58, %s3196_s10 }
 0x26c   : > { %1554 = vrot.lane.b32.xlu0 %v4132_v4, %s3198_s15  ;;  %1428 = vrot.lane.b32.xlu1 %v4142_v16, %s3196_s10 }
 0x26e   : > { %1412 = vrot.lane.b32.xlu2 %v4132_v4, %s3197_s11 }
 0x274   : > { %1408 = vrot.lane.b32.xlu0 %v4130_v3, %s3197_s11  ;;  %1550 = vrot.lane.b32.xlu1 %v4130_v3, %s3198_s15 }
 0x276   : > { %1556 = vrot.lane.b32.xlu2 %v4138_v58, %s3198_s15 }
 0x27c   : > { %1552 = vrot.lane.b32.xlu0 %v4142_v16, %s3198_s15  ;;  %1414 = vrot.lane.b32.xlu1 %v4138_v58, %s3197_s11 }
 0x27e   : > { %1410 = vrot.lane.b32.xlu2 %v4142_v16, %s3197_s11 }
 0x284   : > { %1838 = vrot.lane.b32.xlu0 %v4132_v4, %s3201_s18  ;;  %1629 = vrot.lane.b32.xlu1 %v4132_v4, %s3199_s16 }
 0x286   : > { %1625 = vrot.lane.b32.xlu2 %v4130_v3, %s3199_s16 }
 0x28c   : > { %1631 = vrot.lane.b32.xlu0 %v4138_v58, %s3199_s16  ;;  %1627 = vrot.lane.b32.xlu1 %v4142_v16, %s3199_s16 }
 0x28e   : > { %1763 = vrot.lane.b32.xlu2 %v4132_v4, %s3200_s17 }
 0x294   : > { %1759 = vrot.lane.b32.xlu0 %v4130_v3, %s3200_s17  ;;  %1834 = vrot.lane.b32.xlu1 %v4130_v3, %s3201_s18 }
 0x296   : > { %1840 = vrot.lane.b32.xlu2 %v4138_v58, %s3201_s18 }
 0x29c   : > { %1836 = vrot.lane.b32.xlu0 %v4142_v16, %s3201_s18  ;;  %1765 = vrot.lane.b32.xlu1 %v4138_v58, %s3200_s17 }
 0x29e   : > { %1761 = vrot.lane.b32.xlu2 %v4142_v16, %s3200_s17 }
 0x2a4   : > { %1990 = vrot.lane.b32.xlu0 %v4138_v58, %s3203_s20  ;;  %1988 = vrot.lane.b32.xlu1 %v4132_v4, %s3203_s20 }
 0x2a6   : > { %1984 = vrot.lane.b32.xlu2 %v4130_v3, %s3203_s20 }
 0x2ac   : > { %1911 = vrot.lane.b32.xlu0 %v4142_v16, %s3202_s19  ;;  %1986 = vrot.lane.b32.xlu1 %v4142_v16, %s3203_s20 }
 0x2ae   : > { %1915 = vrot.lane.b32.xlu2 %v4138_v58, %s3202_s19 }
 0x2b4   : > { %1913 = vrot.lane.b32.xlu0 %v4132_v4, %s3202_s19  ;;  %1909 = vrot.lane.b32.xlu1 %v4130_v3, %s3202_s19 }
 0x2c0   : > { %v1433_v13 = vpop.permute.xlu2 %1432 }
 0x2c8   : > { %v1413_v23 = vpop.permute.xlu2 %1412 }
 0x2d0   : > { %v1557_v29 = vpop.permute.xlu2 %1556 }
 0x2d6   : > { %v1427_v25 = vpop.permute.xlu0 %1426  ;;  %v1431_v26 = vpop.permute.xlu1 %1430 }
 0x2d7   : > { %v1434_v49 = vsel %vm4775_vm5, %v1427_v25, %v1431_v26  ;;  %v1436_v50 = vsel %vm4776_vm3, %v1431_v26, %v1427_v25  ;;  %vm4783_vm3 = vnez %v4699_v17 }
 0x2d8   : > { %v1411_v42 = vpop.permute.xlu2 %1410 }
 0x2de   : > { %v1555_v35 = vpop.permute.xlu0 %1554  ;;  %v1429_v36 = vpop.permute.xlu1 %1428 }
 0x2df   : > { %v1435_v34 = vsel %vm4773_vm0, %v1429_v36, %v1433_v13  ;;  %v1437_v38 = vsel %vm4774_vm15, %v1433_v13, %v1429_v36  ;;  %vm4780_vm0 = vmmov %vm4779_vm12  ;;  %v1702_v13 = vld [vmem:[#allocation3 + $0x48] sm:$0xff] }
 0x2e0   : > { %2933 = vmatpush.msk.msra.mxu2 %vm3501_vm13, %v1437_v38  ;;  %2937 = vmatpush.msk.msra.mxu3 %vm3507_vm14, %v1435_v34  ;;  %v1626_v32 = vpop.permute.xlu2 %1625  ;;  %vm4781_vm15 = vmmov %vm4780_vm0 }
 0x2e1   : > { %vm4782_vm5 = vmmov %vm4780_vm0 }
 0x2e2   : > { %2934 = vmatpush.msk.msra.mxu2 %vm3501_vm13, %v1436_v50  ;;  %2938 = vmatpush.msk.msra.mxu3 %vm3507_vm14, %v1434_v49 }
 0x2e3   : > { %2935 = vmatmul.msk.f32.vlgmr.msra.gmra.mxu2 %vm4673_vm11, %v1443_v39  ;;  %2939 = vmatmul.msk.f32.vlgmr.msra.gmra.mxu3 %vm4673_vm11, %v1443_v39  ;;  %v1776_v39 = vld [vmem:[#allocation3 + $0x50] sm:$0xff] }
 0x2e6   : > { %v1409_v43 = vpop.permute.xlu0 %1408  ;;  %v1551_v41 = vpop.permute.xlu1 %1550 }
 0x2e7   : > { %v1416_v48 = vsel %vm4781_vm15, %v1409_v43, %v1413_v23  ;;  %v1418_v51 = vsel %vm4782_vm5, %v1413_v23, %v1409_v43  ;;  %v1558_v52 = vsel %vm4778_vm4, %v1551_v41, %v1555_v35  ;;  %vm4788_vm5 = vnez %v4708_v19 }
 0x2e8   : > { %v1764_v55 = vpop.permute.xlu2 %1763 }
 0x2eb   : > { %2936 = vmatmul.msk.f32.gmra.mxu2 %vm4673_vm11, %v1444_v44  ;;  %2940 = vmatmul.msk.f32.gmra.mxu3 %vm4673_vm11, %v1444_v44 }
 0x2ee   : > { %v1553_v45 = vpop.permute.xlu0 %1552  ;;  %v1415_v46 = vpop.permute.xlu1 %1414 }
 0x2ef   : > { %v1559_v47 = vsel %vm4777_vm2, %v1553_v45, %v1557_v29  ;;  %v1561_v21 = vsel %vm4778_vm4, %v1557_v29, %v1553_v45  ;;  %v1417_v27 = vsel %vm4779_vm12, %v1411_v42, %v1415_v46  ;;  %v1419_v30 = vsel %vm4780_vm0, %v1415_v46, %v1411_v42  ;;  %vm4785_vm12 = vmmov %vm4778_vm4  ;;  %v1851_v42 = vld [vmem:[#allocation3 + $0x60] sm:$0xff]  ;;  %v1852_v45 = vld [vmem:[#allocation3 + $0x68] sm:$0xff] }
 0x2f0   : > { %2941 = vmatpush.msk.msrb.mxu0 %vm3537_vm8, %v1419_v30  ;;  %2945 = vmatpush.msk.msrb.mxu1 %vm3600_vm6, %v1417_v27  ;;  %vm4784_vm2 = vnez %v4701_v24  ;;  %v1560_v53 = vsel %vm4785_vm12, %v1555_v35, %v1551_v41  ;;  %v1841_v63 = vpop.permute.xlu2 %1840  ;;  %vm4786_vm0 = vcmp.lt.s32.totalorder %v3416_v28, 1  ;;  %vm4789_vm4 = vnez %v4711_v20 }
 0x2f1   : > { %2949 = vmatpush.msk.msrb.mxu2 %vm4783_vm3, %v1561_v21  ;;  %2953 = vmatpush.msk.msrb.mxu3 %vm4784_vm2, %v1559_v47  ;;  %vm4787_vm15 = vmmov %vm4786_vm0 }
 0x2f2   : > { %2942 = vmatpush.msk.msrb.mxu0 %vm3537_vm8, %v1418_v51  ;;  %2946 = vmatpush.msk.msrb.mxu1 %vm3600_vm6, %v1416_v48  ;;  %vm4790_vm12 = vmmov %vm4786_vm0 }
 0x2f3   : > { %2950 = vmatpush.msk.msrb.mxu2 %vm4783_vm3, %v1560_v53  ;;  %2954 = vmatpush.msk.msrb.mxu3 %vm4784_vm2, %v1558_v52  ;;  %vm4791_vm7 = vmmov %vm4786_vm0  ;;  %v2001_v53 = vld [vmem:[#allocation3 + $0x80] sm:$0xff] }
 0x2f4   : > { %2943 = vmatmul.msk.f32.vlgmr.msrb.gmra.mxu0 %vm4673_vm11, %v1424_v54  ;;  %2947 = vmatmul.msk.f32.vlgmr.msrb.gmra.mxu1 %vm4673_vm11, %v1424_v54 }
 0x2f5   : > { %2951 = vmatmul.msk.f32.vlgmr.msrb.gmra.mxu2 %vm4673_vm11, %v1567_v15  ;;  %2955 = vmatmul.msk.f32.vlgmr.msrb.gmra.mxu3 %vm4673_vm11, %v1567_v15 }
 0x2f6   : > { %1723 = vmatpush.msra.mxu2 %v4142_v16  ;;  %1746 = vmatpush.msra.mxu3 %v4138_v58  ;;  %v1839_v18 = vpop.permute.xlu0 %1838  ;;  %v1630_v10 = vpop.permute.xlu1 %1629  ;;  %v1643_v16 = vld [vmem:[#allocation3 + $0x38] sm:$0xff] }
 0x2f8   : > { %1724 = vmatpush.msra.mxu2 %v4130_v3  ;;  %1747 = vmatpush.msra.mxu3 %v4132_v4  ;;  %v1633_v3 = vsel %vm4790_vm12, %v1626_v32, %v1630_v10  ;;  %v1635_v4 = vsel %vm4791_vm7, %v1630_v10, %v1626_v32  ;;  %v1762_v14 = vpop.permute.xlu2 %1761  ;;  %vm4792_vm7 = vcmp.lt.s32.totalorder %v3416_v28, 113  ;;  %v1777_v32 = vld [vmem:[#allocation3 + $0x58] sm:$0xff] }
 0x2fc   : > { %2944 = vmatmul.msk.f32.gmra.mxu0 %vm4673_vm11, %v1425_v59  ;;  %2948 = vmatmul.msk.f32.gmra.mxu1 %vm4673_vm11, %v1425_v59 }
 0x2fd   : > { %2952 = vmatmul.msk.f32.gmra.mxu2 %vm4673_vm11, %v1568_v5  ;;  %2956 = vmatmul.msk.f32.gmra.mxu3 %vm4673_vm11, %v1568_v5  ;;  %v2002_v5 = vld [vmem:[#allocation3 + $0x88] sm:$0xff] }
 0x2fe   : > { %v1632_v61 = vpop.permute.xlu0 %1631  ;;  %v1628_v62 = vpop.permute.xlu1 %1627 }
 0x2ff   : > { %v1634_v1 = vsel %vm4786_vm0, %v1628_v62, %v1632_v61  ;;  %v1636_v2 = vsel %vm4787_vm15, %v1632_v61, %v1628_v62  ;;  %vm4793_vm0 = vmmov %vm4792_vm7  ;;  %vm4794_vm15 = vcmp.lt.s32.totalorder %v3416_v28, 127  ;;  %v1927_v61 = vld [vmem:[#allocation3 + $0x78] sm:$0xff] }
 0x300   : > { %2957 = vmatpush.msk.msra.mxu0 %vm4788_vm5, %v1636_v2  ;;  %2961 = vmatpush.msk.msra.mxu1 %vm4789_vm4, %v1634_v1  ;;  %vm4795_vm12 = vmmov %vm4794_vm15  ;;  %v1985_v43 = vpop.permute.xlu2 %1984 }
 0x302   : > { %2958 = vmatpush.msk.msra.mxu0 %vm4788_vm5, %v1635_v4  ;;  %2962 = vmatpush.msk.msra.mxu1 %vm4789_vm4, %v1633_v3  ;;  %vm4796_vm4 = vnez %v4716_v8  ;;  %vm4797_vm5 = vnez %v4719_v11 }
 0x304   : > { %2959 = vmatmul.msk.f32.vlgmr.msra.gmra.mxu0 %vm4673_vm11, %v1642_v7  ;;  %2963 = vmatmul.msk.f32.vlgmr.msra.gmra.mxu1 %vm4673_vm11, %v1642_v7 }
 0x305   : > { %2965 = vmatmul.msk.f32.vlgmr.msra.gmra.mxu2 %vm4673_vm11, %v1701_v9  ;;  %2967 = vmatmul.msk.f32.vlgmr.msra.gmra.mxu3 %vm4673_vm11, %v1701_v9 }
 0x306   : > { %v1760_v22 = vpop.permute.xlu0 %1759  ;;  %v1835_v58 = vpop.permute.xlu1 %1834 }
 0x308   : > { %v1916_v46 = vpop.permute.xlu2 %1915 }
 0x30c   : > { %2960 = vmatmul.msk.f32.gmra.mxu0 %vm4673_vm11, %v1643_v16  ;;  %2964 = vmatmul.msk.f32.gmra.mxu1 %vm4673_vm11, %v1643_v16 }
 0x30d   : > { %2966 = vmatmul.msk.f32.gmra.mxu2 %vm4673_vm11, %v1702_v13  ;;  %2968 = vmatmul.msk.f32.gmra.mxu3 %vm4673_vm11, %v1702_v13  ;;  %vm4798_vm11 = vmmov %vm4795_vm12 }
 0x30e   : > { %v1837_v23 = vpop.permute.xlu0 %1836  ;;  %v1766_v25 = vpop.permute.xlu1 %1765  ;;  %v1767_v34 = vsel %vm4798_vm11, %v1760_v22, %v1764_v55 }
 0x30f   : > { %v1843_v26 = vsel %vm4792_vm7, %v1837_v23, %v1841_v63  ;;  %v1845_v29 = vsel %vm4793_vm0, %v1841_v63, %v1837_v23  ;;  %v1768_v35 = vsel %vm4794_vm15, %v1762_v14, %v1766_v25  ;;  %v1770_v36 = vsel %vm4795_vm12, %v1766_v25, %v1762_v14  ;;  %vm4799_vm7 = vmmov %vm4798_vm11 }
 0x310   : > { %2969 = vmatpush.msk.msrb.mxu0 %vm4796_vm4, %v1768_v35  ;;  %2973 = vmatpush.msk.msrb.mxu1 %vm4797_vm5, %v1770_v36  ;;  %v1769_v38 = vsel %vm4799_vm7, %v1764_v55, %v1760_v22  ;;  %vm4800_vm0 = vnez %v4730_v40  ;;  %vm4801_vm15 = vnez %v4735_v37  ;;  %vm4802_vm12 = vcmp.lt.s32.totalorder %v3416_v28, 113 }
 0x311   : > { %2977 = vmatpush.msk.msrb.mxu2 %vm4800_vm0, %v1843_v26  ;;  %2981 = vmatpush.msk.msrb.mxu3 %vm4801_vm15, %v1845_v29  ;;  %v1842_v49 = vsel %vm4802_vm12, %v1835_v58, %v1839_v18  ;;  %vm4803_vm2 = vmmov %vm4802_vm12  ;;  %vm4804_vm11 = vcmask 130048  }
 0x312   : > { %v1844_v50 = vsel %vm4803_vm2, %v1839_v18, %v1835_v58  ;;  %2970 = vmatpush.msk.msrb.mxu0 %vm4796_vm4, %v1767_v34  ;;  %2974 = vmatpush.msk.msrb.mxu1 %vm4797_vm5, %v1769_v38  ;;  %vm4805_vm7 = vmmov %vm4804_vm11  ;;  %v1926_v18 = vld [vmem:[#allocation3 + $0x70] sm:$0xff] }
 0x313   : > { %2978 = vmatpush.msk.msrb.mxu2 %vm4800_vm0, %v1842_v49  ;;  %2982 = vmatpush.msk.msrb.mxu3 %vm4801_vm15, %v1844_v50  ;;  %vm4806_vm12 = vmmov %vm4805_vm7 }
 0x314   : > { %2971 = vmatmul.msk.f32.vlgmr.msrb.gmra.mxu0 %vm4804_vm11, %v1776_v39  ;;  %2975 = vmatmul.msk.f32.vlgmr.msrb.gmra.mxu1 %vm4805_vm7, %v1776_v39  ;;  %vm4807_vm2 = vmmov %vm4805_vm7  ;;  %vm4812_vm11 = vcmp.lt.s32.totalorder %v3416_v28, 112 }
 0x315   : > { %2979 = vmatmul.msk.f32.vlgmr.msrb.gmra.mxu2 %vm4806_vm12, %v1851_v42  ;;  %2983 = vmatmul.msk.f32.vlgmr.msrb.gmra.mxu3 %vm4807_vm2, %v1851_v42  ;;  %vm4808_vm5 = vmmov %vm4807_vm2  ;;  %vm4814_vm12 = vcmp.lt.s32.totalorder %v3416_v28, 111 }
 0x316   : > { %v1991_v41 = vpop.permute.xlu0 %1990  ;;  %v1989_v44 = vpop.permute.xlu1 %1988  ;;  %vm4809_vm4 = vmmov %vm4807_vm2 }
 0x317   : > { %vm4810_vm0 = vmmov %vm4807_vm2 }
 0x318   : > { %vm4811_vm15 = vmmov %vm4810_vm0 }
 0x319   : > { %vm4813_vm7 = vmmov %vm4812_vm11 }
 0x31c   : > { %2972 = vmatmul.msk.f32.gmra.mxu0 %vm4808_vm5, %v1777_v32  ;;  %2976 = vmatmul.msk.f32.gmra.mxu1 %vm4809_vm4, %v1777_v32  ;;  %vm4815_vm5 = vmmov %vm4814_vm12  ;;  %vm4816_vm4 = vnez %v4755_v60 }
 0x31d   : > { %2980 = vmatmul.msk.f32.gmra.mxu2 %vm4810_vm0, %v1852_v45  ;;  %2984 = vmatmul.msk.f32.gmra.mxu3 %vm4811_vm15, %v1852_v45  ;;  %vm4817_vm0 = vmmov %vm4815_vm5 }
 0x31e   : > { %v1912_v47 = vpop.permute.xlu0 %1911  ;;  %v1987_v21 = vpop.permute.xlu1 %1986  ;;  %v1992_v54 = vsel %vm4817_vm0, %v1985_v43, %v1989_v44  ;;  %vm4818_vm15 = vmmov %vm4817_vm0 }
 0x31f   : > { %v1918_v27 = vsel %vm4812_vm11, %v1912_v47, %v1916_v46  ;;  %v1920_v30 = vsel %vm4813_vm7, %v1916_v46, %v1912_v47  ;;  %v1993_v48 = vsel %vm4814_vm12, %v1987_v21, %v1991_v41  ;;  %v1995_v51 = vsel %vm4815_vm5, %v1991_v41, %v1987_v21  ;;  %vm4819_vm11 = vmmov %vm4807_vm2 }
 0x320   : > { %2985 = vmatpush.msk.msra.mxu0 %vm3998_vm10, %v1918_v27  ;;  %2989 = vmatpush.msk.msra.mxu1 %vm4816_vm4, %v1920_v30  ;;  %v1994_v52 = vsel %vm4818_vm15, %v1989_v44, %v1985_v43  ;;  %vm4820_vm12 = vmmov %vm4813_vm7 }
 0x321   : > { %2993 = vmatpush.msk.msra.mxu2 %vm4061_vm9, %v1993_v48  ;;  %2997 = vmatpush.msk.msra.mxu3 %vm4067_vm1, %v1995_v51  ;;  %vm4821_vm5 = vmmov %vm4807_vm2 }
 0x322   : > { %vm4822_vm0 = vmmov %vm4807_vm2 }
 0x323   : > { %2994 = vmatpush.msk.msra.mxu2 %vm4061_vm9, %v1992_v54  ;;  %2998 = vmatpush.msk.msra.mxu3 %vm4067_vm1, %v1994_v52  ;;  %vm4823_vm15 = vmmov %vm4822_vm0 }
 0x325   : > { %2995 = vmatmul.msk.f32.vlgmr.msra.gmra.mxu2 %vm4807_vm2, %v2001_v53  ;;  %2999 = vmatmul.msk.f32.vlgmr.msra.gmra.mxu3 %vm4819_vm11, %v2001_v53  ;;  %vm4824_vm2 = vmmov %vm4822_vm0 }
 0x326   : > { %v1914_v15 = vpop.permute.xlu0 %1913  ;;  %v1910_v55 = vpop.permute.xlu1 %1909  ;;  %vm4825_vm11 = vmmov %vm4822_vm0 }
 0x327   : > { %v1917_v10 = vsel %vm4813_vm7, %v1910_v55, %v1914_v15  ;;  %v1919_v59 = vsel %vm4820_vm12, %v1914_v15, %v1910_v55  ;;  %vm4826_vm7 = vmmov %vm4822_vm0 }
 0x328   : > { %2986 = vmatpush.msk.msra.mxu0 %vm3998_vm10, %v1917_v10  ;;  %2990 = vmatpush.msk.msra.mxu1 %vm4816_vm4, %v1919_v59 }
 0x329   : > { %2987 = vmatmul.msk.f32.vlgmr.msra.gmra.mxu0 %vm4821_vm5, %v1926_v18  ;;  %2991 = vmatmul.msk.f32.vlgmr.msra.gmra.mxu1 %vm4822_vm0, %v1926_v18 }
 0x32d   : > { %2996 = vmatmul.msk.f32.gmra.mxu2 %vm4823_vm15, %v2002_v5  ;;  %3000 = vmatmul.msk.f32.gmra.mxu3 %vm4824_vm2, %v2002_v5 }
 0x331   : > { %2988 = vmatmul.msk.f32.gmra.mxu0 %vm4825_vm11, %v1927_v61  ;;  %2992 = vmatmul.msk.f32.gmra.mxu1 %vm4826_vm7, %v1927_v61  ;;  %vm4827_vm7 = vcmp.lt.s32.totalorder %v3416_v28, 17 }
 0x366   : > { %v1469_v62 = vpop.f32.mrf.mxu2  ;;  %v1492_v63 = vpop.f32.mrf.mxu3 }
 0x36e   : > { %v1472_v1 = vpop.f32.mrf.mxu2  ;;  %v1495_v2 = vpop.f32.mrf.mxu3 }
 0x371   : > { %v1521_v3 = vpop.f32.mrf.mxu0  ;;  %v1544_v4 = vpop.f32.mrf.mxu1 }
 0x372   : > { %v1522_v42 = vadd.f32 %v1521_v3, %v1469_v62  ;;  %v1545_v43 = vadd.f32 %v1544_v4, %v1492_v63 }
 0x378   : > { %v1592_v7 = vpop.f32.mrf.mxu2  ;;  %v1615_v9 = vpop.f32.mrf.mxu3 }
 0x379   : > { %v1524_v22 = vpop.f32.mrf.mxu0  ;;  %v1547_v58 = vpop.f32.mrf.mxu1  ;;  %v1621_v41 = vadd.f32 %v1592_v7, %v1522_v42  ;;  %v1622_v44 = vadd.f32 %v1615_v9, %v1545_v43 }
 0x37a   : > { %v1525_v51 = vadd.f32 %v1524_v22, %v1472_v1  ;;  %v1548_v54 = vadd.f32 %v1547_v58, %v1495_v2 }
 0x380   : > { %v1595_v14 = vpop.f32.mrf.mxu2  ;;  %v1618_v16 = vpop.f32.mrf.mxu3 }
 0x381   : > { %v1667_v13 = vpop.f32.mrf.mxu0  ;;  %v1690_v23 = vpop.f32.mrf.mxu1  ;;  %v1623_v15 = vadd.f32 %v1595_v14, %v1525_v51  ;;  %v1624_v55 = vadd.f32 %v1618_v16, %v1548_v54 }
 0x382   : > { %v1696_v46 = vadd.f32 %v1667_v13, %v1621_v41  ;;  %v1697_v47 = vadd.f32 %v1690_v23, %v1622_v44 }
 0x388   : > { %v1726_v25 = vpop.f32.mrf.mxu2  ;;  %v1749_v26 = vpop.f32.mrf.mxu3 }
 0x389   : > { %v1670_v29 = vpop.f32.mrf.mxu0  ;;  %v1693_v35 = vpop.f32.mrf.mxu1  ;;  %v1755_v30 = vadd.f32 %v1726_v25, %v1696_v46  ;;  %v1756_v48 = vadd.f32 %v1749_v26, %v1697_v47 }
 0x38a   : > { %v1698_v59 = vadd.f32 %v1670_v29, %v1623_v15  ;;  %v1699_v62 = vadd.f32 %v1693_v35, %v1624_v55 }
 0x390   : > { %v1729_v36 = vpop.f32.mrf.mxu2  ;;  %v1752_v34 = vpop.f32.mrf.mxu3 }
 0x391   : > { %v1801_v38 = vpop.f32.mrf.mxu0  ;;  %v1824_v39 = vpop.f32.mrf.mxu1  ;;  %v1757_v4 = vadd.f32 %v1729_v36, %v1698_v59  ;;  %v1758_v13 = vadd.f32 %v1752_v34, %v1699_v62 }
 0x392   : > { %v1830_v52 = vadd.f32 %v1801_v38, %v1755_v30  ;;  %v1831_v53 = vadd.f32 %v1824_v39, %v1756_v48 }
 0x398   : > { %v1876_v49 = vpop.f32.mrf.mxu2  ;;  %v1899_v50 = vpop.f32.mrf.mxu3 }
 0x399   : > { %v1804_v32 = vpop.f32.mrf.mxu0  ;;  %v1827_v45 = vpop.f32.mrf.mxu1  ;;  %v1905_v18 = vadd.f32 %v1876_v49, %v1830_v52  ;;  %v1906_v10 = vadd.f32 %v1899_v50, %v1831_v53 }
 0x39a   : > { %v1832_v1 = vadd.f32 %v1804_v32, %v1757_v4  ;;  %v1833_v2 = vadd.f32 %v1827_v45, %v1758_v13 }
 0x3a0   : > { %v1879_v21 = vpop.f32.mrf.mxu2  ;;  %v1902_v27 = vpop.f32.mrf.mxu3 }
 0x3a1   : > { %v1907_v16 = vadd.f32 %v1879_v21, %v1832_v1  ;;  %v1908_v26 = vadd.f32 %v1902_v27, %v1833_v2 }
 0x3a6   : > { %v1951_v5 = vpop.f32.mrf.mxu0  ;;  %v1974_v61 = vpop.f32.mrf.mxu1 }
 0x3a7   : > { %v1980_v63 = vadd.f32 %v1951_v5, %v1905_v18  ;;  %v1981_v3 = vadd.f32 %v1974_v61, %v1906_v10 }
 0x3a8   : > { %v2026_v7 = vpop.f32.mrf.mxu2  ;;  %v2049_v9 = vpop.f32.mrf.mxu3 }
 0x3a9   : > { %v2055_v23 = vadd.f32 %v2026_v7, %v1980_v63  ;;  %v2056_v25 = vadd.f32 %v2049_v9, %v1981_v3 }
 0x3ab   : > { %v2059_v22 = vadd.f32 %v2056_v25, %v2055_v23  ;;  %v2065_v58 = vmul.f32 %v2055_v23, %v2055_v23  ;;  %v2066_v14 = vmul.f32 %v2056_v25, %v2056_v25 }
 0x3ad   : > { %2060 = vadd.xlane.f32.xlu1 %v2059_v22  ;;  %v2069_v29 = vadd.f32 %v2066_v14, %v2065_v58 }
 0x3ae   : > { %v1954_v38 = vpop.f32.mrf.mxu0  ;;  %v1977_v39 = vpop.f32.mrf.mxu1 }
 0x3af   : > { %v1982_v35 = vadd.f32 %v1954_v38, %v1907_v16  ;;  %v1983_v49 = vadd.f32 %v1977_v39, %v1908_v26  ;;  %2070 = vadd.xlane.f32.xlu2 %v2069_v29 }
 0x3b0   : > { %v2029_v36 = vpop.f32.mrf.mxu2  ;;  %v2052_v50 = vpop.f32.mrf.mxu3 }
 0x3b1   : > { %v2057_v42 = vadd.f32 %v2029_v36, %v1982_v35  ;;  %v4370_v34 = vadd.f32 %v2052_v50, %v1983_v49 }
 0x3b3   : > { %v2067_v43 = vmul.f32 %v2057_v42, %v2057_v42  ;;  %v2068_v41 = vmul.f32 %v4370_v34, %v4370_v34  ;;  %v2062_v32 = vadd.f32 %v4370_v34, %v2057_v42 }
 0x3b5   : > { %v2072_v44 = vadd.f32 %v2068_v41, %v2067_v43 }
 0x3b7   : > { %2073 = vadd.xlane.f32.xlu0 %v2072_v44  ;;  %2063 = vadd.xlane.f32.xlu2 %v2062_v32 }
 0x420   : > { %v2061_v45 = vpop.xlane.xlu1 %2060 }
 0x421   : > { %v2075_v46 = vmul.f32 0.00390625, %v2061_v45 }
 0x422   : > { %v2071_v47 = vpop.xlane.xlu2 %2070 }
 0x423   : > { %v2077_v21 = vmul.f32 0.00390625, %v2071_v47  ;;  %v2079_v27 = vmul.f32 %v2075_v46, %v2075_v46  ;;  %v2085_v9 = vsub.f32 %v2055_v23, %v2075_v46  ;;  %v2086_v13 = vsub.f32 %v2056_v25, %v2075_v46 }
 0x425   : > { %v2081_v30 = vsub.f32 %v2077_v21, %v2079_v27 }
 0x427   : > { %v2083_v48 = vmax.f32 %v2081_v30, 0.0 }
 0x429   : > { %v2089_v51 = vadd.f32 1e-05, %v2083_v48 }
 0x42a   : > { %v2074_v54 = vpop.xlane.xlu0 %2073  ;;  %v2064_v52 = vpop.xlane.xlu2 %2063 }
 0x42b   : > { %3107 = vrsqrt.f32 %v2089_v51  ;;  %v2076_v53 = vmul.f32 0.00390625, %v2064_v52  ;;  %v2078_v15 = vmul.f32 0.00390625, %v2074_v54  ;;  %vm2097_vm5 = vweird.f32 %v2089_v51 }
 0x42d   : > { %v2080_v55 = vmul.f32 %v2076_v53, %v2076_v53  ;;  %v2087_v39 = vsub.f32 %v2057_v42, %v2076_v53  ;;  %v2088_v36 = vsub.f32 %v4370_v34, %v2076_v53 }
 0x42f   : > { %v2082_v18 = vsub.f32 %v2078_v15, %v2080_v55 }
 0x431   : > { %v3108_v10 = vpop.eup %3107  ;;  %v2084_v59 = vmax.f32 %v2082_v18, 0.0  ;;  %v2135_v18 = vld [vmem:[#allocation5] sm:$0xff] }
 0x432   : > { %v2092_v5 = vmul.f32 %v3108_v10, %v2089_v51  ;;  %vm2098_vm12 = vweird.f32 %v3108_v10 }
 0x433   : > { %v2090_v61 = vadd.f32 1e-05, %v2084_v59  ;;  %vm2099_vm0 = vmor %vm2097_vm5, %vm2098_vm12 }
 0x434   : > { %v2093_v62 = vmul.f32 %v3108_v10, %v2092_v5  ;;  %vm4828_vm12 = vmmov %vm4827_vm7 }
 0x435   : > { %3109 = vrsqrt.f32 %v2090_v61  ;;  %vm2107_vm2 = vweird.f32 %v2090_v61  ;;  %vm4829_vm5 = vmmov %vm4827_vm7 }
 0x436   : > { %v2094_v63 = vmul.f32 0.5, %v2093_v62 }
 0x438   : > { %v2095_v3 = vsub.f32 1.5, %v2094_v63 }
 0x43a   : > { %v2096_v4 = vmul.f32 %v3108_v10, %v2095_v3 }
 0x43b   : > { %v3110_v7 = vpop.eup %3109 }
 0x43c   : > { %v2100_v1 = vsel %vm2099_vm0, %v3108_v10, %v2096_v4  ;;  %v2102_v2 = vmul.f32 %v3110_v7, %v2090_v61  ;;  %vm2108_vm15 = vweird.f32 %v3110_v7  ;;  %vm4830_vm0 = vmmov %vm4829_vm5 }
 0x43d   : > { %v2111_v22 = vmul.f32 %v2100_v1, %v2085_v9  ;;  %v2112_v58 = vmul.f32 %v2100_v1, %v2086_v13  ;;  %vm2109_vm11 = vmor %vm2107_vm2, %vm2108_vm15  ;;  %vm4831_vm15 = vcmask 130048  }
 0x43e   : > { %v2103_v14 = vmul.f32 %v3110_v7, %v2102_v2  ;;  %vm4832_vm2 = vmmov %vm4831_vm15 }
 0x43f   : > { %v4375_v16 = vmax.f32 %v2111_v22, 0.0  ;;  %v4377_v26 = vmax.f32 %v2112_v58, 0.0 }
 0x440   : > { %v2104_v29 = vmul.f32 0.5, %v2103_v14 }
 0x441   : > { %2119 = vrot.lane.b32.xlu1 %v4375_v16, %s3197_s11  ;;  %2136 = vrot.lane.b32.xlu0 %v4375_v16, %s3196_s10 }
 0x442   : > { %v2105_v38 = vsub.f32 1.5, %v2104_v29  ;;  %2123 = vrot.lane.b32.xlu2 %v4377_v26, %s3197_s11 }
 0x444   : > { %v2106_v23 = vmul.f32 %v3110_v7, %v2105_v38  ;;  %v2257_v38 = vld [vmem:[#allocation5 + $0x10] sm:$0xff] }
 0x446   : > { %v2110_v25 = vsel %vm2109_vm11, %v3110_v7, %v2106_v23  ;;  %vm4833_vm11 = vcmp.lt.s32.totalorder %v3416_v28, 16  ;;  %v2320_v23 = vld [vmem:[#allocation5 + $0x18] sm:$0xff] }
 0x447   : > { %v2113_v35 = vmul.f32 %v2110_v25, %v2087_v39  ;;  %v2114_v50 = vmul.f32 %v2110_v25, %v2088_v36  ;;  %v2665_v25 = vld [vmem:[%s4631_s7] sm:$0xff] }
 0x448   : > { %v2430_v36 = vld [vmem:[#allocation5 + $0x28] sm:$0xff] }
 0x449   : > { %2140 = vrot.lane.b32.xlu1 %v4377_v26, %s3196_s10  ;;  %2240 = vrot.lane.b32.xlu0 %v4375_v16, %s3198_s15  ;;  %v4391_v49 = vmax.f32 %v2113_v35, 0.0  ;;  %v4406_v42 = vmax.f32 %v2114_v50, 0.0  ;;  %v2367_v35 = vld [vmem:[#allocation5 + $0x20] sm:$0xff] }
 0x44a   : > { %2303 = vrot.lane.b32.xlu2 %v4375_v16, %s3199_s16 }
 0x451   : > { %2244 = vrot.lane.b32.xlu1 %v4377_v26, %s3198_s15  ;;  %2307 = vrot.lane.b32.xlu0 %v4377_v26, %s3199_s16 }
 0x452   : > { %2138 = vrot.lane.b32.xlu2 %v4391_v49, %s3196_s10 }
 0x459   : > { %2417 = vrot.lane.b32.xlu1 %v4377_v26, %s3200_s17  ;;  %2413 = vrot.lane.b32.xlu0 %v4375_v16, %s3200_s17 }
 0x45a   : > { %2242 = vrot.lane.b32.xlu2 %v4391_v49, %s3198_s15 }
 0x461   : > { %2125 = vrot.lane.b32.xlu0 %v4406_v42, %s3197_s11  ;;  %2121 = vrot.lane.b32.xlu1 %v4391_v49, %s3197_s11 }
 0x462   : > { %2539 = vrot.lane.b32.xlu2 %v4375_v16, %s3202_s19 }
 0x469   : > { %2142 = vrot.lane.b32.xlu0 %v4406_v42, %s3196_s10  ;;  %2480 = vrot.lane.b32.xlu1 %v4377_v26, %s3201_s18 }
 0x46a   : > { %2309 = vrot.lane.b32.xlu2 %v4406_v42, %s3199_s16 }
 0x471   : > { %2246 = vrot.lane.b32.xlu0 %v4406_v42, %s3198_s15  ;;  %2305 = vrot.lane.b32.xlu1 %v4391_v49, %s3199_s16  ;;  %s3059_s15 = sshll.u32 %s4884_s9, 4 }
 0x472   : > { %2419 = vrot.lane.b32.xlu2 %v4406_v42, %s3200_s17 }
 0x479   : > { %2476 = vrot.lane.b32.xlu0 %v4375_v16, %s3201_s18  ;;  %2415 = vrot.lane.b32.xlu1 %v4391_v49, %s3200_s17 }
 0x47a   : > { %2478 = vrot.lane.b32.xlu2 %v4391_v49, %s3201_s18 }
 0x481   : > { %2482 = vrot.lane.b32.xlu0 %v4406_v42, %s3201_s18  ;;  %2541 = vrot.lane.b32.xlu1 %v4391_v49, %s3202_s19  ;;  %s399_s18 = scalar_lea.vmem %s4632_s8, %s3059_s15 }
 0x482   : > { %2545 = vrot.lane.b32.xlu2 %v4406_v42, %s3202_s19 }
 0x489   : > { %2543 = vrot.lane.b32.xlu0 %v4377_v26, %s3202_s19  ;;  %2604 = vrot.lane.b32.xlu1 %v4391_v49, %s3203_s20 }
 0x48a   : > { %2608 = vrot.lane.b32.xlu2 %v4406_v42, %s3203_s20 }
 0x491   : > { %2602 = vrot.lane.b32.xlu0 %v4375_v16, %s3203_s20  ;;  %2606 = vrot.lane.b32.xlu1 %v4377_v26, %s3203_s20 }
 0x49c   : > { %v2124_v34 = vpop.permute.xlu2 %2123 }
 0x4a4   : > { %v2304_v43 = vpop.permute.xlu2 %2303 }
 0x4ac   : > { %v2139_v32 = vpop.permute.xlu2 %2138 }
 0x4b3   : > { %v2120_v41 = vpop.permute.xlu1 %2119  ;;  %v2137_v44 = vpop.permute.xlu0 %2136 }
 0x4b4   : > { %v2243_v47 = vpop.permute.xlu2 %2242  ;;  %v2127_v10 = vsel %vm4829_vm5, %v2120_v41, %v2124_v34  ;;  %v2129_v59 = vsel %vm4830_vm0, %v2124_v34, %v2120_v41  ;;  %vm4838_vm5 = vmmov %vm4832_vm2  ;;  %vm4839_vm0 = vcmp.lt.s32.totalorder %v3416_v28, 15 }
 0x4bb   : > { %v2141_v45 = vpop.permute.xlu1 %2140  ;;  %v2241_v46 = vpop.permute.xlu0 %2240 }
 0x4bc   : > { %v4448_v30 = vpop.permute.xlu2 %2539 }
 0x4c3   : > { %v2245_v21 = vpop.permute.xlu1 %2244  ;;  %v2308_v27 = vpop.permute.xlu0 %2307 }
 0x4c4   : > { %v2310_v54 = vpop.permute.xlu2 %2309 }
 0x4cb   : > { %v4450_v48 = vpop.permute.xlu1 %2417  ;;  %v4452_v51 = vpop.permute.xlu0 %2413 }
 0x4cc   : > { %v2420_v62 = vpop.permute.xlu2 %2419 }
 0x4d3   : > { %v2126_v52 = vpop.permute.xlu0 %2125  ;;  %v2122_v53 = vpop.permute.xlu1 %2121 }
 0x4d4   : > { %v2128_v15 = vsel %vm4827_vm7, %v2122_v53, %v2126_v52  ;;  %v2130_v55 = vsel %vm4828_vm12, %v2126_v52, %v2122_v53  ;;  %vm4834_vm7 = vmmov %vm4833_vm11  ;;  %v2479_v58 = vpop.permute.xlu2 %2478 }
 0x4d5   : > { %3007 = vmatpush.msk.msrb.mxu2 %vm3537_vm8, %v2130_v55  ;;  %3010 = vmatpush.msk.msrb.mxu3 %vm3600_vm6, %v2128_v15  ;;  %vm4837_vm12 = vmmov %vm4832_vm2 }
 0x4d7   : > { %3008 = vmatpush.msk.msrb.mxu2 %vm3537_vm8, %v2129_v59  ;;  %3011 = vmatpush.msk.msrb.mxu3 %vm3600_vm6, %v2127_v10  ;;  %vm4835_vm8 = vmmov %vm4834_vm7 }
 0x4d8   : > { %3009 = vmatmul.msk.f32.vlgmr.msrb.gmra.mxu2 %vm4831_vm15, %v2135_v18  ;;  %3012 = vmatmul.msk.f32.vlgmr.msrb.gmra.mxu3 %vm4832_vm2, %v2135_v18  ;;  %v2144_v12 = vsel %vm4835_vm8, %v2137_v44, %v2141_v45  ;;  %vm4836_vm6 = vmmov %vm4834_vm7  ;;  %vm4841_vm2 = vcmp.lt.s32.totalorder %v3416_v28, 1  ;;  %vm4846_vm8 = vnez %v4708_v19 }
 0x4d9   : > { %v2146_v4 = vsel %vm4836_vm6, %v2141_v45, %v2137_v44  ;;  %vm4840_vm15 = vmmov %vm4839_vm0  ;;  %vm4847_vm6 = vnez %v4711_v20 }
 0x4db   : > { %v2143_v5 = vpop.permute.xlu0 %2142  ;;  %v4472_v61 = vpop.permute.xlu1 %2480 }
 0x4dc   : > { %v2145_v63 = vsel %vm4833_vm11, %v2139_v32, %v2143_v5  ;;  %v2147_v3 = vsel %vm4834_vm7, %v2143_v5, %v2139_v32  ;;  %vm4844_vm11 = vmmov %vm4839_vm0  ;;  %v2493_v32 = vld [vmem:[#allocation5 + $0x30] sm:$0xff] }
 0x4dd   : > { %3001 = vmatpush.msk.msrb.mxu0 %vm3501_vm13, %v2147_v3  ;;  %3004 = vmatpush.msk.msrb.mxu1 %vm3507_vm14, %v2145_v63  ;;  %v2248_v57 = vsel %vm4844_vm11, %v2241_v46, %v2245_v21  ;;  %vm4845_vm7 = vmmov %vm4839_vm0  ;;  %vm4856_vm11 = vnez %v4716_v8 }
 0x4de   : > { %v2250_v22 = vsel %vm4845_vm7, %v2245_v21, %v2241_v46 }
 0x4df   : > { %3002 = vmatpush.msk.msrb.mxu0 %vm3501_vm13, %v2146_v4  ;;  %3005 = vmatpush.msk.msrb.mxu1 %vm3507_vm14, %v2144_v12  ;;  %vm4842_vm13 = vmmov %vm4841_vm2  ;;  %vm4843_vm14 = vnez %v4701_v24 }
 0x4e0   : > { %3003 = vmatmul.msk.f32.vlgmr.msrb.gmra.mxu0 %vm4837_vm12, %v2153_v0  ;;  %3006 = vmatmul.msk.f32.vlgmr.msrb.gmra.mxu1 %vm4838_vm5, %v2153_v0  ;;  %vm4848_vm12 = vmmov %vm4841_vm2 }
 0x4e1   : > { %v2311_v14 = vsel %vm4848_vm12, %v2304_v43, %v2308_v27  ;;  %vm4849_vm5 = vmmov %vm4841_vm2 }
 0x4e2   : > { %v2313_v29 = vsel %vm4849_vm5, %v2308_v27, %v2304_v43 }
 0x4e3   : > { %v2247_v7 = vpop.permute.xlu0 %2246  ;;  %v2306_v9 = vpop.permute.xlu1 %2305 }
 0x4e4   : > { %v2249_v13 = vsel %vm4839_vm0, %v2243_v47, %v2247_v7  ;;  %v2251_v1 = vsel %vm4840_vm15, %v2247_v7, %v2243_v47  ;;  %v2312_v2 = vsel %vm4841_vm2, %v2306_v9, %v2310_v54  ;;  %v2314_v56 = vsel %vm4842_vm13, %v2310_v54, %v2306_v9  ;;  %v2619_v54 = vld [vmem:[#allocation5 + $0x40] sm:$0xff] }
 0x4e5   : > { %3013 = vmatpush.msk.msra.mxu0 %vm4783_vm3, %v2251_v1  ;;  %3016 = vmatpush.msk.msra.mxu1 %vm4843_vm14, %v2249_v13  ;;  %vm4850_vm0 = vcmask 130048  }
 0x4e6   : > { %3019 = vmatpush.msk.msra.mxu2 %vm4846_vm8, %v2314_v56  ;;  %3022 = vmatpush.msk.msra.mxu3 %vm4847_vm6, %v2312_v2  ;;  %vm4851_vm15 = vmmov %vm4850_vm0 }
 0x4e7   : > { %3014 = vmatpush.msk.msra.mxu0 %vm4783_vm3, %v2250_v22  ;;  %3017 = vmatpush.msk.msra.mxu1 %vm4843_vm14, %v2248_v57  ;;  %vm4852_vm3 = vcmp.lt.s32.totalorder %v3416_v28, 127  ;;  %vm4854_vm13 = vmmov %vm4850_vm0 }
 0x4e8   : > { %3020 = vmatpush.msk.msra.mxu2 %vm4846_vm8, %v2313_v29  ;;  %3023 = vmatpush.msk.msra.mxu3 %vm4847_vm6, %v2311_v14  ;;  %vm4853_vm2 = vmmov %vm4852_vm3  ;;  %vm4858_vm8 = vnez %v4719_v11 }
 0x4e9   : > { %2385 = vmatpush.msrb.mxu0 %v4391_v49  ;;  %2405 = vmatpush.msrb.mxu1 %v4406_v42  ;;  %vm4855_vm14 = vmmov %vm4850_vm0  ;;  %v2546_v49 = vpop.permute.xlu2 %2545 }
 0x4ea   : > { %3015 = vmatmul.msk.f32.vlgmr.msra.gmra.mxu0 %vm4850_vm0, %v2257_v38  ;;  %3018 = vmatmul.msk.f32.vlgmr.msra.gmra.mxu1 %vm4851_vm15, %v2257_v38  ;;  %vm4857_vm7 = vmmov %vm4853_vm2 }
 0x4eb   : > { %2386 = vmatpush.msrb.mxu0 %v4375_v16  ;;  %2406 = vmatpush.msrb.mxu1 %v4377_v26  ;;  %v2477_v17 = vpop.permute.xlu0 %2476  ;;  %v2416_v24 = vpop.permute.xlu1 %2415  ;;  %v2421_v16 = vsel %vm4857_vm7, %v4452_v51, %v4450_v48  ;;  %v3204_v26 = vmov 0   ;;  %vm4859_vm6 = vmmov %vm4853_vm2 }
 0x4ec   : > { %v2422_v19 = vsel %vm4852_vm3, %v2416_v24, %v2420_v62  ;;  %v2424_v20 = vsel %vm4853_vm2, %v2420_v62, %v2416_v24  ;;  %3021 = vmatmul.msk.f32.vlgmr.msra.gmra.mxu2 %vm4854_vm13, %v2320_v23  ;;  %3024 = vmatmul.msk.f32.vlgmr.msra.gmra.mxu3 %vm4855_vm14, %v2320_v23  ;;  %v2423_v39 = vsel %vm4859_vm6, %v4450_v48, %v4452_v51  ;;  %vm4860_vm12 = vmmov %vm4850_vm0  ;;  %vm4864_vm3 = vcmp.lt.s32.totalorder %v3416_v28, 112  ;;  %v2556_v48 = vld [vmem:[#allocation5 + $0x38] sm:$0xff] }
 0x4ed   : > { %3027 = vmatpush.msk.msrb.mxu2 %vm4856_vm11, %v2422_v19  ;;  %3030 = vmatpush.msk.msrb.mxu3 %vm4858_vm8, %v2424_v20  ;;  %vm4861_vm5 = vmmov %vm4850_vm0  ;;  %vm4862_vm0 = vcmp.lt.s32.totalorder %v3416_v28, 113 }
 0x4ee   : > { %3101 = vset.pattern.permute.xlu2 %v3204_v26  ;;  %3102 = vset.pattern.permute.xlu0 %v3204_v26  ;;  %vm4863_vm15 = vmmov %vm4862_vm0  ;;  %v2675_v26 = vld [vmem:[#allocation2 + $0x30] sm:$0xff] }
 0x4ef   : > { %3028 = vmatpush.msk.msrb.mxu2 %vm4856_vm11, %v2421_v16  ;;  %2668 = vperm.xlu2 %3101, %v2665_v25   ;;  %vm4865_vm2 = vmmov %vm4864_vm3  ;;  %vm4868_vm11 = vnez %v4730_v40 }
 0x4f0   : > { %3031 = vmatpush.msk.msrb.mxu3 %vm4858_vm8, %v2423_v39  ;;  %vm4866_vm13 = vmmov %vm4861_vm5  ;;  %vm4870_vm8 = vnez %v4735_v37  ;;  %v2676_v39 = vld [vmem:[#allocation2] sm:$0xff] }
 0x4f1   : > { %vm4867_vm14 = vmmov %vm4861_vm5  ;;  %v2609_v45 = vpop.permute.xlu2 %2608 }
 0x4f2   : > { %3025 = vmatmul.msk.f32.vlgmr.msrb.gmra.mxu0 %vm4860_vm12, %v2367_v35  ;;  %3026 = vmatmul.msk.f32.vlgmr.msrb.gmra.mxu1 %vm4861_vm5, %v2367_v35  ;;  %vm4869_vm7 = vmmov %vm4862_vm0 }
 0x4f3   : > { %v2483_v50 = vpop.permute.xlu0 %2482  ;;  %v2542_v42 = vpop.permute.xlu1 %2541  ;;  %v2484_v41 = vsel %vm4869_vm7, %v2477_v17, %v4472_v61  ;;  %vm4871_vm6 = vmmov %vm4862_vm0 }
 0x4f4   : > { %v2485_v34 = vsel %vm4862_vm0, %v2479_v58, %v2483_v50  ;;  %v2487_v8 = vsel %vm4863_vm15, %v2483_v50, %v2479_v58  ;;  %v2548_v43 = vsel %vm4864_vm3, %v2542_v42, %v2546_v49  ;;  %v2550_v11 = vsel %vm4865_vm2, %v2546_v49, %v2542_v42  ;;  %3029 = vmatmul.msk.f32.vlgmr.msrb.gmra.mxu2 %vm4866_vm13, %v2430_v36  ;;  %vm4872_vm12 = vmmov %vm4861_vm5 }
 0x4f5   : > { %3032 = vmatmul.msk.f32.vlgmr.msrb.gmra.mxu3 %vm4867_vm14, %v2430_v36  ;;  %3033 = vmatpush.msk.msra.mxu0 %vm4868_vm11, %v2485_v34  ;;  %v2486_v44 = vsel %vm4871_vm6, %v4472_v61, %v2477_v17  ;;  %vm4873_vm0 = vmmov %vm4865_vm2  ;;  %vm4875_vm3 = vcmp.lt.s32.totalorder %v3416_v28, 111 }
 0x4f6   : > { %3036 = vmatpush.msk.msra.mxu1 %vm4870_vm8, %v2487_v8  ;;  %3039 = vmatpush.msk.msra.mxu2 %vm3998_vm10, %v2548_v43  ;;  %vm4874_vm15 = vmmov %vm4873_vm0 }
 0x4f7   : > { %3042 = vmatpush.msk.msra.mxu3 %vm4816_vm4, %v2550_v11  ;;  %3034 = vmatpush.msk.msra.mxu0 %vm4868_vm11, %v2484_v41  ;;  %vm4876_vm2 = vmmov %vm4875_vm3 }
 0x4f8   : > { %3037 = vmatpush.msk.msra.mxu1 %vm4870_vm8, %v2486_v44  ;;  %vm4877_vm13 = vmmov %vm4861_vm5 }
 0x4f9   : > { %vm4878_vm14 = vmmov %vm4861_vm5 }
 0x4fa   : > { %3035 = vmatmul.msk.f32.vlgmr.msra.gmra.mxu0 %vm4872_vm12, %v2493_v32  ;;  %3038 = vmatmul.msk.f32.vlgmr.msra.gmra.mxu1 %vm4861_vm5, %v2493_v32  ;;  %vm4879_vm11 = vmmov %vm4876_vm2 }
 0x4fb   : > { %v2544_v46 = vpop.permute.xlu0 %2543  ;;  %v2605_v47 = vpop.permute.xlu1 %2604 }
 0x4fc   : > { %v2547_v21 = vsel %vm4873_vm0, %v4448_v30, %v2544_v46  ;;  %v2549_v40 = vsel %vm4874_vm15, %v2544_v46, %v4448_v30  ;;  %v2611_v27 = vsel %vm4875_vm3, %v2605_v47, %v2609_v45  ;;  %v2613_v37 = vsel %vm4876_vm2, %v2609_v45, %v2605_v47 }
 0x4fd   : > { %3040 = vmatpush.msk.msra.mxu2 %vm3998_vm10, %v2547_v21  ;;  %3043 = vmatpush.msk.msra.mxu3 %vm4816_vm4, %v2549_v40  ;;  %vm4880_vm10 = vmmov %vm4876_vm2 }
 0x4fe   : > { %3045 = vmatpush.msk.msrb.mxu0 %vm4061_vm9, %v2611_v27  ;;  %3048 = vmatpush.msk.msrb.mxu1 %vm4067_vm1, %v2613_v37  ;;  %vm4881_vm4 = vmmov %vm4861_vm5 }
 0x4ff   : > { %3041 = vmatmul.msk.f32.vlgmr.msra.gmra.mxu2 %vm4877_vm13, %v2556_v48  ;;  %3044 = vmatmul.msk.f32.vlgmr.msra.gmra.mxu3 %vm4878_vm14, %v2556_v48  ;;  %vm4882_vm7 = vmmov %vm4881_vm4 }
 0x503   : > { %v2603_v30 = vpop.permute.xlu0 %2602  ;;  %v2607_v51 = vpop.permute.xlu1 %2606 }
 0x504   : > { %v2610_v6 = vsel %vm4879_vm11, %v2603_v30, %v2607_v51  ;;  %v2612_v60 = vsel %vm4880_vm10, %v2607_v51, %v2603_v30 }
 0x505   : > { %3046 = vmatpush.msk.msrb.mxu0 %vm4061_vm9, %v2610_v6  ;;  %3049 = vmatpush.msk.msrb.mxu1 %vm4067_vm1, %v2612_v60 }
 0x506   : > { %3047 = vmatmul.msk.f32.vlgmr.msrb.gmra.mxu0 %vm4881_vm4, %v2619_v54  ;;  %3050 = vmatmul.msk.f32.vlgmr.msrb.gmra.mxu1 %vm4882_vm7, %v2619_v54 }
 0x549   : > { %v2669_v24 = vpop.permute.xlu2 %2668 }
 0x55b   : > { %v2217_v15 = vpop.f32.mrf.mxu2  ;;  %v2237_v55 = vpop.f32.mrf.mxu3 }
 0x55d   : > { %v2174_v52 = vpop.f32.mrf.mxu0  ;;  %v2194_v53 = vpop.f32.mrf.mxu1 }
 0x55e   : > { %v2218_v28 = vadd.f32 %v2217_v15, %v2174_v52  ;;  %v2238_v61 = vadd.f32 %v2237_v55, %v2194_v53 }
 0x567   : > { %v2278_v18 = vpop.f32.mrf.mxu0  ;;  %v2298_v10 = vpop.f32.mrf.mxu1 }
 0x568   : > { %v2301_v63 = vadd.f32 %v2278_v18, %v2218_v28  ;;  %v2302_v3 = vadd.f32 %v2298_v10, %v2238_v61 }
 0x56f   : > { %v2341_v59 = vpop.f32.mrf.mxu2  ;;  %v2361_v5 = vpop.f32.mrf.mxu3 }
 0x570   : > { %v2388_v62 = vpop.f32.mrf.mxu0  ;;  %v2408_v31 = vpop.f32.mrf.mxu1  ;;  %v2364_v33 = vadd.f32 %v2341_v59, %v2301_v63  ;;  %v2365_v0 = vadd.f32 %v2361_v5, %v2302_v3 }
 0x572   : > { %v2411_v7 = vadd.f32 %v2388_v62, %v2364_v33  ;;  %v2412_v9 = vadd.f32 %v2408_v31, %v2365_v0 }
 0x577   : > { %v2451_v12 = vpop.f32.mrf.mxu2 }
 0x578   : > { %v2471_v4 = vpop.f32.mrf.mxu3  ;;  %v2514_v13 = vpop.f32.mrf.mxu0  ;;  %v2474_v2 = vadd.f32 %v2451_v12, %v2411_v7 }
 0x579   : > { %v2534_v1 = vpop.f32.mrf.mxu1  ;;  %v2475_v56 = vadd.f32 %v2471_v4, %v2412_v9 }
 0x57a   : > { %v2537_v57 = vadd.f32 %v2514_v13, %v2474_v2 }
 0x57b   : > { %v2538_v22 = vadd.f32 %v2534_v1, %v2475_v56 }
 0x582   : > { %v2577_v58 = vpop.f32.mrf.mxu2  ;;  %v2597_v14 = vpop.f32.mrf.mxu3 }
 0x583   : > { %v2600_v29 = vadd.f32 %v2577_v58, %v2537_v57  ;;  %v2601_v38 = vadd.f32 %v2597_v14, %v2538_v22  ;;  %v2640_v23 = vpop.f32.mrf.mxu0  ;;  %v2660_v17 = vpop.f32.mrf.mxu1 }
 0x585   : > { %v2663_v19 = vadd.f32 %v2640_v23, %v2600_v29  ;;  %v2664_v20 = vadd.f32 %v2660_v17, %v2601_v38 }
 0x587   : > { %v2671_v25 = vadd.f32 %v2669_v24, %v2663_v19  ;;  %v2672_v16 = vadd.f32 %v2669_v24, %v2664_v20 }
 0x589   : > { %3111 = vtanh.f32 %v2671_v25 }
 0x58a   : > { %3113 = vtanh.f32 %v2672_v16 }
 0x58f   : > { %v3112_v35 = vpop.eup %3111 }
 0x590   : > { %v3114_v49 = vpop.eup %3113  ;;  %v2677_v36 = vadd.f32 %v3112_v35, %v2675_v26 }
 0x591   : > { %v2678_v50 = vadd.f32 %v3114_v49, %v2676_v39 }
 0x592   : > { %v3051_v42 = vclamps-f32 %v2677_v36, 1.0 }
 0x593   : > { %v3052_v34 = vclamps-f32 %v2678_v50, 1.0 }
 0x594   : > { %2683 = vst [vmem:[%s399_s18] sm:$0xff] %v3051_v42 }
 0x595   : > { %2684 = vst [vmem:[%s399_s18 + $0x8] sm:$0xff] %v3052_v34 }
 0x596 PF: > { %s20_s27 = sadd.s32 1, %s3189_s27  }
 0x597   : > { %p17_p7 = scmp.ge.s32.totalorder %s20_s27, 4  }
 0x599   :  { %19 = sbr.rel (!%p17_p7) target bundleno = 2 (0x2), region = 124 }
 0x59e   :  { %2706 = vsyncpa [#allocation4], 1 }
 0x59f   :  { %2708 = vsyncpa [#allocation4 + $0x1], 1 }
 0x5a0   :  { %2709 = vsyncpa [#allocation6], 1 }

</bundles_post_ra>
